<compile_context>
chip_gen: v7x
topology: tpu7x:2x2x1
jax: 0.10.0
libtpu: 0.0.40
codegen_flags: <defaults>
</compile_context>

<pallas_src>
import functools
import math

import jax
import jax.numpy as jnp
import numpy as np
from jax.experimental import pallas as pl
from jax.experimental.pallas import tpu as pltpu


# ------------------------------------------------------------------ merged bidirectional LSTM layer kernel
def bilstm_kernel(x_ref, wih_ref, whh_ref, b_ref, y_ref, hT_ref, cT_ref, *, T, B):
    """One bidirectional LSTM layer in a single grid step.

    x_ref:   (T*B, I)   time-major rows (t-major, b-minor)
    wih_ref: (I, 8H)    [fwd i|f|o|g | bwd i|f|o|g] gate columns
    whh_ref: (2H, 8H)   block-diagonal: rows 0:H -> fwd cols, rows H:2H -> bwd cols
    b_ref:   (1, 8H)    fwd+bwd biases
    y_ref:   (T*B, 2H)  [fwd H | bwd H] per row, original time order
    hT_ref, cT_ref: (2, B, H)  final states, [fwd, bwd]
    """
    G = whh_ref.shape[1]          # 8H
    H4 = G // 2                   # 4H
    H = H4 // 4

    # (1) Hoisted input projection for BOTH directions in one wide matmul, bias folded in.
    gx = (jnp.dot(x_ref[...], wih_ref[...], preferred_element_type=jnp.float32)
          + b_ref[...])                                           # (T*B, 8H)

    w_hh = whh_ref[...]                                           # (2H, 8H)

    h_f = jnp.zeros((B, H), jnp.float32)
    c_f = jnp.zeros((B, H), jnp.float32)
    h_b = jnp.zeros((B, H), jnp.float32)
    c_b = jnp.zeros((B, H), jnp.float32)
    hf_seq, hb_seq = [], []

    # (2) Fully static (unrolled) time loop: forward processes time t, backward processes
    #     time T-1-t; both share a single merged (B,2H)@(2H,8H) recurrent matmul.
    for t in range(T):
        h_cat = jnp.concatenate([h_f, h_b], axis=-1)                          # (B, 2H)
        gh = jnp.dot(h_cat, w_hh, preferred_element_type=jnp.float32)         # (B, 8H)

        rf = t * B                    # static row offsets -> static slices
        rb = (T - 1 - t) * B
        g_f = gx[rf:rf + B, :H4] + gh[:, :H4]
        g_b = gx[rb:rb + B, H4:] + gh[:, H4:]

        sf = jax.nn.sigmoid(g_f[:, :3 * H])            # contiguous i|f|o sigmoid
        gif = jnp.tanh(g_f[:, 3 * H:])
        c_f = sf[:, H:2 * H] * c_f + sf[:, :H] * gif
        h_f = sf[:, 2 * H:] * jnp.tanh(c_f)

        sb = jax.nn.sigmoid(g_b[:, :3 * H])
        gib = jnp.tanh(g_b[:, 3 * H:])
        c_b = sb[:, H:2 * H] * c_b + sb[:, :H] * gib
        h_b = sb[:, 2 * H:] * jnp.tanh(c_b)

        hf_seq.append(h_f)
        hb_seq.append(h_b)

    # (3) Assemble the full [fwd | bwd] output in registers and write it once.
    rows = [jnp.concatenate([hf_seq[t], hb_seq[T - 1 - t]], axis=-1) for t in range(T)]
    y_ref[...] = jnp.concatenate(rows, axis=0)
    hT_ref[...] = jnp.stack([h_f, h_b], axis=0)
    cT_ref[...] = jnp.stack([c_f, c_b], axis=0)


def run_bilstm_layer(x2d, wih_cat, whh_bd, b_cat, *, T, B):
    """x2d: (T*B, I) time-major rows.  Returns y (T*B, 2H), hT (2,B,H), cT (2,B,H)."""
    R, I = x2d.shape
    H2 = whh_bd.shape[0]
    H = H2 // 2
    G = whh_bd.shape[1]
    kernel = functools.partial(bilstm_kernel, T=T, B=B)
    grid_spec = pltpu.PrefetchScalarGridSpec(
        num_scalar_prefetch=0,
        grid=(1,),
        in_specs=[
            pl.BlockSpec((R, I), lambda i: (0, 0)),
            pl.BlockSpec((I, G), lambda i: (0, 0)),
            pl.BlockSpec((H2, G), lambda i: (0, 0)),
            pl.BlockSpec((1, G), lambda i: (0, 0)),
        ],
        out_specs=(
            pl.BlockSpec((R, H2), lambda i: (0, 0)),
            pl.BlockSpec((2, B, H), lambda i: (0, 0, 0)),
            pl.BlockSpec((2, B, H), lambda i: (0, 0, 0)),
        ),
    )
    return pl.pallas_call(
        kernel,
        out_shape=(
            jax.ShapeDtypeStruct((R, H2), jnp.float32),
            jax.ShapeDtypeStruct((2, B, H), jnp.float32),
            jax.ShapeDtypeStruct((2, B, H), jnp.float32),
        ),
        grid_spec=grid_spec,
        compiler_params=pltpu.CompilerParams(dimension_semantics=("arbitrary",)),
    )(x2d, wih_cat, whh_bd, b_cat)


# ------------------------------------------------------------------ per-n tiled multi-head attention kernel
def mha_kernel(x_ref, wqkv_ref, bqkv_ref, wo_ref, bo_ref, out_ref, attnw_ref, *, num_heads):
    """One attention problem (one n of the MHA batch N=T) per grid step.

    x_ref: (L, E2) -> out_ref (L, E2), attnw_ref (L, L) head-averaged weights.
    """
    E2 = wo_ref.shape[0]
    dh = E2 // num_heads
    scale = 1.0 / math.sqrt(dh)

    # Fused Q|K|V projection for this n.
    qkv = (jnp.dot(x_ref[...], wqkv_ref[...], preferred_element_type=jnp.float32)
           + bqkv_ref[...])                             # (L, 3*E2)
    q = qkv[:, :E2] * scale
    k = qkv[:, E2:2 * E2]
    v = qkv[:, 2 * E2:]

    ctx_heads = []
    p_acc = jnp.zeros(attnw_ref.shape, jnp.float32)
    for h in range(num_heads):
        lo = h * dh
        qh = q[:, lo:lo + dh]
        kh = k[:, lo:lo + dh]
        vh = v[:, lo:lo + dh]
        s = jax.lax.dot_general(qh, kh, (((1,), (1,)), ((), ())),
                                preferred_element_type=jnp.float32)          # (L, L)
        s = s - jnp.max(s, axis=-1, keepdims=True)
        e = jnp.exp(s)
        p = e * pl.reciprocal(jnp.sum(e, axis=-1, keepdims=True), approx=True)
        ctx_heads.append(jnp.dot(p, vh, preferred_element_type=jnp.float32))  # (L, dh)
        p_acc = p_acc + p

    # Head outputs stay in registers; one concat feeds the fused output projection.
    ctx = jnp.concatenate(ctx_heads, axis=-1)                                 # (L, E2)
    out_ref[...] = (jnp.dot(ctx, wo_ref[...], preferred_element_type=jnp.float32)
                    + bo_ref[...])
    attnw_ref[...] = p_acc * (1.0 / num_heads)


def run_mha(x_nle, wqkv, bqkv, wo, bo, num_heads):
    """x_nle: (N, L, E2); attention over L with N as the MHA batch.
    Returns attn_out (N, L, E2) and head-averaged attn weights (N, L, L)."""
    N, L, E2 = x_nle.shape
    kernel = functools.partial(mha_kernel, num_heads=num_heads)
    grid_spec = pltpu.PrefetchScalarGridSpec(
        num_scalar_prefetch=0,
        grid=(N,),
        in_specs=[
            pl.BlockSpec((None, L, E2), lambda n: (n, 0, 0)),
            pl.BlockSpec(wqkv.shape, lambda n: (0, 0)),
            pl.BlockSpec(bqkv.shape, lambda n: (0, 0)),
            pl.BlockSpec(wo.shape, lambda n: (0, 0)),
            pl.BlockSpec(bo.shape, lambda n: (0, 0)),
        ],
        out_specs=(
            pl.BlockSpec((None, L, E2), lambda n: (n, 0, 0)),
            pl.BlockSpec((None, L, L), lambda n: (n, 0, 0)),
        ),
    )
    return pl.pallas_call(
        kernel,
        out_shape=(jax.ShapeDtypeStruct((N, L, E2), jnp.float32),
                   jax.ShapeDtypeStruct((N, L, L), jnp.float32)),
        grid_spec=grid_spec,
        # N axis is "parallel": independent outputs per n -> shards across both TCs on v7x.
        compiler_params=pltpu.CompilerParams(dimension_semantics=("parallel",)),
    )(x_nle, wqkv, bqkv, wo, bo)


# ------------------------------------------------------------------ parameter setup
def init_params(key, embedding_dim, hidden_dim, num_layers, num_heads):
    H = hidden_dim
    E2 = 2 * H

    def reorder_rows(w):
        # PyTorch packs gate rows [i, f, g, o]; kernel uses [i, f, o, g] so the three
        # sigmoid gates are contiguous.  Pure layout permutation, same math.
        i, f, g, o = jnp.split(w, 4, axis=0)
        return jnp.concatenate([i, f, o, g], axis=0)

    lstm_layers = []
    for layer in range(num_layers):
        in_dim = embedding_dim if layer == 0 else E2
        scale = 1.0 / math.sqrt(H)
        wih_d, whh_d, b_d = [], [], []
        for _direction in range(2):
            key, k1, k2, k3, k4 = jax.random.split(key, 5)
            w_ih = jax.random.uniform(k1, (4 * H, in_dim), minval=-scale, maxval=scale)
            w_hh = jax.random.uniform(k2, (4 * H, H), minval=-scale, maxval=scale)
            b_ih = jax.random.uniform(k3, (4 * H,), minval=-scale, maxval=scale)
            b_hh = jax.random.uniform(k4, (4 * H,), minval=-scale, maxval=scale)
            wih_d.append(reorder_rows(w_ih).T)                            # (in_dim, 4H)
            whh_d.append(reorder_rows(w_hh).T)                            # (H, 4H)
            b_d.append(reorder_rows((b_ih + b_hh).reshape(4 * H, 1)).reshape(1, 4 * H))
        wih_cat = jnp.concatenate(wih_d, axis=-1)                         # (in_dim, 8H)
        z = jnp.zeros((H, 4 * H), jnp.float32)
        whh_bd = jnp.concatenate(
            [jnp.concatenate([whh_d[0], z], axis=-1),
             jnp.concatenate([z, whh_d[1]], axis=-1)], axis=0)            # (2H, 8H) block-diag
        b_cat = jnp.concatenate(b_d, axis=-1)                             # (1, 8H)
        lstm_layers.append((wih_cat, whh_bd, b_cat))

    key, kq, kb, ko, kob = jax.random.split(key, 5)
    in_proj_w = jax.random.uniform(kq, (3 * E2, E2), minval=-0.1, maxval=0.1)
    in_proj_b = jax.random.uniform(kb, (3 * E2,), minval=-0.1, maxval=0.1)
    out_w = jax.random.uniform(ko, (E2, E2), minval=-0.1, maxval=0.1)
    out_b = jax.random.uniform(kob, (E2,), minval=-0.1, maxval=0.1)
    mha_params = (
        in_proj_w.T,                      # (E2, 3*E2): x @ wqkv == [x@Wq.T | x@Wk.T | x@Wv.T]
        in_proj_b.reshape(1, 3 * E2),
        out_w.T,                          # (E2, E2)
        out_b.reshape(1, E2),
    )
    return lstm_layers, mha_params


# ------------------------------------------------------------------ forward (glue)
def contextual_encoder_forward(x, lstm_layers, mha_params, num_heads):
    """x: (B, T, embedding_dim).  Mirrors ContextualEncoder.forward(x, mask=None)."""
    B, T, E = x.shape
    # Time-major rows (t-major, b-minor); subsequent reshapes between pallas_calls are
    # layout-compatible bitcasts (no extra HBM copies).
    inp2d = jnp.transpose(x, (1, 0, 2)).reshape(T * B, E)

    hs, cs = [], []
    for (wih, whh, b) in lstm_layers:
        y2d, hT, cT = run_bilstm_layer(inp2d, wih, whh, b, T=T, B=B)   # (T*B, 2H) fused output
        inp2d = y2d                                                    # feeds next layer directly
        hs.append(hT)
        cs.append(cT)
    hidden = jnp.concatenate(hs, axis=0)                 # (num_layers*2, B, H), PyTorch order
    cell = jnp.concatenate(cs, axis=0)

    # nn.MultiheadAttention with default batch_first=False on the batch-first LSTM output:
    # (N, L, E) = (T, B, 2H) == time-major LSTM output.
    wqkv, bqkv, wo, bo = mha_params
    E2 = wo.shape[0]
    x_nle = inp2d.reshape(T, B, E2)                      # free bitcast
    attn_nle, attn_w = run_mha(x_nle, wqkv, bqkv, wo, bo, num_heads)
    attn_output = jnp.transpose(attn_nle, (1, 0, 2))     # (B, T, 2H) == (L, N, E)
    return attn_output, {"hidden_state": hidden, "cell_state": cell,
                         "attention_weights": attn_w}


# ------------------------------------------------------------------ pure-JAX reference
def _lstm_dir_ref(x_tm, w_ih, w_hh, b):
    T, B, _ = x_tm.shape
    H = w_hh.shape[0]

    def step(carry, x_t):
        h, c = carry
        gates = x_t @ w_ih + h @ w_hh + b                # (B, 4H) cols [i|f|o|g]
        i = jax.nn.sigmoid(gates[:, :H])
        f = jax.nn.sigmoid(gates[:, H:2 * H])
        o = jax.nn.sigmoid(gates[:, 2 * H:3 * H])
        g = jnp.tanh(gates[:, 3 * H:])
        c = f * c + i * g
        h = o * jnp.tanh(c)
        return (h, c), h

    (hT, cT), ys = jax.lax.scan(step, (jnp.zeros((B, H)), jnp.zeros((B, H))), x_tm)
    return ys, hT, cT


def _forward_ref(x, lstm_layers, mha_params, num_heads):
    x_tm = jnp.transpose(x, (1, 0, 2))
    inp = x_tm
    hs, cs = [], []
    for (wih_cat, whh_bd, b_cat) in lstm_layers:
        G = wih_cat.shape[1]
        H4 = G // 2
        H = H4 // 4
        wih_f, wih_b = wih_cat[:, :H4], wih_cat[:, H4:]
        whh_f, whh_b = whh_bd[:H, :H4], whh_bd[H:, H4:]
        b_f, b_b = b_cat[:, :H4], b_cat[:, H4:]
        y_f, h_f, c_f = _lstm_dir_ref(inp, wih_f, whh_f, b_f)
        y_b_rev, h_b, c_b = _lstm_dir_ref(inp[::-1], wih_b, whh_b, b_b)
        inp = jnp.concatenate([y_f, y_b_rev[::-1]], axis=-1)
        hs += [h_f[None], h_b[None]]
        cs += [c_f[None], c_b[None]]
    hidden = jnp.concatenate(hs, 0)
    cell = jnp.concatenate(cs, 0)

    wqkv, bqkv, wo, bo = mha_params
    N, L, _ = inp.shape
    E2 = wo.shape[0]
    dh = E2 // num_heads
    scale = 1.0 / math.sqrt(dh)
    qkv = inp @ wqkv + bqkv[0]
    q = (qkv[..., :E2] * scale).reshape(N, L, num_heads, dh)
    k = qkv[..., E2:2 * E2].reshape(N, L, num_heads, dh)
    v = qkv[..., 2 * E2:].reshape(N, L, num_heads, dh)
    s = jnp.einsum('nlhd,nmhd->nhlm', q, k)
    p = jax.nn.softmax(s, axis=-1)
    o = jnp.einsum('nhlm,nmhd->nlhd', p, v).reshape(N, L, E2)
    attn = o @ wo + bo[0]
    w = p.mean(axis=1)
    return jnp.transpose(attn, (1, 0, 2)), hidden, cell, w


# ------------------------------------------------------------------ main
if __name__ == "__main__":
    B, T = 2, 8
    embedding_dim, hidden_dim, num_layers, num_heads = 32, 16, 2, 8

    key = jax.random.PRNGKey(0)
    key, kx, kp = jax.random.split(key, 3)
    x = jax.random.normal(kx, (B, T, embedding_dim), dtype=jnp.float32)
    lstm_layers, mha_params = init_params(kp, embedding_dim, hidden_dim, num_layers, num_heads)

    fwd = jax.jit(contextual_encoder_forward, static_argnums=(3,))
    attn_out, aux = fwd(x, lstm_layers, mha_params, num_heads)
    jax.block_until_ready((attn_out, aux))

    assert attn_out.shape == (B, T, 2 * hidden_dim)
    assert aux["hidden_state"].shape == (num_layers * 2, B, hidden_dim)
    assert aux["cell_state"].shape == (num_layers * 2, B, hidden_dim)
    assert aux["attention_weights"].shape == (T, B, B)

    with jax.default_matmul_precision("float32"):
        ref_attn, ref_h, ref_c, ref_w = _forward_ref(x, lstm_layers, mha_params, num_heads)

    np.testing.assert_allclose(np.asarray(attn_out), np.asarray(ref_attn), rtol=1e-2, atol=1e-2)
    np.testing.assert_allclose(np.asarray(aux["hidden_state"]), np.asarray(ref_h), rtol=1e-2, atol=1e-2)
    np.testing.assert_allclose(np.asarray(aux["cell_state"]), np.asarray(ref_c), rtol=1e-2, atol=1e-2)
    np.testing.assert_allclose(np.asarray(aux["attention_weights"]), np.asarray(ref_w), rtol=1e-2, atol=1e-2)

    print("KERNEL_OK")
</pallas_src>

<mosaic_0001>
module attributes {stable_mosaic.version = 11 : i64} {
  func.func @bilstm_kernel(%arg0: i32, %arg1: memref<16x32xf32, #tpu.memory_space<vmem>>, %arg2: memref<32x128xf32, #tpu.memory_space<vmem>>, %arg3: memref<32x128xf32, #tpu.memory_space<vmem>>, %arg4: memref<1x128xf32, #tpu.memory_space<vmem>>, %arg5: memref<16x32xf32, #tpu.memory_space<vmem>>, %arg6: memref<2x2x16xf32, #tpu.memory_space<vmem>>, %arg7: memref<2x2x16xf32, #tpu.memory_space<vmem>>) attributes {dimension_semantics = [#tpu.dimension_semantics<arbitrary>], iteration_bounds = array<i64: 1>, scalar_prefetch = 0 : i64, scratch_operands = 0 : i64, tpu.core_type = #tpu.core_type<tc>, window_params = [{pipeline_mode = #tpu.pipeline_mode<synchronous>, transform_indices = @transform_0, window_bounds = array<i64: 16, 32>}, {pipeline_mode = #tpu.pipeline_mode<synchronous>, transform_indices = @transform_1, window_bounds = array<i64: 32, 128>}, {pipeline_mode = #tpu.pipeline_mode<synchronous>, transform_indices = @transform_2, window_bounds = array<i64: 32, 128>}, {pipeline_mode = #tpu.pipeline_mode<synchronous>, transform_indices = @transform_3, window_bounds = array<i64: 1, 128>}, {pipeline_mode = #tpu.pipeline_mode<synchronous>, transform_indices = @transform_4, window_bounds = array<i64: 16, 32>}, {pipeline_mode = #tpu.pipeline_mode<synchronous>, transform_indices = @transform_5, window_bounds = array<i64: 2, 2, 16>}, {pipeline_mode = #tpu.pipeline_mode<synchronous>, transform_indices = @transform_6, window_bounds = array<i64: 2, 2, 16>}]} {
    %c0 = arith.constant 0 : index
    %c0_0 = arith.constant 0 : index
    %0 = vector.load %arg1[%c0, %c0_0] : memref<16x32xf32, #tpu.memory_space<vmem>>, vector<16x32xf32>
    %c0_1 = arith.constant 0 : index
    %c0_2 = arith.constant 0 : index
    %1 = vector.load %arg2[%c0_1, %c0_2] : memref<32x128xf32, #tpu.memory_space<vmem>>, vector<32x128xf32>
    %cst = arith.constant dense<0.000000e+00> : vector<16x128xf32>
    %2 = tpu.matmul %0, %1, %cst {dimension_numbers = #tpu.dot_dimension_numbers<[1], [0], [0], [1], [0, 0, 1, 1], [], []>} : vector<16x32xf32>, vector<32x128xf32>, vector<16x128xf32> -> vector<16x128xf32>
    %c0_3 = arith.constant 0 : index
    %c0_4 = arith.constant 0 : index
    %3 = vector.load %arg4[%c0_3, %c0_4] : memref<1x128xf32, #tpu.memory_space<vmem>>, vector<1x128xf32>
    %4 = vector.broadcast %3 : vector<1x128xf32> to vector<16x128xf32>
    %5 = arith.addf %2, %4 : vector<16x128xf32>
    %c0_5 = arith.constant 0 : index
    %c0_6 = arith.constant 0 : index
    %6 = vector.load %arg3[%c0_5, %c0_6] : memref<32x128xf32, #tpu.memory_space<vmem>>, vector<32x128xf32>
    %cst_7 = arith.constant 0.000000e+00 : f32
    %7 = vector.broadcast %cst_7 : f32 to vector<2x16xf32>
    %cst_8 = arith.constant 0.000000e+00 : f32
    %8 = vector.broadcast %cst_8 : f32 to vector<2x16xf32>
    %cst_9 = arith.constant 0.000000e+00 : f32
    %9 = vector.broadcast %cst_9 : f32 to vector<2x16xf32>
    %cst_10 = arith.constant 0.000000e+00 : f32
    %10 = vector.broadcast %cst_10 : f32 to vector<2x16xf32>
    %11 = tpu.concatenate %7, %9 in 1 : vector<2x16xf32>, vector<2x16xf32> -> vector<2x32xf32>
    %cst_11 = arith.constant dense<0.000000e+00> : vector<2x128xf32>
    %12 = tpu.matmul %11, %6, %cst_11 {dimension_numbers = #tpu.dot_dimension_numbers<[1], [0], [0], [1], [0, 0, 1, 1], [], []>} : vector<2x32xf32>, vector<32x128xf32>, vector<2x128xf32> -> vector<2x128xf32>
    %13 = vector.extract_strided_slice %5 {offsets = [0, 0], sizes = [2, 64], strides = [1, 1]} : vector<16x128xf32> to vector<2x64xf32>
    %14 = vector.extract_strided_slice %12 {offsets = [0, 0], sizes = [2, 64], strides = [1, 1]} : vector<2x128xf32> to vector<2x64xf32>
    %15 = arith.addf %13, %14 : vector<2x64xf32>
    %16 = vector.extract_strided_slice %5 {offsets = [14, 64], sizes = [2, 64], strides = [1, 1]} : vector<16x128xf32> to vector<2x64xf32>
    %17 = vector.extract_strided_slice %12 {offsets = [0, 64], sizes = [2, 64], strides = [1, 1]} : vector<2x128xf32> to vector<2x64xf32>
    %18 = arith.addf %16, %17 : vector<2x64xf32>
    %19 = vector.extract_strided_slice %15 {offsets = [0, 0], sizes = [2, 48], strides = [1, 1]} : vector<2x64xf32> to vector<2x48xf32>
    %20 = arith.negf %19 : vector<2x48xf32>
    %21 = math.exp %20 : vector<2x48xf32>
    %cst_12 = arith.constant 1.000000e+00 : f32
    %22 = vector.broadcast %cst_12 : f32 to vector<2x48xf32>
    %23 = arith.addf %22, %21 : vector<2x48xf32>
    %24 = arith.divf %22, %23 : vector<2x48xf32>
    %25 = vector.extract_strided_slice %15 {offsets = [0, 48], sizes = [2, 16], strides = [1, 1]} : vector<2x64xf32> to vector<2x16xf32>
    %26 = math.tanh %25 : vector<2x16xf32>
    %27 = vector.extract_strided_slice %24 {offsets = [0, 16], sizes = [2, 16], strides = [1, 1]} : vector<2x48xf32> to vector<2x16xf32>
    %28 = arith.mulf %27, %8 : vector<2x16xf32>
    %29 = vector.extract_strided_slice %24 {offsets = [0, 0], sizes = [2, 16], strides = [1, 1]} : vector<2x48xf32> to vector<2x16xf32>
    %30 = arith.mulf %29, %26 : vector<2x16xf32>
    %31 = arith.addf %28, %30 : vector<2x16xf32>
    %32 = vector.extract_strided_slice %24 {offsets = [0, 32], sizes = [2, 16], strides = [1, 1]} : vector<2x48xf32> to vector<2x16xf32>
    %33 = math.tanh %31 : vector<2x16xf32>
    %34 = arith.mulf %32, %33 : vector<2x16xf32>
    %35 = vector.extract_strided_slice %18 {offsets = [0, 0], sizes = [2, 48], strides = [1, 1]} : vector<2x64xf32> to vector<2x48xf32>
    %36 = arith.negf %35 : vector<2x48xf32>
    %37 = math.exp %36 : vector<2x48xf32>
    %cst_13 = arith.constant 1.000000e+00 : f32
    %38 = vector.broadcast %cst_13 : f32 to vector<2x48xf32>
    %39 = arith.addf %38, %37 : vector<2x48xf32>
    %40 = arith.divf %38, %39 : vector<2x48xf32>
    %41 = vector.extract_strided_slice %18 {offsets = [0, 48], sizes = [2, 16], strides = [1, 1]} : vector<2x64xf32> to vector<2x16xf32>
    %42 = math.tanh %41 : vector<2x16xf32>
    %43 = vector.extract_strided_slice %40 {offsets = [0, 16], sizes = [2, 16], strides = [1, 1]} : vector<2x48xf32> to vector<2x16xf32>
    %44 = arith.mulf %43, %10 : vector<2x16xf32>
    %45 = vector.extract_strided_slice %40 {offsets = [0, 0], sizes = [2, 16], strides = [1, 1]} : vector<2x48xf32> to vector<2x16xf32>
    %46 = arith.mulf %45, %42 : vector<2x16xf32>
    %47 = arith.addf %44, %46 : vector<2x16xf32>
    %48 = vector.extract_strided_slice %40 {offsets = [0, 32], sizes = [2, 16], strides = [1, 1]} : vector<2x48xf32> to vector<2x16xf32>
    %49 = math.tanh %47 : vector<2x16xf32>
    %50 = arith.mulf %48, %49 : vector<2x16xf32>
    %51 = tpu.concatenate %34, %50 in 1 : vector<2x16xf32>, vector<2x16xf32> -> vector<2x32xf32>
    %cst_14 = arith.constant dense<0.000000e+00> : vector<2x128xf32>
    %52 = tpu.matmul %51, %6, %cst_14 {dimension_numbers = #tpu.dot_dimension_numbers<[1], [0], [0], [1], [0, 0, 1, 1], [], []>} : vector<2x32xf32>, vector<32x128xf32>, vector<2x128xf32> -> vector<2x128xf32>
    %53 = vector.extract_strided_slice %5 {offsets = [2, 0], sizes = [2, 64], strides = [1, 1]} : vector<16x128xf32> to vector<2x64xf32>
    %54 = vector.extract_strided_slice %52 {offsets = [0, 0], sizes = [2, 64], strides = [1, 1]} : vector<2x128xf32> to vector<2x64xf32>
    %55 = arith.addf %53, %54 : vector<2x64xf32>
    %56 = vector.extract_strided_slice %5 {offsets = [12, 64], sizes = [2, 64], strides = [1, 1]} : vector<16x128xf32> to vector<2x64xf32>
    %57 = vector.extract_strided_slice %52 {offsets = [0, 64], sizes = [2, 64], strides = [1, 1]} : vector<2x128xf32> to vector<2x64xf32>
    %58 = arith.addf %56, %57 : vector<2x64xf32>
    %59 = vector.extract_strided_slice %55 {offsets = [0, 0], sizes = [2, 48], strides = [1, 1]} : vector<2x64xf32> to vector<2x48xf32>
    %60 = arith.negf %59 : vector<2x48xf32>
    %61 = math.exp %60 : vector<2x48xf32>
    %cst_15 = arith.constant 1.000000e+00 : f32
    %62 = vector.broadcast %cst_15 : f32 to vector<2x48xf32>
    %63 = arith.addf %62, %61 : vector<2x48xf32>
    %64 = arith.divf %62, %63 : vector<2x48xf32>
    %65 = vector.extract_strided_slice %55 {offsets = [0, 48], sizes = [2, 16], strides = [1, 1]} : vector<2x64xf32> to vector<2x16xf32>
    %66 = math.tanh %65 : vector<2x16xf32>
    %67 = vector.extract_strided_slice %64 {offsets = [0, 16], sizes = [2, 16], strides = [1, 1]} : vector<2x48xf32> to vector<2x16xf32>
    %68 = arith.mulf %67, %31 : vector<2x16xf32>
    %69 = vector.extract_strided_slice %64 {offsets = [0, 0], sizes = [2, 16], strides = [1, 1]} : vector<2x48xf32> to vector<2x16xf32>
    %70 = arith.mulf %69, %66 : vector<2x16xf32>
    %71 = arith.addf %68, %70 : vector<2x16xf32>
    %72 = vector.extract_strided_slice %64 {offsets = [0, 32], sizes = [2, 16], strides = [1, 1]} : vector<2x48xf32> to vector<2x16xf32>
    %73 = math.tanh %71 : vector<2x16xf32>
    %74 = arith.mulf %72, %73 : vector<2x16xf32>
    %75 = vector.extract_strided_slice %58 {offsets = [0, 0], sizes = [2, 48], strides = [1, 1]} : vector<2x64xf32> to vector<2x48xf32>
    %76 = arith.negf %75 : vector<2x48xf32>
    %77 = math.exp %76 : vector<2x48xf32>
    %cst_16 = arith.constant 1.000000e+00 : f32
    %78 = vector.broadcast %cst_16 : f32 to vector<2x48xf32>
    %79 = arith.addf %78, %77 : vector<2x48xf32>
    %80 = arith.divf %78, %79 : vector<2x48xf32>
    %81 = vector.extract_strided_slice %58 {offsets = [0, 48], sizes = [2, 16], strides = [1, 1]} : vector<2x64xf32> to vector<2x16xf32>
    %82 = math.tanh %81 : vector<2x16xf32>
    %83 = vector.extract_strided_slice %80 {offsets = [0, 16], sizes = [2, 16], strides = [1, 1]} : vector<2x48xf32> to vector<2x16xf32>
    %84 = arith.mulf %83, %47 : vector<2x16xf32>
    %85 = vector.extract_strided_slice %80 {offsets = [0, 0], sizes = [2, 16], strides = [1, 1]} : vector<2x48xf32> to vector<2x16xf32>
    %86 = arith.mulf %85, %82 : vector<2x16xf32>
    %87 = arith.addf %84, %86 : vector<2x16xf32>
    %88 = vector.extract_strided_slice %80 {offsets = [0, 32], sizes = [2, 16], strides = [1, 1]} : vector<2x48xf32> to vector<2x16xf32>
    %89 = math.tanh %87 : vector<2x16xf32>
    %90 = arith.mulf %88, %89 : vector<2x16xf32>
    %91 = tpu.concatenate %74, %90 in 1 : vector<2x16xf32>, vector<2x16xf32> -> vector<2x32xf32>
    %cst_17 = arith.constant dense<0.000000e+00> : vector<2x128xf32>
    %92 = tpu.matmul %91, %6, %cst_17 {dimension_numbers = #tpu.dot_dimension_numbers<[1], [0], [0], [1], [0, 0, 1, 1], [], []>} : vector<2x32xf32>, vector<32x128xf32>, vector<2x128xf32> -> vector<2x128xf32>
    %93 = vector.extract_strided_slice %5 {offsets = [4, 0], sizes = [2, 64], strides = [1, 1]} : vector<16x128xf32> to vector<2x64xf32>
    %94 = vector.extract_strided_slice %92 {offsets = [0, 0], sizes = [2, 64], strides = [1, 1]} : vector<2x128xf32> to vector<2x64xf32>
    %95 = arith.addf %93, %94 : vector<2x64xf32>
    %96 = vector.extract_strided_slice %5 {offsets = [10, 64], sizes = [2, 64], strides = [1, 1]} : vector<16x128xf32> to vector<2x64xf32>
    %97 = vector.extract_strided_slice %92 {offsets = [0, 64], sizes = [2, 64], strides = [1, 1]} : vector<2x128xf32> to vector<2x64xf32>
    %98 = arith.addf %96, %97 : vector<2x64xf32>
    %99 = vector.extract_strided_slice %95 {offsets = [0, 0], sizes = [2, 48], strides = [1, 1]} : vector<2x64xf32> to vector<2x48xf32>
    %100 = arith.negf %99 : vector<2x48xf32>
    %101 = math.exp %100 : vector<2x48xf32>
    %cst_18 = arith.constant 1.000000e+00 : f32
    %102 = vector.broadcast %cst_18 : f32 to vector<2x48xf32>
    %103 = arith.addf %102, %101 : vector<2x48xf32>
    %104 = arith.divf %102, %103 : vector<2x48xf32>
    %105 = vector.extract_strided_slice %95 {offsets = [0, 48], sizes = [2, 16], strides = [1, 1]} : vector<2x64xf32> to vector<2x16xf32>
    %106 = math.tanh %105 : vector<2x16xf32>
    %107 = vector.extract_strided_slice %104 {offsets = [0, 16], sizes = [2, 16], strides = [1, 1]} : vector<2x48xf32> to vector<2x16xf32>
    %108 = arith.mulf %107, %71 : vector<2x16xf32>
    %109 = vector.extract_strided_slice %104 {offsets = [0, 0], sizes = [2, 16], strides = [1, 1]} : vector<2x48xf32> to vector<2x16xf32>
    %110 = arith.mulf %109, %106 : vector<2x16xf32>
    %111 = arith.addf %108, %110 : vector<2x16xf32>
    %112 = vector.extract_strided_slice %104 {offsets = [0, 32], sizes = [2, 16], strides = [1, 1]} : vector<2x48xf32> to vector<2x16xf32>
    %113 = math.tanh %111 : vector<2x16xf32>
    %114 = arith.mulf %112, %113 : vector<2x16xf32>
    %115 = vector.extract_strided_slice %98 {offsets = [0, 0], sizes = [2, 48], strides = [1, 1]} : vector<2x64xf32> to vector<2x48xf32>
    %116 = arith.negf %115 : vector<2x48xf32>
    %117 = math.exp %116 : vector<2x48xf32>
    %cst_19 = arith.constant 1.000000e+00 : f32
    %118 = vector.broadcast %cst_19 : f32 to vector<2x48xf32>
    %119 = arith.addf %118, %117 : vector<2x48xf32>
    %120 = arith.divf %118, %119 : vector<2x48xf32>
    %121 = vector.extract_strided_slice %98 {offsets = [0, 48], sizes = [2, 16], strides = [1, 1]} : vector<2x64xf32> to vector<2x16xf32>
    %122 = math.tanh %121 : vector<2x16xf32>
    %123 = vector.extract_strided_slice %120 {offsets = [0, 16], sizes = [2, 16], strides = [1, 1]} : vector<2x48xf32> to vector<2x16xf32>
    %124 = arith.mulf %123, %87 : vector<2x16xf32>
    %125 = vector.extract_strided_slice %120 {offsets = [0, 0], sizes = [2, 16], strides = [1, 1]} : vector<2x48xf32> to vector<2x16xf32>
    %126 = arith.mulf %125, %122 : vector<2x16xf32>
    %127 = arith.addf %124, %126 : vector<2x16xf32>
    %128 = vector.extract_strided_slice %120 {offsets = [0, 32], sizes = [2, 16], strides = [1, 1]} : vector<2x48xf32> to vector<2x16xf32>
    %129 = math.tanh %127 : vector<2x16xf32>
    %130 = arith.mulf %128, %129 : vector<2x16xf32>
    %131 = tpu.concatenate %114, %130 in 1 : vector<2x16xf32>, vector<2x16xf32> -> vector<2x32xf32>
    %cst_20 = arith.constant dense<0.000000e+00> : vector<2x128xf32>
    %132 = tpu.matmul %131, %6, %cst_20 {dimension_numbers = #tpu.dot_dimension_numbers<[1], [0], [0], [1], [0, 0, 1, 1], [], []>} : vector<2x32xf32>, vector<32x128xf32>, vector<2x128xf32> -> vector<2x128xf32>
    %133 = vector.extract_strided_slice %5 {offsets = [6, 0], sizes = [2, 64], strides = [1, 1]} : vector<16x128xf32> to vector<2x64xf32>
    %134 = vector.extract_strided_slice %132 {offsets = [0, 0], sizes = [2, 64], strides = [1, 1]} : vector<2x128xf32> to vector<2x64xf32>
    %135 = arith.addf %133, %134 : vector<2x64xf32>
    %136 = vector.extract_strided_slice %5 {offsets = [8, 64], sizes = [2, 64], strides = [1, 1]} : vector<16x128xf32> to vector<2x64xf32>
    %137 = vector.extract_strided_slice %132 {offsets = [0, 64], sizes = [2, 64], strides = [1, 1]} : vector<2x128xf32> to vector<2x64xf32>
    %138 = arith.addf %136, %137 : vector<2x64xf32>
    %139 = vector.extract_strided_slice %135 {offsets = [0, 0], sizes = [2, 48], strides = [1, 1]} : vector<2x64xf32> to vector<2x48xf32>
    %140 = arith.negf %139 : vector<2x48xf32>
    %141 = math.exp %140 : vector<2x48xf32>
    %cst_21 = arith.constant 1.000000e+00 : f32
    %142 = vector.broadcast %cst_21 : f32 to vector<2x48xf32>
    %143 = arith.addf %142, %141 : vector<2x48xf32>
    %144 = arith.divf %142, %143 : vector<2x48xf32>
    %145 = vector.extract_strided_slice %135 {offsets = [0, 48], sizes = [2, 16], strides = [1, 1]} : vector<2x64xf32> to vector<2x16xf32>
    %146 = math.tanh %145 : vector<2x16xf32>
    %147 = vector.extract_strided_slice %144 {offsets = [0, 16], sizes = [2, 16], strides = [1, 1]} : vector<2x48xf32> to vector<2x16xf32>
    %148 = arith.mulf %147, %111 : vector<2x16xf32>
    %149 = vector.extract_strided_slice %144 {offsets = [0, 0], sizes = [2, 16], strides = [1, 1]} : vector<2x48xf32> to vector<2x16xf32>
    %150 = arith.mulf %149, %146 : vector<2x16xf32>
    %151 = arith.addf %148, %150 : vector<2x16xf32>
    %152 = vector.extract_strided_slice %144 {offsets = [0, 32], sizes = [2, 16], strides = [1, 1]} : vector<2x48xf32> to vector<2x16xf32>
    %153 = math.tanh %151 : vector<2x16xf32>
    %154 = arith.mulf %152, %153 : vector<2x16xf32>
    %155 = vector.extract_strided_slice %138 {offsets = [0, 0], sizes = [2, 48], strides = [1, 1]} : vector<2x64xf32> to vector<2x48xf32>
    %156 = arith.negf %155 : vector<2x48xf32>
    %157 = math.exp %156 : vector<2x48xf32>
    %cst_22 = arith.constant 1.000000e+00 : f32
    %158 = vector.broadcast %cst_22 : f32 to vector<2x48xf32>
    %159 = arith.addf %158, %157 : vector<2x48xf32>
    %160 = arith.divf %158, %159 : vector<2x48xf32>
    %161 = vector.extract_strided_slice %138 {offsets = [0, 48], sizes = [2, 16], strides = [1, 1]} : vector<2x64xf32> to vector<2x16xf32>
    %162 = math.tanh %161 : vector<2x16xf32>
    %163 = vector.extract_strided_slice %160 {offsets = [0, 16], sizes = [2, 16], strides = [1, 1]} : vector<2x48xf32> to vector<2x16xf32>
    %164 = arith.mulf %163, %127 : vector<2x16xf32>
    %165 = vector.extract_strided_slice %160 {offsets = [0, 0], sizes = [2, 16], strides = [1, 1]} : vector<2x48xf32> to vector<2x16xf32>
    %166 = arith.mulf %165, %162 : vector<2x16xf32>
    %167 = arith.addf %164, %166 : vector<2x16xf32>
    %168 = vector.extract_strided_slice %160 {offsets = [0, 32], sizes = [2, 16], strides = [1, 1]} : vector<2x48xf32> to vector<2x16xf32>
    %169 = math.tanh %167 : vector<2x16xf32>
    %170 = arith.mulf %168, %169 : vector<2x16xf32>
    %171 = tpu.concatenate %154, %170 in 1 : vector<2x16xf32>, vector<2x16xf32> -> vector<2x32xf32>
    %cst_23 = arith.constant dense<0.000000e+00> : vector<2x128xf32>
    %172 = tpu.matmul %171, %6, %cst_23 {dimension_numbers = #tpu.dot_dimension_numbers<[1], [0], [0], [1], [0, 0, 1, 1], [], []>} : vector<2x32xf32>, vector<32x128xf32>, vector<2x128xf32> -> vector<2x128xf32>
    %173 = vector.extract_strided_slice %5 {offsets = [8, 0], sizes = [2, 64], strides = [1, 1]} : vector<16x128xf32> to vector<2x64xf32>
    %174 = vector.extract_strided_slice %172 {offsets = [0, 0], sizes = [2, 64], strides = [1, 1]} : vector<2x128xf32> to vector<2x64xf32>
    %175 = arith.addf %173, %174 : vector<2x64xf32>
    %176 = vector.extract_strided_slice %5 {offsets = [6, 64], sizes = [2, 64], strides = [1, 1]} : vector<16x128xf32> to vector<2x64xf32>
    %177 = vector.extract_strided_slice %172 {offsets = [0, 64], sizes = [2, 64], strides = [1, 1]} : vector<2x128xf32> to vector<2x64xf32>
    %178 = arith.addf %176, %177 : vector<2x64xf32>
    %179 = vector.extract_strided_slice %175 {offsets = [0, 0], sizes = [2, 48], strides = [1, 1]} : vector<2x64xf32> to vector<2x48xf32>
    %180 = arith.negf %179 : vector<2x48xf32>
    %181 = math.exp %180 : vector<2x48xf32>
    %cst_24 = arith.constant 1.000000e+00 : f32
    %182 = vector.broadcast %cst_24 : f32 to vector<2x48xf32>
    %183 = arith.addf %182, %181 : vector<2x48xf32>
    %184 = arith.divf %182, %183 : vector<2x48xf32>
    %185 = vector.extract_strided_slice %175 {offsets = [0, 48], sizes = [2, 16], strides = [1, 1]} : vector<2x64xf32> to vector<2x16xf32>
    %186 = math.tanh %185 : vector<2x16xf32>
    %187 = vector.extract_strided_slice %184 {offsets = [0, 16], sizes = [2, 16], strides = [1, 1]} : vector<2x48xf32> to vector<2x16xf32>
    %188 = arith.mulf %187, %151 : vector<2x16xf32>
    %189 = vector.extract_strided_slice %184 {offsets = [0, 0], sizes = [2, 16], strides = [1, 1]} : vector<2x48xf32> to vector<2x16xf32>
    %190 = arith.mulf %189, %186 : vector<2x16xf32>
    %191 = arith.addf %188, %190 : vector<2x16xf32>
    %192 = vector.extract_strided_slice %184 {offsets = [0, 32], sizes = [2, 16], strides = [1, 1]} : vector<2x48xf32> to vector<2x16xf32>
    %193 = math.tanh %191 : vector<2x16xf32>
    %194 = arith.mulf %192, %193 : vector<2x16xf32>
    %195 = vector.extract_strided_slice %178 {offsets = [0, 0], sizes = [2, 48], strides = [1, 1]} : vector<2x64xf32> to vector<2x48xf32>
    %196 = arith.negf %195 : vector<2x48xf32>
    %197 = math.exp %196 : vector<2x48xf32>
    %cst_25 = arith.constant 1.000000e+00 : f32
    %198 = vector.broadcast %cst_25 : f32 to vector<2x48xf32>
    %199 = arith.addf %198, %197 : vector<2x48xf32>
    %200 = arith.divf %198, %199 : vector<2x48xf32>
    %201 = vector.extract_strided_slice %178 {offsets = [0, 48], sizes = [2, 16], strides = [1, 1]} : vector<2x64xf32> to vector<2x16xf32>
    %202 = math.tanh %201 : vector<2x16xf32>
    %203 = vector.extract_strided_slice %200 {offsets = [0, 16], sizes = [2, 16], strides = [1, 1]} : vector<2x48xf32> to vector<2x16xf32>
    %204 = arith.mulf %203, %167 : vector<2x16xf32>
    %205 = vector.extract_strided_slice %200 {offsets = [0, 0], sizes = [2, 16], strides = [1, 1]} : vector<2x48xf32> to vector<2x16xf32>
    %206 = arith.mulf %205, %202 : vector<2x16xf32>
    %207 = arith.addf %204, %206 : vector<2x16xf32>
    %208 = vector.extract_strided_slice %200 {offsets = [0, 32], sizes = [2, 16], strides = [1, 1]} : vector<2x48xf32> to vector<2x16xf32>
    %209 = math.tanh %207 : vector<2x16xf32>
    %210 = arith.mulf %208, %209 : vector<2x16xf32>
    %211 = tpu.concatenate %194, %210 in 1 : vector<2x16xf32>, vector<2x16xf32> -> vector<2x32xf32>
    %cst_26 = arith.constant dense<0.000000e+00> : vector<2x128xf32>
    %212 = tpu.matmul %211, %6, %cst_26 {dimension_numbers = #tpu.dot_dimension_numbers<[1], [0], [0], [1], [0, 0, 1, 1], [], []>} : vector<2x32xf32>, vector<32x128xf32>, vector<2x128xf32> -> vector<2x128xf32>
    %213 = vector.extract_strided_slice %5 {offsets = [10, 0], sizes = [2, 64], strides = [1, 1]} : vector<16x128xf32> to vector<2x64xf32>
    %214 = vector.extract_strided_slice %212 {offsets = [0, 0], sizes = [2, 64], strides = [1, 1]} : vector<2x128xf32> to vector<2x64xf32>
    %215 = arith.addf %213, %214 : vector<2x64xf32>
    %216 = vector.extract_strided_slice %5 {offsets = [4, 64], sizes = [2, 64], strides = [1, 1]} : vector<16x128xf32> to vector<2x64xf32>
    %217 = vector.extract_strided_slice %212 {offsets = [0, 64], sizes = [2, 64], strides = [1, 1]} : vector<2x128xf32> to vector<2x64xf32>
    %218 = arith.addf %216, %217 : vector<2x64xf32>
    %219 = vector.extract_strided_slice %215 {offsets = [0, 0], sizes = [2, 48], strides = [1, 1]} : vector<2x64xf32> to vector<2x48xf32>
    %220 = arith.negf %219 : vector<2x48xf32>
    %221 = math.exp %220 : vector<2x48xf32>
    %cst_27 = arith.constant 1.000000e+00 : f32
    %222 = vector.broadcast %cst_27 : f32 to vector<2x48xf32>
    %223 = arith.addf %222, %221 : vector<2x48xf32>
    %224 = arith.divf %222, %223 : vector<2x48xf32>
    %225 = vector.extract_strided_slice %215 {offsets = [0, 48], sizes = [2, 16], strides = [1, 1]} : vector<2x64xf32> to vector<2x16xf32>
    %226 = math.tanh %225 : vector<2x16xf32>
    %227 = vector.extract_strided_slice %224 {offsets = [0, 16], sizes = [2, 16], strides = [1, 1]} : vector<2x48xf32> to vector<2x16xf32>
    %228 = arith.mulf %227, %191 : vector<2x16xf32>
    %229 = vector.extract_strided_slice %224 {offsets = [0, 0], sizes = [2, 16], strides = [1, 1]} : vector<2x48xf32> to vector<2x16xf32>
    %230 = arith.mulf %229, %226 : vector<2x16xf32>
    %231 = arith.addf %228, %230 : vector<2x16xf32>
    %232 = vector.extract_strided_slice %224 {offsets = [0, 32], sizes = [2, 16], strides = [1, 1]} : vector<2x48xf32> to vector<2x16xf32>
    %233 = math.tanh %231 : vector<2x16xf32>
    %234 = arith.mulf %232, %233 : vector<2x16xf32>
    %235 = vector.extract_strided_slice %218 {offsets = [0, 0], sizes = [2, 48], strides = [1, 1]} : vector<2x64xf32> to vector<2x48xf32>
    %236 = arith.negf %235 : vector<2x48xf32>
    %237 = math.exp %236 : vector<2x48xf32>
    %cst_28 = arith.constant 1.000000e+00 : f32
    %238 = vector.broadcast %cst_28 : f32 to vector<2x48xf32>
    %239 = arith.addf %238, %237 : vector<2x48xf32>
    %240 = arith.divf %238, %239 : vector<2x48xf32>
    %241 = vector.extract_strided_slice %218 {offsets = [0, 48], sizes = [2, 16], strides = [1, 1]} : vector<2x64xf32> to vector<2x16xf32>
    %242 = math.tanh %241 : vector<2x16xf32>
    %243 = vector.extract_strided_slice %240 {offsets = [0, 16], sizes = [2, 16], strides = [1, 1]} : vector<2x48xf32> to vector<2x16xf32>
    %244 = arith.mulf %243, %207 : vector<2x16xf32>
    %245 = vector.extract_strided_slice %240 {offsets = [0, 0], sizes = [2, 16], strides = [1, 1]} : vector<2x48xf32> to vector<2x16xf32>
    %246 = arith.mulf %245, %242 : vector<2x16xf32>
    %247 = arith.addf %244, %246 : vector<2x16xf32>
    %248 = vector.extract_strided_slice %240 {offsets = [0, 32], sizes = [2, 16], strides = [1, 1]} : vector<2x48xf32> to vector<2x16xf32>
    %249 = math.tanh %247 : vector<2x16xf32>
    %250 = arith.mulf %248, %249 : vector<2x16xf32>
    %251 = tpu.concatenate %234, %250 in 1 : vector<2x16xf32>, vector<2x16xf32> -> vector<2x32xf32>
    %cst_29 = arith.constant dense<0.000000e+00> : vector<2x128xf32>
    %252 = tpu.matmul %251, %6, %cst_29 {dimension_numbers = #tpu.dot_dimension_numbers<[1], [0], [0], [1], [0, 0, 1, 1], [], []>} : vector<2x32xf32>, vector<32x128xf32>, vector<2x128xf32> -> vector<2x128xf32>
    %253 = vector.extract_strided_slice %5 {offsets = [12, 0], sizes = [2, 64], strides = [1, 1]} : vector<16x128xf32> to vector<2x64xf32>
    %254 = vector.extract_strided_slice %252 {offsets = [0, 0], sizes = [2, 64], strides = [1, 1]} : vector<2x128xf32> to vector<2x64xf32>
    %255 = arith.addf %253, %254 : vector<2x64xf32>
    %256 = vector.extract_strided_slice %5 {offsets = [2, 64], sizes = [2, 64], strides = [1, 1]} : vector<16x128xf32> to vector<2x64xf32>
    %257 = vector.extract_strided_slice %252 {offsets = [0, 64], sizes = [2, 64], strides = [1, 1]} : vector<2x128xf32> to vector<2x64xf32>
    %258 = arith.addf %256, %257 : vector<2x64xf32>
    %259 = vector.extract_strided_slice %255 {offsets = [0, 0], sizes = [2, 48], strides = [1, 1]} : vector<2x64xf32> to vector<2x48xf32>
    %260 = arith.negf %259 : vector<2x48xf32>
    %261 = math.exp %260 : vector<2x48xf32>
    %cst_30 = arith.constant 1.000000e+00 : f32
    %262 = vector.broadcast %cst_30 : f32 to vector<2x48xf32>
    %263 = arith.addf %262, %261 : vector<2x48xf32>
    %264 = arith.divf %262, %263 : vector<2x48xf32>
    %265 = vector.extract_strided_slice %255 {offsets = [0, 48], sizes = [2, 16], strides = [1, 1]} : vector<2x64xf32> to vector<2x16xf32>
    %266 = math.tanh %265 : vector<2x16xf32>
    %267 = vector.extract_strided_slice %264 {offsets = [0, 16], sizes = [2, 16], strides = [1, 1]} : vector<2x48xf32> to vector<2x16xf32>
    %268 = arith.mulf %267, %231 : vector<2x16xf32>
    %269 = vector.extract_strided_slice %264 {offsets = [0, 0], sizes = [2, 16], strides = [1, 1]} : vector<2x48xf32> to vector<2x16xf32>
    %270 = arith.mulf %269, %266 : vector<2x16xf32>
    %271 = arith.addf %268, %270 : vector<2x16xf32>
    %272 = vector.extract_strided_slice %264 {offsets = [0, 32], sizes = [2, 16], strides = [1, 1]} : vector<2x48xf32> to vector<2x16xf32>
    %273 = math.tanh %271 : vector<2x16xf32>
    %274 = arith.mulf %272, %273 : vector<2x16xf32>
    %275 = vector.extract_strided_slice %258 {offsets = [0, 0], sizes = [2, 48], strides = [1, 1]} : vector<2x64xf32> to vector<2x48xf32>
    %276 = arith.negf %275 : vector<2x48xf32>
    %277 = math.exp %276 : vector<2x48xf32>
    %cst_31 = arith.constant 1.000000e+00 : f32
    %278 = vector.broadcast %cst_31 : f32 to vector<2x48xf32>
    %279 = arith.addf %278, %277 : vector<2x48xf32>
    %280 = arith.divf %278, %279 : vector<2x48xf32>
    %281 = vector.extract_strided_slice %258 {offsets = [0, 48], sizes = [2, 16], strides = [1, 1]} : vector<2x64xf32> to vector<2x16xf32>
    %282 = math.tanh %281 : vector<2x16xf32>
    %283 = vector.extract_strided_slice %280 {offsets = [0, 16], sizes = [2, 16], strides = [1, 1]} : vector<2x48xf32> to vector<2x16xf32>
    %284 = arith.mulf %283, %247 : vector<2x16xf32>
    %285 = vector.extract_strided_slice %280 {offsets = [0, 0], sizes = [2, 16], strides = [1, 1]} : vector<2x48xf32> to vector<2x16xf32>
    %286 = arith.mulf %285, %282 : vector<2x16xf32>
    %287 = arith.addf %284, %286 : vector<2x16xf32>
    %288 = vector.extract_strided_slice %280 {offsets = [0, 32], sizes = [2, 16], strides = [1, 1]} : vector<2x48xf32> to vector<2x16xf32>
    %289 = math.tanh %287 : vector<2x16xf32>
    %290 = arith.mulf %288, %289 : vector<2x16xf32>
    %291 = tpu.concatenate %274, %290 in 1 : vector<2x16xf32>, vector<2x16xf32> -> vector<2x32xf32>
    %cst_32 = arith.constant dense<0.000000e+00> : vector<2x128xf32>
    %292 = tpu.matmul %291, %6, %cst_32 {dimension_numbers = #tpu.dot_dimension_numbers<[1], [0], [0], [1], [0, 0, 1, 1], [], []>} : vector<2x32xf32>, vector<32x128xf32>, vector<2x128xf32> -> vector<2x128xf32>
    %293 = vector.extract_strided_slice %5 {offsets = [14, 0], sizes = [2, 64], strides = [1, 1]} : vector<16x128xf32> to vector<2x64xf32>
    %294 = vector.extract_strided_slice %292 {offsets = [0, 0], sizes = [2, 64], strides = [1, 1]} : vector<2x128xf32> to vector<2x64xf32>
    %295 = arith.addf %293, %294 : vector<2x64xf32>
    %296 = vector.extract_strided_slice %5 {offsets = [0, 64], sizes = [2, 64], strides = [1, 1]} : vector<16x128xf32> to vector<2x64xf32>
    %297 = vector.extract_strided_slice %292 {offsets = [0, 64], sizes = [2, 64], strides = [1, 1]} : vector<2x128xf32> to vector<2x64xf32>
    %298 = arith.addf %296, %297 : vector<2x64xf32>
    %299 = vector.extract_strided_slice %295 {offsets = [0, 0], sizes = [2, 48], strides = [1, 1]} : vector<2x64xf32> to vector<2x48xf32>
    %300 = arith.negf %299 : vector<2x48xf32>
    %301 = math.exp %300 : vector<2x48xf32>
    %cst_33 = arith.constant 1.000000e+00 : f32
    %302 = vector.broadcast %cst_33 : f32 to vector<2x48xf32>
    %303 = arith.addf %302, %301 : vector<2x48xf32>
    %304 = arith.divf %302, %303 : vector<2x48xf32>
    %305 = vector.extract_strided_slice %295 {offsets = [0, 48], sizes = [2, 16], strides = [1, 1]} : vector<2x64xf32> to vector<2x16xf32>
    %306 = math.tanh %305 : vector<2x16xf32>
    %307 = vector.extract_strided_slice %304 {offsets = [0, 16], sizes = [2, 16], strides = [1, 1]} : vector<2x48xf32> to vector<2x16xf32>
    %308 = arith.mulf %307, %271 : vector<2x16xf32>
    %309 = vector.extract_strided_slice %304 {offsets = [0, 0], sizes = [2, 16], strides = [1, 1]} : vector<2x48xf32> to vector<2x16xf32>
    %310 = arith.mulf %309, %306 : vector<2x16xf32>
    %311 = arith.addf %308, %310 : vector<2x16xf32>
    %312 = vector.extract_strided_slice %304 {offsets = [0, 32], sizes = [2, 16], strides = [1, 1]} : vector<2x48xf32> to vector<2x16xf32>
    %313 = math.tanh %311 : vector<2x16xf32>
    %314 = arith.mulf %312, %313 : vector<2x16xf32>
    %315 = vector.extract_strided_slice %298 {offsets = [0, 0], sizes = [2, 48], strides = [1, 1]} : vector<2x64xf32> to vector<2x48xf32>
    %316 = arith.negf %315 : vector<2x48xf32>
    %317 = math.exp %316 : vector<2x48xf32>
    %cst_34 = arith.constant 1.000000e+00 : f32
    %318 = vector.broadcast %cst_34 : f32 to vector<2x48xf32>
    %319 = arith.addf %318, %317 : vector<2x48xf32>
    %320 = arith.divf %318, %319 : vector<2x48xf32>
    %321 = vector.extract_strided_slice %298 {offsets = [0, 48], sizes = [2, 16], strides = [1, 1]} : vector<2x64xf32> to vector<2x16xf32>
    %322 = math.tanh %321 : vector<2x16xf32>
    %323 = vector.extract_strided_slice %320 {offsets = [0, 16], sizes = [2, 16], strides = [1, 1]} : vector<2x48xf32> to vector<2x16xf32>
    %324 = arith.mulf %323, %287 : vector<2x16xf32>
    %325 = vector.extract_strided_slice %320 {offsets = [0, 0], sizes = [2, 16], strides = [1, 1]} : vector<2x48xf32> to vector<2x16xf32>
    %326 = arith.mulf %325, %322 : vector<2x16xf32>
    %327 = arith.addf %324, %326 : vector<2x16xf32>
    %328 = vector.extract_strided_slice %320 {offsets = [0, 32], sizes = [2, 16], strides = [1, 1]} : vector<2x48xf32> to vector<2x16xf32>
    %329 = math.tanh %327 : vector<2x16xf32>
    %330 = arith.mulf %328, %329 : vector<2x16xf32>
    %331 = tpu.concatenate %34, %330 in 1 : vector<2x16xf32>, vector<2x16xf32> -> vector<2x32xf32>
    %332 = tpu.concatenate %74, %290 in 1 : vector<2x16xf32>, vector<2x16xf32> -> vector<2x32xf32>
    %333 = tpu.concatenate %114, %250 in 1 : vector<2x16xf32>, vector<2x16xf32> -> vector<2x32xf32>
    %334 = tpu.concatenate %154, %210 in 1 : vector<2x16xf32>, vector<2x16xf32> -> vector<2x32xf32>
    %335 = tpu.concatenate %194, %170 in 1 : vector<2x16xf32>, vector<2x16xf32> -> vector<2x32xf32>
    %336 = tpu.concatenate %234, %130 in 1 : vector<2x16xf32>, vector<2x16xf32> -> vector<2x32xf32>
    %337 = tpu.concatenate %274, %90 in 1 : vector<2x16xf32>, vector<2x16xf32> -> vector<2x32xf32>
    %338 = tpu.concatenate %314, %50 in 1 : vector<2x16xf32>, vector<2x16xf32> -> vector<2x32xf32>
    %339 = tpu.concatenate %331, %332, %333, %334, %335, %336, %337, %338 in 0 : vector<2x32xf32>, vector<2x32xf32>, vector<2x32xf32>, vector<2x32xf32>, vector<2x32xf32>, vector<2x32xf32>, vector<2x32xf32>, vector<2x32xf32> -> vector<16x32xf32>
    %c0_35 = arith.constant 0 : index
    %c0_36 = arith.constant 0 : index
    %340 = vector.load %arg5[%c0_35, %c0_36] : memref<16x32xf32, #tpu.memory_space<vmem>>, vector<16x32xf32>
    tpu.vector_store %arg5[%c0_35, %c0_36], %339 {strides = array<i32>} : memref<16x32xf32, #tpu.memory_space<vmem>>, vector<16x32xf32>,
    %341 = vector.shape_cast %314 : vector<2x16xf32> to vector<1x2x16xf32>
    %342 = vector.shape_cast %330 : vector<2x16xf32> to vector<1x2x16xf32>
    %343 = tpu.concatenate %341, %342 in 0 : vector<1x2x16xf32>, vector<1x2x16xf32> -> vector<2x2x16xf32>
    %c0_37 = arith.constant 0 : index
    %c0_38 = arith.constant 0 : index
    %c0_39 = arith.constant 0 : index
    %344 = vector.load %arg6[%c0_37, %c0_38, %c0_39] : memref<2x2x16xf32, #tpu.memory_space<vmem>>, vector<2x2x16xf32>
    tpu.vector_store %arg6[%c0_37, %c0_38, %c0_39], %343 {strides = array<i32>} : memref<2x2x16xf32, #tpu.memory_space<vmem>>, vector<2x2x16xf32>,
    %345 = vector.shape_cast %311 : vector<2x16xf32> to vector<1x2x16xf32>
    %346 = vector.shape_cast %327 : vector<2x16xf32> to vector<1x2x16xf32>
    %347 = tpu.concatenate %345, %346 in 0 : vector<1x2x16xf32>, vector<1x2x16xf32> -> vector<2x2x16xf32>
    %c0_40 = arith.constant 0 : index
    %c0_41 = arith.constant 0 : index
    %c0_42 = arith.constant 0 : index
    %348 = vector.load %arg7[%c0_40, %c0_41, %c0_42] : memref<2x2x16xf32, #tpu.memory_space<vmem>>, vector<2x2x16xf32>
    tpu.vector_store %arg7[%c0_40, %c0_41, %c0_42], %347 {strides = array<i32>} : memref<2x2x16xf32, #tpu.memory_space<vmem>>, vector<2x2x16xf32>,
    return
  }
  func.func @transform_0(%arg0: i32) -> (i32, i32) {
    %c0_i32 = arith.constant 0 : i32
    %c0_i32_0 = arith.constant 0 : i32
    %c0_i32_1 = arith.constant 0 : i32
    return %c0_i32, %c0_i32_0 : i32, i32
  }
  func.func @transform_1(%arg0: i32) -> (i32, i32) {
    %c0_i32 = arith.constant 0 : i32
    %c0_i32_0 = arith.constant 0 : i32
    %c0_i32_1 = arith.constant 0 : i32
    return %c0_i32, %c0_i32_0 : i32, i32
  }
  func.func @transform_2(%arg0: i32) -> (i32, i32) {
    %c0_i32 = arith.constant 0 : i32
    %c0_i32_0 = arith.constant 0 : i32
    %c0_i32_1 = arith.constant 0 : i32
    return %c0_i32, %c0_i32_0 : i32, i32
  }
  func.func @transform_3(%arg0: i32) -> (i32, i32) {
    %c0_i32 = arith.constant 0 : i32
    %c0_i32_0 = arith.constant 0 : i32
    %c0_i32_1 = arith.constant 0 : i32
    return %c0_i32, %c0_i32_0 : i32, i32
  }
  func.func @transform_4(%arg0: i32) -> (i32, i32) {
    %c0_i32 = arith.constant 0 : i32
    %c0_i32_0 = arith.constant 0 : i32
    %c0_i32_1 = arith.constant 0 : i32
    return %c0_i32, %c0_i32_0 : i32, i32
  }
  func.func @transform_5(%arg0: i32) -> (i32, i32, i32) {
    %c0_i32 = arith.constant 0 : i32
    %c0_i32_0 = arith.constant 0 : i32
    %c0_i32_1 = arith.constant 0 : i32
    %c0_i32_2 = arith.constant 0 : i32
    return %c0_i32, %c0_i32_0, %c0_i32_1 : i32, i32, i32
  }
  func.func @transform_6(%arg0: i32) -> (i32, i32, i32) {
    %c0_i32 = arith.constant 0 : i32
    %c0_i32_0 = arith.constant 0 : i32
    %c0_i32_1 = arith.constant 0 : i32
    %c0_i32_2 = arith.constant 0 : i32
    return %c0_i32, %c0_i32_0, %c0_i32_1 : i32, i32, i32
  }
}

module attributes {stable_mosaic.version = 11 : i64} {
  func.func @bilstm_kernel(%arg0: i32, %arg1: memref<16x32xf32, #tpu.memory_space<vmem>>, %arg2: memref<32x128xf32, #tpu.memory_space<vmem>>, %arg3: memref<32x128xf32, #tpu.memory_space<vmem>>, %arg4: memref<1x128xf32, #tpu.memory_space<vmem>>, %arg5: memref<16x32xf32, #tpu.memory_space<vmem>>, %arg6: memref<2x2x16xf32, #tpu.memory_space<vmem>>, %arg7: memref<2x2x16xf32, #tpu.memory_space<vmem>>) attributes {dimension_semantics = [#tpu.dimension_semantics<arbitrary>], iteration_bounds = array<i64: 1>, scalar_prefetch = 0 : i64, scratch_operands = 0 : i64, tpu.core_type = #tpu.core_type<tc>, window_params = [{pipeline_mode = #tpu.pipeline_mode<synchronous>, transform_indices = @transform_0, window_bounds = array<i64: 16, 32>}, {pipeline_mode = #tpu.pipeline_mode<synchronous>, transform_indices = @transform_1, window_bounds = array<i64: 32, 128>}, {pipeline_mode = #tpu.pipeline_mode<synchronous>, transform_indices = @transform_2, window_bounds = array<i64: 32, 128>}, {pipeline_mode = #tpu.pipeline_mode<synchronous>, transform_indices = @transform_3, window_bounds = array<i64: 1, 128>}, {pipeline_mode = #tpu.pipeline_mode<synchronous>, transform_indices = @transform_4, window_bounds = array<i64: 16, 32>}, {pipeline_mode = #tpu.pipeline_mode<synchronous>, transform_indices = @transform_5, window_bounds = array<i64: 2, 2, 16>}, {pipeline_mode = #tpu.pipeline_mode<synchronous>, transform_indices = @transform_6, window_bounds = array<i64: 2, 2, 16>}]} {
    %c0 = arith.constant 0 : index
    %c0_0 = arith.constant 0 : index
    %0 = vector.load %arg1[%c0, %c0_0] : memref<16x32xf32, #tpu.memory_space<vmem>>, vector<16x32xf32>
    %c0_1 = arith.constant 0 : index
    %c0_2 = arith.constant 0 : index
    %1 = vector.load %arg2[%c0_1, %c0_2] : memref<32x128xf32, #tpu.memory_space<vmem>>, vector<32x128xf32>
    %cst = arith.constant dense<0.000000e+00> : vector<16x128xf32>
    %2 = tpu.matmul %0, %1, %cst {dimension_numbers = #tpu.dot_dimension_numbers<[1], [0], [0], [1], [0, 0, 1, 1], [], []>} : vector<16x32xf32>, vector<32x128xf32>, vector<16x128xf32> -> vector<16x128xf32>
    %c0_3 = arith.constant 0 : index
    %c0_4 = arith.constant 0 : index
    %3 = vector.load %arg4[%c0_3, %c0_4] : memref<1x128xf32, #tpu.memory_space<vmem>>, vector<1x128xf32>
    %4 = vector.broadcast %3 : vector<1x128xf32> to vector<16x128xf32>
    %5 = arith.addf %2, %4 : vector<16x128xf32>
    %c0_5 = arith.constant 0 : index
    %c0_6 = arith.constant 0 : index
    %6 = vector.load %arg3[%c0_5, %c0_6] : memref<32x128xf32, #tpu.memory_space<vmem>>, vector<32x128xf32>
    %cst_7 = arith.constant 0.000000e+00 : f32
    %7 = vector.broadcast %cst_7 : f32 to vector<2x16xf32>
    %cst_8 = arith.constant 0.000000e+00 : f32
    %8 = vector.broadcast %cst_8 : f32 to vector<2x16xf32>
    %cst_9 = arith.constant 0.000000e+00 : f32
    %9 = vector.broadcast %cst_9 : f32 to vector<2x16xf32>
    %cst_10 = arith.constant 0.000000e+00 : f32
    %10 = vector.broadcast %cst_10 : f32 to vector<2x16xf32>
    %11 = tpu.concatenate %7, %9 in 1 : vector<2x16xf32>, vector<2x16xf32> -> vector<2x32xf32>
    %cst_11 = arith.constant dense<0.000000e+00> : vector<2x128xf32>
    %12 = tpu.matmul %11, %6, %cst_11 {dimension_numbers = #tpu.dot_dimension_numbers<[1], [0], [0], [1], [0, 0, 1, 1], [], []>} : vector<2x32xf32>, vector<32x128xf32>, vector<2x128xf32> -> vector<2x128xf32>
    %13 = vector.extract_strided_slice %5 {offsets = [0, 0], sizes = [2, 64], strides = [1, 1]} : vector<16x128xf32> to vector<2x64xf32>
    %14 = vector.extract_strided_slice %12 {offsets = [0, 0], sizes = [2, 64], strides = [1, 1]} : vector<2x128xf32> to vector<2x64xf32>
    %15 = arith.addf %13, %14 : vector<2x64xf32>
    %16 = vector.extract_strided_slice %5 {offsets = [14, 64], sizes = [2, 64], strides = [1, 1]} : vector<16x128xf32> to vector<2x64xf32>
    %17 = vector.extract_strided_slice %12 {offsets = [0, 64], sizes = [2, 64], strides = [1, 1]} : vector<2x128xf32> to vector<2x64xf32>
    %18 = arith.addf %16, %17 : vector<2x64xf32>
    %19 = vector.extract_strided_slice %15 {offsets = [0, 0], sizes = [2, 48], strides = [1, 1]} : vector<2x64xf32> to vector<2x48xf32>
    %20 = arith.negf %19 : vector<2x48xf32>
    %21 = math.exp %20 : vector<2x48xf32>
    %cst_12 = arith.constant 1.000000e+00 : f32
    %22 = vector.broadcast %cst_12 : f32 to vector<2x48xf32>
    %23 = arith.addf %22, %21 : vector<2x48xf32>
    %24 = arith.divf %22, %23 : vector<2x48xf32>
    %25 = vector.extract_strided_slice %15 {offsets = [0, 48], sizes = [2, 16], strides = [1, 1]} : vector<2x64xf32> to vector<2x16xf32>
    %26 = math.tanh %25 : vector<2x16xf32>
    %27 = vector.extract_strided_slice %24 {offsets = [0, 16], sizes = [2, 16], strides = [1, 1]} : vector<2x48xf32> to vector<2x16xf32>
    %28 = arith.mulf %27, %8 : vector<2x16xf32>
    %29 = vector.extract_strided_slice %24 {offsets = [0, 0], sizes = [2, 16], strides = [1, 1]} : vector<2x48xf32> to vector<2x16xf32>
    %30 = arith.mulf %29, %26 : vector<2x16xf32>
    %31 = arith.addf %28, %30 : vector<2x16xf32>
    %32 = vector.extract_strided_slice %24 {offsets = [0, 32], sizes = [2, 16], strides = [1, 1]} : vector<2x48xf32> to vector<2x16xf32>
    %33 = math.tanh %31 : vector<2x16xf32>
    %34 = arith.mulf %32, %33 : vector<2x16xf32>
    %35 = vector.extract_strided_slice %18 {offsets = [0, 0], sizes = [2, 48], strides = [1, 1]} : vector<2x64xf32> to vector<2x48xf32>
    %36 = arith.negf %35 : vector<2x48xf32>
    %37 = math.exp %36 : vector<2x48xf32>
    %cst_13 = arith.constant 1.000000e+00 : f32
    %38 = vector.broadcast %cst_13 : f32 to vector<2x48xf32>
    %39 = arith.addf %38, %37 : vector<2x48xf32>
    %40 = arith.divf %38, %39 : vector<2x48xf32>
    %41 = vector.extract_strided_slice %18 {offsets = [0, 48], sizes = [2, 16], strides = [1, 1]} : vector<2x64xf32> to vector<2x16xf32>
    %42 = math.tanh %41 : vector<2x16xf32>
    %43 = vector.extract_strided_slice %40 {offsets = [0, 16], sizes = [2, 16], strides = [1, 1]} : vector<2x48xf32> to vector<2x16xf32>
    %44 = arith.mulf %43, %10 : vector<2x16xf32>
    %45 = vector.extract_strided_slice %40 {offsets = [0, 0], sizes = [2, 16], strides = [1, 1]} : vector<2x48xf32> to vector<2x16xf32>
    %46 = arith.mulf %45, %42 : vector<2x16xf32>
    %47 = arith.addf %44, %46 : vector<2x16xf32>
    %48 = vector.extract_strided_slice %40 {offsets = [0, 32], sizes = [2, 16], strides = [1, 1]} : vector<2x48xf32> to vector<2x16xf32>
    %49 = math.tanh %47 : vector<2x16xf32>
    %50 = arith.mulf %48, %49 : vector<2x16xf32>
    %51 = tpu.concatenate %34, %50 in 1 : vector<2x16xf32>, vector<2x16xf32> -> vector<2x32xf32>
    %cst_14 = arith.constant dense<0.000000e+00> : vector<2x128xf32>
    %52 = tpu.matmul %51, %6, %cst_14 {dimension_numbers = #tpu.dot_dimension_numbers<[1], [0], [0], [1], [0, 0, 1, 1], [], []>} : vector<2x32xf32>, vector<32x128xf32>, vector<2x128xf32> -> vector<2x128xf32>
    %53 = vector.extract_strided_slice %5 {offsets = [2, 0], sizes = [2, 64], strides = [1, 1]} : vector<16x128xf32> to vector<2x64xf32>
    %54 = vector.extract_strided_slice %52 {offsets = [0, 0], sizes = [2, 64], strides = [1, 1]} : vector<2x128xf32> to vector<2x64xf32>
    %55 = arith.addf %53, %54 : vector<2x64xf32>
    %56 = vector.extract_strided_slice %5 {offsets = [12, 64], sizes = [2, 64], strides = [1, 1]} : vector<16x128xf32> to vector<2x64xf32>
    %57 = vector.extract_strided_slice %52 {offsets = [0, 64], sizes = [2, 64], strides = [1, 1]} : vector<2x128xf32> to vector<2x64xf32>
    %58 = arith.addf %56, %57 : vector<2x64xf32>
    %59 = vector.extract_strided_slice %55 {offsets = [0, 0], sizes = [2, 48], strides = [1, 1]} : vector<2x64xf32> to vector<2x48xf32>
    %60 = arith.negf %59 : vector<2x48xf32>
    %61 = math.exp %60 : vector<2x48xf32>
    %cst_15 = arith.constant 1.000000e+00 : f32
    %62 = vector.broadcast %cst_15 : f32 to vector<2x48xf32>
    %63 = arith.addf %62, %61 : vector<2x48xf32>
    %64 = arith.divf %62, %63 : vector<2x48xf32>
    %65 = vector.extract_strided_slice %55 {offsets = [0, 48], sizes = [2, 16], strides = [1, 1]} : vector<2x64xf32> to vector<2x16xf32>
    %66 = math.tanh %65 : vector<2x16xf32>
    %67 = vector.extract_strided_slice %64 {offsets = [0, 16], sizes = [2, 16], strides = [1, 1]} : vector<2x48xf32> to vector<2x16xf32>
    %68 = arith.mulf %67, %31 : vector<2x16xf32>
    %69 = vector.extract_strided_slice %64 {offsets = [0, 0], sizes = [2, 16], strides = [1, 1]} : vector<2x48xf32> to vector<2x16xf32>
    %70 = arith.mulf %69, %66 : vector<2x16xf32>
    %71 = arith.addf %68, %70 : vector<2x16xf32>
    %72 = vector.extract_strided_slice %64 {offsets = [0, 32], sizes = [2, 16], strides = [1, 1]} : vector<2x48xf32> to vector<2x16xf32>
    %73 = math.tanh %71 : vector<2x16xf32>
    %74 = arith.mulf %72, %73 : vector<2x16xf32>
    %75 = vector.extract_strided_slice %58 {offsets = [0, 0], sizes = [2, 48], strides = [1, 1]} : vector<2x64xf32> to vector<2x48xf32>
    %76 = arith.negf %75 : vector<2x48xf32>
    %77 = math.exp %76 : vector<2x48xf32>
    %cst_16 = arith.constant 1.000000e+00 : f32
    %78 = vector.broadcast %cst_16 : f32 to vector<2x48xf32>
    %79 = arith.addf %78, %77 : vector<2x48xf32>
    %80 = arith.divf %78, %79 : vector<2x48xf32>
    %81 = vector.extract_strided_slice %58 {offsets = [0, 48], sizes = [2, 16], strides = [1, 1]} : vector<2x64xf32> to vector<2x16xf32>
    %82 = math.tanh %81 : vector<2x16xf32>
    %83 = vector.extract_strided_slice %80 {offsets = [0, 16], sizes = [2, 16], strides = [1, 1]} : vector<2x48xf32> to vector<2x16xf32>
    %84 = arith.mulf %83, %47 : vector<2x16xf32>
    %85 = vector.extract_strided_slice %80 {offsets = [0, 0], sizes = [2, 16], strides = [1, 1]} : vector<2x48xf32> to vector<2x16xf32>
    %86 = arith.mulf %85, %82 : vector<2x16xf32>
    %87 = arith.addf %84, %86 : vector<2x16xf32>
    %88 = vector.extract_strided_slice %80 {offsets = [0, 32], sizes = [2, 16], strides = [1, 1]} : vector<2x48xf32> to vector<2x16xf32>
    %89 = math.tanh %87 : vector<2x16xf32>
    %90 = arith.mulf %88, %89 : vector<2x16xf32>
    %91 = tpu.concatenate %74, %90 in 1 : vector<2x16xf32>, vector<2x16xf32> -> vector<2x32xf32>
    %cst_17 = arith.constant dense<0.000000e+00> : vector<2x128xf32>
    %92 = tpu.matmul %91, %6, %cst_17 {dimension_numbers = #tpu.dot_dimension_numbers<[1], [0], [0], [1], [0, 0, 1, 1], [], []>} : vector<2x32xf32>, vector<32x128xf32>, vector<2x128xf32> -> vector<2x128xf32>
    %93 = vector.extract_strided_slice %5 {offsets = [4, 0], sizes = [2, 64], strides = [1, 1]} : vector<16x128xf32> to vector<2x64xf32>
    %94 = vector.extract_strided_slice %92 {offsets = [0, 0], sizes = [2, 64], strides = [1, 1]} : vector<2x128xf32> to vector<2x64xf32>
    %95 = arith.addf %93, %94 : vector<2x64xf32>
    %96 = vector.extract_strided_slice %5 {offsets = [10, 64], sizes = [2, 64], strides = [1, 1]} : vector<16x128xf32> to vector<2x64xf32>
    %97 = vector.extract_strided_slice %92 {offsets = [0, 64], sizes = [2, 64], strides = [1, 1]} : vector<2x128xf32> to vector<2x64xf32>
    %98 = arith.addf %96, %97 : vector<2x64xf32>
    %99 = vector.extract_strided_slice %95 {offsets = [0, 0], sizes = [2, 48], strides = [1, 1]} : vector<2x64xf32> to vector<2x48xf32>
    %100 = arith.negf %99 : vector<2x48xf32>
    %101 = math.exp %100 : vector<2x48xf32>
    %cst_18 = arith.constant 1.000000e+00 : f32
    %102 = vector.broadcast %cst_18 : f32 to vector<2x48xf32>
    %103 = arith.addf %102, %101 : vector<2x48xf32>
    %104 = arith.divf %102, %103 : vector<2x48xf32>
    %105 = vector.extract_strided_slice %95 {offsets = [0, 48], sizes = [2, 16], strides = [1, 1]} : vector<2x64xf32> to vector<2x16xf32>
    %106 = math.tanh %105 : vector<2x16xf32>
    %107 = vector.extract_strided_slice %104 {offsets = [0, 16], sizes = [2, 16], strides = [1, 1]} : vector<2x48xf32> to vector<2x16xf32>
    %108 = arith.mulf %107, %71 : vector<2x16xf32>
    %109 = vector.extract_strided_slice %104 {offsets = [0, 0], sizes = [2, 16], strides = [1, 1]} : vector<2x48xf32> to vector<2x16xf32>
    %110 = arith.mulf %109, %106 : vector<2x16xf32>
    %111 = arith.addf %108, %110 : vector<2x16xf32>
    %112 = vector.extract_strided_slice %104 {offsets = [0, 32], sizes = [2, 16], strides = [1, 1]} : vector<2x48xf32> to vector<2x16xf32>
    %113 = math.tanh %111 : vector<2x16xf32>
    %114 = arith.mulf %112, %113 : vector<2x16xf32>
    %115 = vector.extract_strided_slice %98 {offsets = [0, 0], sizes = [2, 48], strides = [1, 1]} : vector<2x64xf32> to vector<2x48xf32>
    %116 = arith.negf %115 : vector<2x48xf32>
    %117 = math.exp %116 : vector<2x48xf32>
    %cst_19 = arith.constant 1.000000e+00 : f32
    %118 = vector.broadcast %cst_19 : f32 to vector<2x48xf32>
    %119 = arith.addf %118, %117 : vector<2x48xf32>
    %120 = arith.divf %118, %119 : vector<2x48xf32>
    %121 = vector.extract_strided_slice %98 {offsets = [0, 48], sizes = [2, 16], strides = [1, 1]} : vector<2x64xf32> to vector<2x16xf32>
    %122 = math.tanh %121 : vector<2x16xf32>
    %123 = vector.extract_strided_slice %120 {offsets = [0, 16], sizes = [2, 16], strides = [1, 1]} : vector<2x48xf32> to vector<2x16xf32>
    %124 = arith.mulf %123, %87 : vector<2x16xf32>
    %125 = vector.extract_strided_slice %120 {offsets = [0, 0], sizes = [2, 16], strides = [1, 1]} : vector<2x48xf32> to vector<2x16xf32>
    %126 = arith.mulf %125, %122 : vector<2x16xf32>
    %127 = arith.addf %124, %126 : vector<2x16xf32>
    %128 = vector.extract_strided_slice %120 {offsets = [0, 32], sizes = [2, 16], strides = [1, 1]} : vector<2x48xf32> to vector<2x16xf32>
    %129 = math.tanh %127 : vector<2x16xf32>
    %130 = arith.mulf %128, %129 : vector<2x16xf32>
    %131 = tpu.concatenate %114, %130 in 1 : vector<2x16xf32>, vector<2x16xf32> -> vector<2x32xf32>
    %cst_20 = arith.constant dense<0.000000e+00> : vector<2x128xf32>
    %132 = tpu.matmul %131, %6, %cst_20 {dimension_numbers = #tpu.dot_dimension_numbers<[1], [0], [0], [1], [0, 0, 1, 1], [], []>} : vector<2x32xf32>, vector<32x128xf32>, vector<2x128xf32> -> vector<2x128xf32>
    %133 = vector.extract_strided_slice %5 {offsets = [6, 0], sizes = [2, 64], strides = [1, 1]} : vector<16x128xf32> to vector<2x64xf32>
    %134 = vector.extract_strided_slice %132 {offsets = [0, 0], sizes = [2, 64], strides = [1, 1]} : vector<2x128xf32> to vector<2x64xf32>
    %135 = arith.addf %133, %134 : vector<2x64xf32>
    %136 = vector.extract_strided_slice %5 {offsets = [8, 64], sizes = [2, 64], strides = [1, 1]} : vector<16x128xf32> to vector<2x64xf32>
    %137 = vector.extract_strided_slice %132 {offsets = [0, 64], sizes = [2, 64], strides = [1, 1]} : vector<2x128xf32> to vector<2x64xf32>
    %138 = arith.addf %136, %137 : vector<2x64xf32>
    %139 = vector.extract_strided_slice %135 {offsets = [0, 0], sizes = [2, 48], strides = [1, 1]} : vector<2x64xf32> to vector<2x48xf32>
    %140 = arith.negf %139 : vector<2x48xf32>
    %141 = math.exp %140 : vector<2x48xf32>
    %cst_21 = arith.constant 1.000000e+00 : f32
    %142 = vector.broadcast %cst_21 : f32 to vector<2x48xf32>
    %143 = arith.addf %142, %141 : vector<2x48xf32>
    %144 = arith.divf %142, %143 : vector<2x48xf32>
    %145 = vector.extract_strided_slice %135 {offsets = [0, 48], sizes = [2, 16], strides = [1, 1]} : vector<2x64xf32> to vector<2x16xf32>
    %146 = math.tanh %145 : vector<2x16xf32>
    %147 = vector.extract_strided_slice %144 {offsets = [0, 16], sizes = [2, 16], strides = [1, 1]} : vector<2x48xf32> to vector<2x16xf32>
    %148 = arith.mulf %147, %111 : vector<2x16xf32>
    %149 = vector.extract_strided_slice %144 {offsets = [0, 0], sizes = [2, 16], strides = [1, 1]} : vector<2x48xf32> to vector<2x16xf32>
    %150 = arith.mulf %149, %146 : vector<2x16xf32>
    %151 = arith.addf %148, %150 : vector<2x16xf32>
    %152 = vector.extract_strided_slice %144 {offsets = [0, 32], sizes = [2, 16], strides = [1, 1]} : vector<2x48xf32> to vector<2x16xf32>
    %153 = math.tanh %151 : vector<2x16xf32>
    %154 = arith.mulf %152, %153 : vector<2x16xf32>
    %155 = vector.extract_strided_slice %138 {offsets = [0, 0], sizes = [2, 48], strides = [1, 1]} : vector<2x64xf32> to vector<2x48xf32>
    %156 = arith.negf %155 : vector<2x48xf32>
    %157 = math.exp %156 : vector<2x48xf32>
    %cst_22 = arith.constant 1.000000e+00 : f32
    %158 = vector.broadcast %cst_22 : f32 to vector<2x48xf32>
    %159 = arith.addf %158, %157 : vector<2x48xf32>
    %160 = arith.divf %158, %159 : vector<2x48xf32>
    %161 = vector.extract_strided_slice %138 {offsets = [0, 48], sizes = [2, 16], strides = [1, 1]} : vector<2x64xf32> to vector<2x16xf32>
    %162 = math.tanh %161 : vector<2x16xf32>
    %163 = vector.extract_strided_slice %160 {offsets = [0, 16], sizes = [2, 16], strides = [1, 1]} : vector<2x48xf32> to vector<2x16xf32>
    %164 = arith.mulf %163, %127 : vector<2x16xf32>
    %165 = vector.extract_strided_slice %160 {offsets = [0, 0], sizes = [2, 16], strides = [1, 1]} : vector<2x48xf32> to vector<2x16xf32>
    %166 = arith.mulf %165, %162 : vector<2x16xf32>
    %167 = arith.addf %164, %166 : vector<2x16xf32>
    %168 = vector.extract_strided_slice %160 {offsets = [0, 32], sizes = [2, 16], strides = [1, 1]} : vector<2x48xf32> to vector<2x16xf32>
    %169 = math.tanh %167 : vector<2x16xf32>
    %170 = arith.mulf %168, %169 : vector<2x16xf32>
    %171 = tpu.concatenate %154, %170 in 1 : vector<2x16xf32>, vector<2x16xf32> -> vector<2x32xf32>
    %cst_23 = arith.constant dense<0.000000e+00> : vector<2x128xf32>
    %172 = tpu.matmul %171, %6, %cst_23 {dimension_numbers = #tpu.dot_dimension_numbers<[1], [0], [0], [1], [0, 0, 1, 1], [], []>} : vector<2x32xf32>, vector<32x128xf32>, vector<2x128xf32> -> vector<2x128xf32>
    %173 = vector.extract_strided_slice %5 {offsets = [8, 0], sizes = [2, 64], strides = [1, 1]} : vector<16x128xf32> to vector<2x64xf32>
    %174 = vector.extract_strided_slice %172 {offsets = [0, 0], sizes = [2, 64], strides = [1, 1]} : vector<2x128xf32> to vector<2x64xf32>
    %175 = arith.addf %173, %174 : vector<2x64xf32>
    %176 = vector.extract_strided_slice %5 {offsets = [6, 64], sizes = [2, 64], strides = [1, 1]} : vector<16x128xf32> to vector<2x64xf32>
    %177 = vector.extract_strided_slice %172 {offsets = [0, 64], sizes = [2, 64], strides = [1, 1]} : vector<2x128xf32> to vector<2x64xf32>
    %178 = arith.addf %176, %177 : vector<2x64xf32>
    %179 = vector.extract_strided_slice %175 {offsets = [0, 0], sizes = [2, 48], strides = [1, 1]} : vector<2x64xf32> to vector<2x48xf32>
    %180 = arith.negf %179 : vector<2x48xf32>
    %181 = math.exp %180 : vector<2x48xf32>
    %cst_24 = arith.constant 1.000000e+00 : f32
    %182 = vector.broadcast %cst_24 : f32 to vector<2x48xf32>
    %183 = arith.addf %182, %181 : vector<2x48xf32>
    %184 = arith.divf %182, %183 : vector<2x48xf32>
    %185 = vector.extract_strided_slice %175 {offsets = [0, 48], sizes = [2, 16], strides = [1, 1]} : vector<2x64xf32> to vector<2x16xf32>
    %186 = math.tanh %185 : vector<2x16xf32>
    %187 = vector.extract_strided_slice %184 {offsets = [0, 16], sizes = [2, 16], strides = [1, 1]} : vector<2x48xf32> to vector<2x16xf32>
    %188 = arith.mulf %187, %151 : vector<2x16xf32>
    %189 = vector.extract_strided_slice %184 {offsets = [0, 0], sizes = [2, 16], strides = [1, 1]} : vector<2x48xf32> to vector<2x16xf32>
    %190 = arith.mulf %189, %186 : vector<2x16xf32>
    %191 = arith.addf %188, %190 : vector<2x16xf32>
    %192 = vector.extract_strided_slice %184 {offsets = [0, 32], sizes = [2, 16], strides = [1, 1]} : vector<2x48xf32> to vector<2x16xf32>
    %193 = math.tanh %191 : vector<2x16xf32>
    %194 = arith.mulf %192, %193 : vector<2x16xf32>
    %195 = vector.extract_strided_slice %178 {offsets = [0, 0], sizes = [2, 48], strides = [1, 1]} : vector<2x64xf32> to vector<2x48xf32>
    %196 = arith.negf %195 : vector<2x48xf32>
    %197 = math.exp %196 : vector<2x48xf32>
    %cst_25 = arith.constant 1.000000e+00 : f32
    %198 = vector.broadcast %cst_25 : f32 to vector<2x48xf32>
    %199 = arith.addf %198, %197 : vector<2x48xf32>
    %200 = arith.divf %198, %199 : vector<2x48xf32>
    %201 = vector.extract_strided_slice %178 {offsets = [0, 48], sizes = [2, 16], strides = [1, 1]} : vector<2x64xf32> to vector<2x16xf32>
    %202 = math.tanh %201 : vector<2x16xf32>
    %203 = vector.extract_strided_slice %200 {offsets = [0, 16], sizes = [2, 16], strides = [1, 1]} : vector<2x48xf32> to vector<2x16xf32>
    %204 = arith.mulf %203, %167 : vector<2x16xf32>
    %205 = vector.extract_strided_slice %200 {offsets = [0, 0], sizes = [2, 16], strides = [1, 1]} : vector<2x48xf32> to vector<2x16xf32>
    %206 = arith.mulf %205, %202 : vector<2x16xf32>
    %207 = arith.addf %204, %206 : vector<2x16xf32>
    %208 = vector.extract_strided_slice %200 {offsets = [0, 32], sizes = [2, 16], strides = [1, 1]} : vector<2x48xf32> to vector<2x16xf32>
    %209 = math.tanh %207 : vector<2x16xf32>
    %210 = arith.mulf %208, %209 : vector<2x16xf32>
    %211 = tpu.concatenate %194, %210 in 1 : vector<2x16xf32>, vector<2x16xf32> -> vector<2x32xf32>
    %cst_26 = arith.constant dense<0.000000e+00> : vector<2x128xf32>
    %212 = tpu.matmul %211, %6, %cst_26 {dimension_numbers = #tpu.dot_dimension_numbers<[1], [0], [0], [1], [0, 0, 1, 1], [], []>} : vector<2x32xf32>, vector<32x128xf32>, vector<2x128xf32> -> vector<2x128xf32>
    %213 = vector.extract_strided_slice %5 {offsets = [10, 0], sizes = [2, 64], strides = [1, 1]} : vector<16x128xf32> to vector<2x64xf32>
    %214 = vector.extract_strided_slice %212 {offsets = [0, 0], sizes = [2, 64], strides = [1, 1]} : vector<2x128xf32> to vector<2x64xf32>
    %215 = arith.addf %213, %214 : vector<2x64xf32>
    %216 = vector.extract_strided_slice %5 {offsets = [4, 64], sizes = [2, 64], strides = [1, 1]} : vector<16x128xf32> to vector<2x64xf32>
    %217 = vector.extract_strided_slice %212 {offsets = [0, 64], sizes = [2, 64], strides = [1, 1]} : vector<2x128xf32> to vector<2x64xf32>
    %218 = arith.addf %216, %217 : vector<2x64xf32>
    %219 = vector.extract_strided_slice %215 {offsets = [0, 0], sizes = [2, 48], strides = [1, 1]} : vector<2x64xf32> to vector<2x48xf32>
    %220 = arith.negf %219 : vector<2x48xf32>
    %221 = math.exp %220 : vector<2x48xf32>
    %cst_27 = arith.constant 1.000000e+00 : f32
    %222 = vector.broadcast %cst_27 : f32 to vector<2x48xf32>
    %223 = arith.addf %222, %221 : vector<2x48xf32>
    %224 = arith.divf %222, %223 : vector<2x48xf32>
    %225 = vector.extract_strided_slice %215 {offsets = [0, 48], sizes = [2, 16], strides = [1, 1]} : vector<2x64xf32> to vector<2x16xf32>
    %226 = math.tanh %225 : vector<2x16xf32>
    %227 = vector.extract_strided_slice %224 {offsets = [0, 16], sizes = [2, 16], strides = [1, 1]} : vector<2x48xf32> to vector<2x16xf32>
    %228 = arith.mulf %227, %191 : vector<2x16xf32>
    %229 = vector.extract_strided_slice %224 {offsets = [0, 0], sizes = [2, 16], strides = [1, 1]} : vector<2x48xf32> to vector<2x16xf32>
    %230 = arith.mulf %229, %226 : vector<2x16xf32>
    %231 = arith.addf %228, %230 : vector<2x16xf32>
    %232 = vector.extract_strided_slice %224 {offsets = [0, 32], sizes = [2, 16], strides = [1, 1]} : vector<2x48xf32> to vector<2x16xf32>
    %233 = math.tanh %231 : vector<2x16xf32>
    %234 = arith.mulf %232, %233 : vector<2x16xf32>
    %235 = vector.extract_strided_slice %218 {offsets = [0, 0], sizes = [2, 48], strides = [1, 1]} : vector<2x64xf32> to vector<2x48xf32>
    %236 = arith.negf %235 : vector<2x48xf32>
    %237 = math.exp %236 : vector<2x48xf32>
    %cst_28 = arith.constant 1.000000e+00 : f32
    %238 = vector.broadcast %cst_28 : f32 to vector<2x48xf32>
    %239 = arith.addf %238, %237 : vector<2x48xf32>
    %240 = arith.divf %238, %239 : vector<2x48xf32>
    %241 = vector.extract_strided_slice %218 {offsets = [0, 48], sizes = [2, 16], strides = [1, 1]} : vector<2x64xf32> to vector<2x16xf32>
    %242 = math.tanh %241 : vector<2x16xf32>
    %243 = vector.extract_strided_slice %240 {offsets = [0, 16], sizes = [2, 16], strides = [1, 1]} : vector<2x48xf32> to vector<2x16xf32>
    %244 = arith.mulf %243, %207 : vector<2x16xf32>
    %245 = vector.extract_strided_slice %240 {offsets = [0, 0], sizes = [2, 16], strides = [1, 1]} : vector<2x48xf32> to vector<2x16xf32>
    %246 = arith.mulf %245, %242 : vector<2x16xf32>
    %247 = arith.addf %244, %246 : vector<2x16xf32>
    %248 = vector.extract_strided_slice %240 {offsets = [0, 32], sizes = [2, 16], strides = [1, 1]} : vector<2x48xf32> to vector<2x16xf32>
    %249 = math.tanh %247 : vector<2x16xf32>
    %250 = arith.mulf %248, %249 : vector<2x16xf32>
    %251 = tpu.concatenate %234, %250 in 1 : vector<2x16xf32>, vector<2x16xf32> -> vector<2x32xf32>
    %cst_29 = arith.constant dense<0.000000e+00> : vector<2x128xf32>
    %252 = tpu.matmul %251, %6, %cst_29 {dimension_numbers = #tpu.dot_dimension_numbers<[1], [0], [0], [1], [0, 0, 1, 1], [], []>} : vector<2x32xf32>, vector<32x128xf32>, vector<2x128xf32> -> vector<2x128xf32>
    %253 = vector.extract_strided_slice %5 {offsets = [12, 0], sizes = [2, 64], strides = [1, 1]} : vector<16x128xf32> to vector<2x64xf32>
    %254 = vector.extract_strided_slice %252 {offsets = [0, 0], sizes = [2, 64], strides = [1, 1]} : vector<2x128xf32> to vector<2x64xf32>
    %255 = arith.addf %253, %254 : vector<2x64xf32>
    %256 = vector.extract_strided_slice %5 {offsets = [2, 64], sizes = [2, 64], strides = [1, 1]} : vector<16x128xf32> to vector<2x64xf32>
    %257 = vector.extract_strided_slice %252 {offsets = [0, 64], sizes = [2, 64], strides = [1, 1]} : vector<2x128xf32> to vector<2x64xf32>
    %258 = arith.addf %256, %257 : vector<2x64xf32>
    %259 = vector.extract_strided_slice %255 {offsets = [0, 0], sizes = [2, 48], strides = [1, 1]} : vector<2x64xf32> to vector<2x48xf32>
    %260 = arith.negf %259 : vector<2x48xf32>
    %261 = math.exp %260 : vector<2x48xf32>
    %cst_30 = arith.constant 1.000000e+00 : f32
    %262 = vector.broadcast %cst_30 : f32 to vector<2x48xf32>
    %263 = arith.addf %262, %261 : vector<2x48xf32>
    %264 = arith.divf %262, %263 : vector<2x48xf32>
    %265 = vector.extract_strided_slice %255 {offsets = [0, 48], sizes = [2, 16], strides = [1, 1]} : vector<2x64xf32> to vector<2x16xf32>
    %266 = math.tanh %265 : vector<2x16xf32>
    %267 = vector.extract_strided_slice %264 {offsets = [0, 16], sizes = [2, 16], strides = [1, 1]} : vector<2x48xf32> to vector<2x16xf32>
    %268 = arith.mulf %267, %231 : vector<2x16xf32>
    %269 = vector.extract_strided_slice %264 {offsets = [0, 0], sizes = [2, 16], strides = [1, 1]} : vector<2x48xf32> to vector<2x16xf32>
    %270 = arith.mulf %269, %266 : vector<2x16xf32>
    %271 = arith.addf %268, %270 : vector<2x16xf32>
    %272 = vector.extract_strided_slice %264 {offsets = [0, 32], sizes = [2, 16], strides = [1, 1]} : vector<2x48xf32> to vector<2x16xf32>
    %273 = math.tanh %271 : vector<2x16xf32>
    %274 = arith.mulf %272, %273 : vector<2x16xf32>
    %275 = vector.extract_strided_slice %258 {offsets = [0, 0], sizes = [2, 48], strides = [1, 1]} : vector<2x64xf32> to vector<2x48xf32>
    %276 = arith.negf %275 : vector<2x48xf32>
    %277 = math.exp %276 : vector<2x48xf32>
    %cst_31 = arith.constant 1.000000e+00 : f32
    %278 = vector.broadcast %cst_31 : f32 to vector<2x48xf32>
    %279 = arith.addf %278, %277 : vector<2x48xf32>
    %280 = arith.divf %278, %279 : vector<2x48xf32>
    %281 = vector.extract_strided_slice %258 {offsets = [0, 48], sizes = [2, 16], strides = [1, 1]} : vector<2x64xf32> to vector<2x16xf32>
    %282 = math.tanh %281 : vector<2x16xf32>
    %283 = vector.extract_strided_slice %280 {offsets = [0, 16], sizes = [2, 16], strides = [1, 1]} : vector<2x48xf32> to vector<2x16xf32>
    %284 = arith.mulf %283, %247 : vector<2x16xf32>
    %285 = vector.extract_strided_slice %280 {offsets = [0, 0], sizes = [2, 16], strides = [1, 1]} : vector<2x48xf32> to vector<2x16xf32>
    %286 = arith.mulf %285, %282 : vector<2x16xf32>
    %287 = arith.addf %284, %286 : vector<2x16xf32>
    %288 = vector.extract_strided_slice %280 {offsets = [0, 32], sizes = [2, 16], strides = [1, 1]} : vector<2x48xf32> to vector<2x16xf32>
    %289 = math.tanh %287 : vector<2x16xf32>
    %290 = arith.mulf %288, %289 : vector<2x16xf32>
    %291 = tpu.concatenate %274, %290 in 1 : vector<2x16xf32>, vector<2x16xf32> -> vector<2x32xf32>
    %cst_32 = arith.constant dense<0.000000e+00> : vector<2x128xf32>
    %292 = tpu.matmul %291, %6, %cst_32 {dimension_numbers = #tpu.dot_dimension_numbers<[1], [0], [0], [1], [0, 0, 1, 1], [], []>} : vector<2x32xf32>, vector<32x128xf32>, vector<2x128xf32> -> vector<2x128xf32>
    %293 = vector.extract_strided_slice %5 {offsets = [14, 0], sizes = [2, 64], strides = [1, 1]} : vector<16x128xf32> to vector<2x64xf32>
    %294 = vector.extract_strided_slice %292 {offsets = [0, 0], sizes = [2, 64], strides = [1, 1]} : vector<2x128xf32> to vector<2x64xf32>
    %295 = arith.addf %293, %294 : vector<2x64xf32>
    %296 = vector.extract_strided_slice %5 {offsets = [0, 64], sizes = [2, 64], strides = [1, 1]} : vector<16x128xf32> to vector<2x64xf32>
    %297 = vector.extract_strided_slice %292 {offsets = [0, 64], sizes = [2, 64], strides = [1, 1]} : vector<2x128xf32> to vector<2x64xf32>
    %298 = arith.addf %296, %297 : vector<2x64xf32>
    %299 = vector.extract_strided_slice %295 {offsets = [0, 0], sizes = [2, 48], strides = [1, 1]} : vector<2x64xf32> to vector<2x48xf32>
    %300 = arith.negf %299 : vector<2x48xf32>
    %301 = math.exp %300 : vector<2x48xf32>
    %cst_33 = arith.constant 1.000000e+00 : f32
    %302 = vector.broadcast %cst_33 : f32 to vector<2x48xf32>
    %303 = arith.addf %302, %301 : vector<2x48xf32>
    %304 = arith.divf %302, %303 : vector<2x48xf32>
    %305 = vector.extract_strided_slice %295 {offsets = [0, 48], sizes = [2, 16], strides = [1, 1]} : vector<2x64xf32> to vector<2x16xf32>
    %306 = math.tanh %305 : vector<2x16xf32>
    %307 = vector.extract_strided_slice %304 {offsets = [0, 16], sizes = [2, 16], strides = [1, 1]} : vector<2x48xf32> to vector<2x16xf32>
    %308 = arith.mulf %307, %271 : vector<2x16xf32>
    %309 = vector.extract_strided_slice %304 {offsets = [0, 0], sizes = [2, 16], strides = [1, 1]} : vector<2x48xf32> to vector<2x16xf32>
    %310 = arith.mulf %309, %306 : vector<2x16xf32>
    %311 = arith.addf %308, %310 : vector<2x16xf32>
    %312 = vector.extract_strided_slice %304 {offsets = [0, 32], sizes = [2, 16], strides = [1, 1]} : vector<2x48xf32> to vector<2x16xf32>
    %313 = math.tanh %311 : vector<2x16xf32>
    %314 = arith.mulf %312, %313 : vector<2x16xf32>
    %315 = vector.extract_strided_slice %298 {offsets = [0, 0], sizes = [2, 48], strides = [1, 1]} : vector<2x64xf32> to vector<2x48xf32>
    %316 = arith.negf %315 : vector<2x48xf32>
    %317 = math.exp %316 : vector<2x48xf32>
    %cst_34 = arith.constant 1.000000e+00 : f32
    %318 = vector.broadcast %cst_34 : f32 to vector<2x48xf32>
    %319 = arith.addf %318, %317 : vector<2x48xf32>
    %320 = arith.divf %318, %319 : vector<2x48xf32>
    %321 = vector.extract_strided_slice %298 {offsets = [0, 48], sizes = [2, 16], strides = [1, 1]} : vector<2x64xf32> to vector<2x16xf32>
    %322 = math.tanh %321 : vector<2x16xf32>
    %323 = vector.extract_strided_slice %320 {offsets = [0, 16], sizes = [2, 16], strides = [1, 1]} : vector<2x48xf32> to vector<2x16xf32>
    %324 = arith.mulf %323, %287 : vector<2x16xf32>
    %325 = vector.extract_strided_slice %320 {offsets = [0, 0], sizes = [2, 16], strides = [1, 1]} : vector<2x48xf32> to vector<2x16xf32>
    %326 = arith.mulf %325, %322 : vector<2x16xf32>
    %327 = arith.addf %324, %326 : vector<2x16xf32>
    %328 = vector.extract_strided_slice %320 {offsets = [0, 32], sizes = [2, 16], strides = [1, 1]} : vector<2x48xf32> to vector<2x16xf32>
    %329 = math.tanh %327 : vector<2x16xf32>
    %330 = arith.mulf %328, %329 : vector<2x16xf32>
    %331 = tpu.concatenate %34, %330 in 1 : vector<2x16xf32>, vector<2x16xf32> -> vector<2x32xf32>
    %332 = tpu.concatenate %74, %290 in 1 : vector<2x16xf32>, vector<2x16xf32> -> vector<2x32xf32>
    %333 = tpu.concatenate %114, %250 in 1 : vector<2x16xf32>, vector<2x16xf32> -> vector<2x32xf32>
    %334 = tpu.concatenate %154, %210 in 1 : vector<2x16xf32>, vector<2x16xf32> -> vector<2x32xf32>
    %335 = tpu.concatenate %194, %170 in 1 : vector<2x16xf32>, vector<2x16xf32> -> vector<2x32xf32>
    %336 = tpu.concatenate %234, %130 in 1 : vector<2x16xf32>, vector<2x16xf32> -> vector<2x32xf32>
    %337 = tpu.concatenate %274, %90 in 1 : vector<2x16xf32>, vector<2x16xf32> -> vector<2x32xf32>
    %338 = tpu.concatenate %314, %50 in 1 : vector<2x16xf32>, vector<2x16xf32> -> vector<2x32xf32>
    %339 = tpu.concatenate %331, %332, %333, %334, %335, %336, %337, %338 in 0 : vector<2x32xf32>, vector<2x32xf32>, vector<2x32xf32>, vector<2x32xf32>, vector<2x32xf32>, vector<2x32xf32>, vector<2x32xf32>, vector<2x32xf32> -> vector<16x32xf32>
    %c0_35 = arith.constant 0 : index
    %c0_36 = arith.constant 0 : index
    %340 = vector.load %arg5[%c0_35, %c0_36] : memref<16x32xf32, #tpu.memory_space<vmem>>, vector<16x32xf32>
    tpu.vector_store %arg5[%c0_35, %c0_36], %339 {strides = array<i32>} : memref<16x32xf32, #tpu.memory_space<vmem>>, vector<16x32xf32>,
    %341 = vector.shape_cast %314 : vector<2x16xf32> to vector<1x2x16xf32>
    %342 = vector.shape_cast %330 : vector<2x16xf32> to vector<1x2x16xf32>
    %343 = tpu.concatenate %341, %342 in 0 : vector<1x2x16xf32>, vector<1x2x16xf32> -> vector<2x2x16xf32>
    %c0_37 = arith.constant 0 : index
    %c0_38 = arith.constant 0 : index
    %c0_39 = arith.constant 0 : index
    %344 = vector.load %arg6[%c0_37, %c0_38, %c0_39] : memref<2x2x16xf32, #tpu.memory_space<vmem>>, vector<2x2x16xf32>
    tpu.vector_store %arg6[%c0_37, %c0_38, %c0_39], %343 {strides = array<i32>} : memref<2x2x16xf32, #tpu.memory_space<vmem>>, vector<2x2x16xf32>,
    %345 = vector.shape_cast %311 : vector<2x16xf32> to vector<1x2x16xf32>
    %346 = vector.shape_cast %327 : vector<2x16xf32> to vector<1x2x16xf32>
    %347 = tpu.concatenate %345, %346 in 0 : vector<1x2x16xf32>, vector<1x2x16xf32> -> vector<2x2x16xf32>
    %c0_40 = arith.constant 0 : index
    %c0_41 = arith.constant 0 : index
    %c0_42 = arith.constant 0 : index
    %348 = vector.load %arg7[%c0_40, %c0_41, %c0_42] : memref<2x2x16xf32, #tpu.memory_space<vmem>>, vector<2x2x16xf32>
    tpu.vector_store %arg7[%c0_40, %c0_41, %c0_42], %347 {strides = array<i32>} : memref<2x2x16xf32, #tpu.memory_space<vmem>>, vector<2x2x16xf32>,
    return
  }
  func.func @transform_0(%arg0: i32) -> (i32, i32) {
    %c0_i32 = arith.constant 0 : i32
    %c0_i32_0 = arith.constant 0 : i32
    %c0_i32_1 = arith.constant 0 : i32
    return %c0_i32, %c0_i32_0 : i32, i32
  }
  func.func @transform_1(%arg0: i32) -> (i32, i32) {
    %c0_i32 = arith.constant 0 : i32
    %c0_i32_0 = arith.constant 0 : i32
    %c0_i32_1 = arith.constant 0 : i32
    return %c0_i32, %c0_i32_0 : i32, i32
  }
  func.func @transform_2(%arg0: i32) -> (i32, i32) {
    %c0_i32 = arith.constant 0 : i32
    %c0_i32_0 = arith.constant 0 : i32
    %c0_i32_1 = arith.constant 0 : i32
    return %c0_i32, %c0_i32_0 : i32, i32
  }
  func.func @transform_3(%arg0: i32) -> (i32, i32) {
    %c0_i32 = arith.constant 0 : i32
    %c0_i32_0 = arith.constant 0 : i32
    %c0_i32_1 = arith.constant 0 : i32
    return %c0_i32, %c0_i32_0 : i32, i32
  }
  func.func @transform_4(%arg0: i32) -> (i32, i32) {
    %c0_i32 = arith.constant 0 : i32
    %c0_i32_0 = arith.constant 0 : i32
    %c0_i32_1 = arith.constant 0 : i32
    return %c0_i32, %c0_i32_0 : i32, i32
  }
  func.func @transform_5(%arg0: i32) -> (i32, i32, i32) {
    %c0_i32 = arith.constant 0 : i32
    %c0_i32_0 = arith.constant 0 : i32
    %c0_i32_1 = arith.constant 0 : i32
    %c0_i32_2 = arith.constant 0 : i32
    return %c0_i32, %c0_i32_0, %c0_i32_1 : i32, i32, i32
  }
  func.func @transform_6(%arg0: i32) -> (i32, i32, i32) {
    %c0_i32 = arith.constant 0 : i32
    %c0_i32_0 = arith.constant 0 : i32
    %c0_i32_1 = arith.constant 0 : i32
    %c0_i32_2 = arith.constant 0 : i32
    return %c0_i32, %c0_i32_0, %c0_i32_1 : i32, i32, i32
  }
}

module attributes {stable_mosaic.version = 11 : i64} {
  func.func @mha_kernel(%arg0: i32, %arg1: memref<1x2x32xf32, #tpu.memory_space<vmem>>, %arg2: memref<32x96xf32, #tpu.memory_space<vmem>>, %arg3: memref<1x96xf32, #tpu.memory_space<vmem>>, %arg4: memref<32x32xf32, #tpu.memory_space<vmem>>, %arg5: memref<1x32xf32, #tpu.memory_space<vmem>>, %arg6: memref<1x2x32xf32, #tpu.memory_space<vmem>>, %arg7: memref<1x2x2xf32, #tpu.memory_space<vmem>>) attributes {dimension_semantics = [#tpu.dimension_semantics<parallel>], iteration_bounds = array<i64: 8>, scalar_prefetch = 0 : i64, scratch_operands = 0 : i64, tpu.core_type = #tpu.core_type<tc>, window_params = [{transform_indices = @transform_0, window_bounds = array<i64: 1, 2, 32>}, {pipeline_mode = #tpu.pipeline_mode<synchronous>, transform_indices = @transform_1, window_bounds = array<i64: 32, 96>}, {pipeline_mode = #tpu.pipeline_mode<synchronous>, transform_indices = @transform_2, window_bounds = array<i64: 1, 96>}, {pipeline_mode = #tpu.pipeline_mode<synchronous>, transform_indices = @transform_3, window_bounds = array<i64: 32, 32>}, {pipeline_mode = #tpu.pipeline_mode<synchronous>, transform_indices = @transform_4, window_bounds = array<i64: 1, 32>}, {transform_indices = @transform_5, window_bounds = array<i64: 1, 2, 32>}, {transform_indices = @transform_6, window_bounds = array<i64: 1, 2, 2>}]} {
    %c0 = arith.constant 0 : index
    %c0_0 = arith.constant 0 : index
    %c0_1 = arith.constant 0 : index
    %0 = vector.load %arg1[%c0, %c0_0, %c0_1] : memref<1x2x32xf32, #tpu.memory_space<vmem>>, vector<1x2x32xf32>
    %1 = vector.shape_cast %0 : vector<1x2x32xf32> to vector<2x32xf32>
    %c0_2 = arith.constant 0 : index
    %c0_3 = arith.constant 0 : index
    %2 = vector.load %arg2[%c0_2, %c0_3] : memref<32x96xf32, #tpu.memory_space<vmem>>, vector<32x96xf32>
    %cst = arith.constant dense<0.000000e+00> : vector<2x96xf32>
    %3 = tpu.matmul %1, %2, %cst {dimension_numbers = #tpu.dot_dimension_numbers<[1], [0], [0], [1], [0, 0, 1, 1], [], []>} : vector<2x32xf32>, vector<32x96xf32>, vector<2x96xf32> -> vector<2x96xf32>
    %c0_4 = arith.constant 0 : index
    %c0_5 = arith.constant 0 : index
    %4 = vector.load %arg3[%c0_4, %c0_5] : memref<1x96xf32, #tpu.memory_space<vmem>>, vector<1x96xf32>
    %5 = vector.broadcast %4 : vector<1x96xf32> to vector<2x96xf32>
    %6 = arith.addf %3, %5 : vector<2x96xf32>
    %7 = vector.extract_strided_slice %6 {offsets = [0, 0], sizes = [2, 32], strides = [1, 1]} : vector<2x96xf32> to vector<2x32xf32>
    %cst_6 = arith.constant 5.000000e-01 : f32
    %8 = vector.broadcast %cst_6 : f32 to vector<2x32xf32>
    %9 = arith.mulf %7, %8 : vector<2x32xf32>
    %10 = vector.extract_strided_slice %6 {offsets = [0, 32], sizes = [2, 32], strides = [1, 1]} : vector<2x96xf32> to vector<2x32xf32>
    %11 = vector.extract_strided_slice %6 {offsets = [0, 64], sizes = [2, 32], strides = [1, 1]} : vector<2x96xf32> to vector<2x32xf32>
    %cst_7 = arith.constant 0.000000e+00 : f32
    %12 = vector.broadcast %cst_7 : f32 to vector<2x2xf32>
    %13 = vector.extract_strided_slice %9 {offsets = [0, 0], sizes = [2, 4], strides = [1, 1]} : vector<2x32xf32> to vector<2x4xf32>
    %14 = vector.extract_strided_slice %10 {offsets = [0, 0], sizes = [2, 4], strides = [1, 1]} : vector<2x32xf32> to vector<2x4xf32>
    %15 = vector.extract_strided_slice %11 {offsets = [0, 0], sizes = [2, 4], strides = [1, 1]} : vector<2x32xf32> to vector<2x4xf32>
    %cst_8 = arith.constant dense<0.000000e+00> : vector<2x2xf32>
    %16 = tpu.matmul %13, %14, %cst_8 {dimension_numbers = #tpu.dot_dimension_numbers<[1], [1], [0], [0], [0, 0, 1, 0], [], []>} : vector<2x4xf32>, vector<2x4xf32>, vector<2x2xf32> -> vector<2x2xf32>
    %cst_9 = arith.constant dense<0xFF800000> : vector<2xf32>
    %17 = vector.multi_reduction <maximumf>, %16, %cst_9 [1] : vector<2x2xf32> to vector<2xf32>
    %18 = vector.shape_cast %17 : vector<2xf32> to vector<2x1xf32>
    %19 = vector.broadcast %18 : vector<2x1xf32> to vector<2x2xf32>
    %20 = arith.subf %16, %19 : vector<2x2xf32>
    %21 = math.exp %20 : vector<2x2xf32>
    %cst_10 = arith.constant dense<0.000000e+00> : vector<2xf32>
    %22 = vector.multi_reduction <add>, %21, %cst_10 [1] : vector<2x2xf32> to vector<2xf32>
    %23 = vector.shape_cast %22 : vector<2xf32> to vector<2x1xf32>
    %24 = tpu.reciprocal %23 {approx = true} : vector<2x1xf32> -> vector<2x1xf32>
    %25 = vector.broadcast %24 : vector<2x1xf32> to vector<2x2xf32>
    %26 = arith.mulf %21, %25 : vector<2x2xf32>
    %cst_11 = arith.constant dense<0.000000e+00> : vector<2x4xf32>
    %27 = tpu.matmul %26, %15, %cst_11 {dimension_numbers = #tpu.dot_dimension_numbers<[1], [0], [0], [1], [0, 0, 1, 1], [], []>} : vector<2x2xf32>, vector<2x4xf32>, vector<2x4xf32> -> vector<2x4xf32>
    %28 = arith.addf %12, %26 : vector<2x2xf32>
    %29 = vector.extract_strided_slice %9 {offsets = [0, 4], sizes = [2, 4], strides = [1, 1]} : vector<2x32xf32> to vector<2x4xf32>
    %30 = vector.extract_strided_slice %10 {offsets = [0, 4], sizes = [2, 4], strides = [1, 1]} : vector<2x32xf32> to vector<2x4xf32>
    %31 = vector.extract_strided_slice %11 {offsets = [0, 4], sizes = [2, 4], strides = [1, 1]} : vector<2x32xf32> to vector<2x4xf32>
    %cst_12 = arith.constant dense<0.000000e+00> : vector<2x2xf32>
    %32 = tpu.matmul %29, %30, %cst_12 {dimension_numbers = #tpu.dot_dimension_numbers<[1], [1], [0], [0], [0, 0, 1, 0], [], []>} : vector<2x4xf32>, vector<2x4xf32>, vector<2x2xf32> -> vector<2x2xf32>
    %cst_13 = arith.constant dense<0xFF800000> : vector<2xf32>
    %33 = vector.multi_reduction <maximumf>, %32, %cst_13 [1] : vector<2x2xf32> to vector<2xf32>
    %34 = vector.shape_cast %33 : vector<2xf32> to vector<2x1xf32>
    %35 = vector.broadcast %34 : vector<2x1xf32> to vector<2x2xf32>
    %36 = arith.subf %32, %35 : vector<2x2xf32>
    %37 = math.exp %36 : vector<2x2xf32>
    %cst_14 = arith.constant dense<0.000000e+00> : vector<2xf32>
    %38 = vector.multi_reduction <add>, %37, %cst_14 [1] : vector<2x2xf32> to vector<2xf32>
    %39 = vector.shape_cast %38 : vector<2xf32> to vector<2x1xf32>
    %40 = tpu.reciprocal %39 {approx = true} : vector<2x1xf32> -> vector<2x1xf32>
    %41 = vector.broadcast %40 : vector<2x1xf32> to vector<2x2xf32>
    %42 = arith.mulf %37, %41 : vector<2x2xf32>
    %cst_15 = arith.constant dense<0.000000e+00> : vector<2x4xf32>
    %43 = tpu.matmul %42, %31, %cst_15 {dimension_numbers = #tpu.dot_dimension_numbers<[1], [0], [0], [1], [0, 0, 1, 1], [], []>} : vector<2x2xf32>, vector<2x4xf32>, vector<2x4xf32> -> vector<2x4xf32>
    %44 = arith.addf %28, %42 : vector<2x2xf32>
    %45 = vector.extract_strided_slice %9 {offsets = [0, 8], sizes = [2, 4], strides = [1, 1]} : vector<2x32xf32> to vector<2x4xf32>
    %46 = vector.extract_strided_slice %10 {offsets = [0, 8], sizes = [2, 4], strides = [1, 1]} : vector<2x32xf32> to vector<2x4xf32>
    %47 = vector.extract_strided_slice %11 {offsets = [0, 8], sizes = [2, 4], strides = [1, 1]} : vector<2x32xf32> to vector<2x4xf32>
    %cst_16 = arith.constant dense<0.000000e+00> : vector<2x2xf32>
    %48 = tpu.matmul %45, %46, %cst_16 {dimension_numbers = #tpu.dot_dimension_numbers<[1], [1], [0], [0], [0, 0, 1, 0], [], []>} : vector<2x4xf32>, vector<2x4xf32>, vector<2x2xf32> -> vector<2x2xf32>
    %cst_17 = arith.constant dense<0xFF800000> : vector<2xf32>
    %49 = vector.multi_reduction <maximumf>, %48, %cst_17 [1] : vector<2x2xf32> to vector<2xf32>
    %50 = vector.shape_cast %49 : vector<2xf32> to vector<2x1xf32>
    %51 = vector.broadcast %50 : vector<2x1xf32> to vector<2x2xf32>
    %52 = arith.subf %48, %51 : vector<2x2xf32>
    %53 = math.exp %52 : vector<2x2xf32>
    %cst_18 = arith.constant dense<0.000000e+00> : vector<2xf32>
    %54 = vector.multi_reduction <add>, %53, %cst_18 [1] : vector<2x2xf32> to vector<2xf32>
    %55 = vector.shape_cast %54 : vector<2xf32> to vector<2x1xf32>
    %56 = tpu.reciprocal %55 {approx = true} : vector<2x1xf32> -> vector<2x1xf32>
    %57 = vector.broadcast %56 : vector<2x1xf32> to vector<2x2xf32>
    %58 = arith.mulf %53, %57 : vector<2x2xf32>
    %cst_19 = arith.constant dense<0.000000e+00> : vector<2x4xf32>
    %59 = tpu.matmul %58, %47, %cst_19 {dimension_numbers = #tpu.dot_dimension_numbers<[1], [0], [0], [1], [0, 0, 1, 1], [], []>} : vector<2x2xf32>, vector<2x4xf32>, vector<2x4xf32> -> vector<2x4xf32>
    %60 = arith.addf %44, %58 : vector<2x2xf32>
    %61 = vector.extract_strided_slice %9 {offsets = [0, 12], sizes = [2, 4], strides = [1, 1]} : vector<2x32xf32> to vector<2x4xf32>
    %62 = vector.extract_strided_slice %10 {offsets = [0, 12], sizes = [2, 4], strides = [1, 1]} : vector<2x32xf32> to vector<2x4xf32>
    %63 = vector.extract_strided_slice %11 {offsets = [0, 12], sizes = [2, 4], strides = [1, 1]} : vector<2x32xf32> to vector<2x4xf32>
    %cst_20 = arith.constant dense<0.000000e+00> : vector<2x2xf32>
    %64 = tpu.matmul %61, %62, %cst_20 {dimension_numbers = #tpu.dot_dimension_numbers<[1], [1], [0], [0], [0, 0, 1, 0], [], []>} : vector<2x4xf32>, vector<2x4xf32>, vector<2x2xf32> -> vector<2x2xf32>
    %cst_21 = arith.constant dense<0xFF800000> : vector<2xf32>
    %65 = vector.multi_reduction <maximumf>, %64, %cst_21 [1] : vector<2x2xf32> to vector<2xf32>
    %66 = vector.shape_cast %65 : vector<2xf32> to vector<2x1xf32>
    %67 = vector.broadcast %66 : vector<2x1xf32> to vector<2x2xf32>
    %68 = arith.subf %64, %67 : vector<2x2xf32>
    %69 = math.exp %68 : vector<2x2xf32>
    %cst_22 = arith.constant dense<0.000000e+00> : vector<2xf32>
    %70 = vector.multi_reduction <add>, %69, %cst_22 [1] : vector<2x2xf32> to vector<2xf32>
    %71 = vector.shape_cast %70 : vector<2xf32> to vector<2x1xf32>
    %72 = tpu.reciprocal %71 {approx = true} : vector<2x1xf32> -> vector<2x1xf32>
    %73 = vector.broadcast %72 : vector<2x1xf32> to vector<2x2xf32>
    %74 = arith.mulf %69, %73 : vector<2x2xf32>
    %cst_23 = arith.constant dense<0.000000e+00> : vector<2x4xf32>
    %75 = tpu.matmul %74, %63, %cst_23 {dimension_numbers = #tpu.dot_dimension_numbers<[1], [0], [0], [1], [0, 0, 1, 1], [], []>} : vector<2x2xf32>, vector<2x4xf32>, vector<2x4xf32> -> vector<2x4xf32>
    %76 = arith.addf %60, %74 : vector<2x2xf32>
    %77 = vector.extract_strided_slice %9 {offsets = [0, 16], sizes = [2, 4], strides = [1, 1]} : vector<2x32xf32> to vector<2x4xf32>
    %78 = vector.extract_strided_slice %10 {offsets = [0, 16], sizes = [2, 4], strides = [1, 1]} : vector<2x32xf32> to vector<2x4xf32>
    %79 = vector.extract_strided_slice %11 {offsets = [0, 16], sizes = [2, 4], strides = [1, 1]} : vector<2x32xf32> to vector<2x4xf32>
    %cst_24 = arith.constant dense<0.000000e+00> : vector<2x2xf32>
    %80 = tpu.matmul %77, %78, %cst_24 {dimension_numbers = #tpu.dot_dimension_numbers<[1], [1], [0], [0], [0, 0, 1, 0], [], []>} : vector<2x4xf32>, vector<2x4xf32>, vector<2x2xf32> -> vector<2x2xf32>
    %cst_25 = arith.constant dense<0xFF800000> : vector<2xf32>
    %81 = vector.multi_reduction <maximumf>, %80, %cst_25 [1] : vector<2x2xf32> to vector<2xf32>
    %82 = vector.shape_cast %81 : vector<2xf32> to vector<2x1xf32>
    %83 = vector.broadcast %82 : vector<2x1xf32> to vector<2x2xf32>
    %84 = arith.subf %80, %83 : vector<2x2xf32>
    %85 = math.exp %84 : vector<2x2xf32>
    %cst_26 = arith.constant dense<0.000000e+00> : vector<2xf32>
    %86 = vector.multi_reduction <add>, %85, %cst_26 [1] : vector<2x2xf32> to vector<2xf32>
    %87 = vector.shape_cast %86 : vector<2xf32> to vector<2x1xf32>
    %88 = tpu.reciprocal %87 {approx = true} : vector<2x1xf32> -> vector<2x1xf32>
    %89 = vector.broadcast %88 : vector<2x1xf32> to vector<2x2xf32>
    %90 = arith.mulf %85, %89 : vector<2x2xf32>
    %cst_27 = arith.constant dense<0.000000e+00> : vector<2x4xf32>
    %91 = tpu.matmul %90, %79, %cst_27 {dimension_numbers = #tpu.dot_dimension_numbers<[1], [0], [0], [1], [0, 0, 1, 1], [], []>} : vector<2x2xf32>, vector<2x4xf32>, vector<2x4xf32> -> vector<2x4xf32>
    %92 = arith.addf %76, %90 : vector<2x2xf32>
    %93 = vector.extract_strided_slice %9 {offsets = [0, 20], sizes = [2, 4], strides = [1, 1]} : vector<2x32xf32> to vector<2x4xf32>
    %94 = vector.extract_strided_slice %10 {offsets = [0, 20], sizes = [2, 4], strides = [1, 1]} : vector<2x32xf32> to vector<2x4xf32>
    %95 = vector.extract_strided_slice %11 {offsets = [0, 20], sizes = [2, 4], strides = [1, 1]} : vector<2x32xf32> to vector<2x4xf32>
    %cst_28 = arith.constant dense<0.000000e+00> : vector<2x2xf32>
    %96 = tpu.matmul %93, %94, %cst_28 {dimension_numbers = #tpu.dot_dimension_numbers<[1], [1], [0], [0], [0, 0, 1, 0], [], []>} : vector<2x4xf32>, vector<2x4xf32>, vector<2x2xf32> -> vector<2x2xf32>
    %cst_29 = arith.constant dense<0xFF800000> : vector<2xf32>
    %97 = vector.multi_reduction <maximumf>, %96, %cst_29 [1] : vector<2x2xf32> to vector<2xf32>
    %98 = vector.shape_cast %97 : vector<2xf32> to vector<2x1xf32>
    %99 = vector.broadcast %98 : vector<2x1xf32> to vector<2x2xf32>
    %100 = arith.subf %96, %99 : vector<2x2xf32>
    %101 = math.exp %100 : vector<2x2xf32>
    %cst_30 = arith.constant dense<0.000000e+00> : vector<2xf32>
    %102 = vector.multi_reduction <add>, %101, %cst_30 [1] : vector<2x2xf32> to vector<2xf32>
    %103 = vector.shape_cast %102 : vector<2xf32> to vector<2x1xf32>
    %104 = tpu.reciprocal %103 {approx = true} : vector<2x1xf32> -> vector<2x1xf32>
    %105 = vector.broadcast %104 : vector<2x1xf32> to vector<2x2xf32>
    %106 = arith.mulf %101, %105 : vector<2x2xf32>
    %cst_31 = arith.constant dense<0.000000e+00> : vector<2x4xf32>
    %107 = tpu.matmul %106, %95, %cst_31 {dimension_numbers = #tpu.dot_dimension_numbers<[1], [0], [0], [1], [0, 0, 1, 1], [], []>} : vector<2x2xf32>, vector<2x4xf32>, vector<2x4xf32> -> vector<2x4xf32>
    %108 = arith.addf %92, %106 : vector<2x2xf32>
    %109 = vector.extract_strided_slice %9 {offsets = [0, 24], sizes = [2, 4], strides = [1, 1]} : vector<2x32xf32> to vector<2x4xf32>
    %110 = vector.extract_strided_slice %10 {offsets = [0, 24], sizes = [2, 4], strides = [1, 1]} : vector<2x32xf32> to vector<2x4xf32>
    %111 = vector.extract_strided_slice %11 {offsets = [0, 24], sizes = [2, 4], strides = [1, 1]} : vector<2x32xf32> to vector<2x4xf32>
    %cst_32 = arith.constant dense<0.000000e+00> : vector<2x2xf32>
    %112 = tpu.matmul %109, %110, %cst_32 {dimension_numbers = #tpu.dot_dimension_numbers<[1], [1], [0], [0], [0, 0, 1, 0], [], []>} : vector<2x4xf32>, vector<2x4xf32>, vector<2x2xf32> -> vector<2x2xf32>
    %cst_33 = arith.constant dense<0xFF800000> : vector<2xf32>
    %113 = vector.multi_reduction <maximumf>, %112, %cst_33 [1] : vector<2x2xf32> to vector<2xf32>
    %114 = vector.shape_cast %113 : vector<2xf32> to vector<2x1xf32>
    %115 = vector.broadcast %114 : vector<2x1xf32> to vector<2x2xf32>
    %116 = arith.subf %112, %115 : vector<2x2xf32>
    %117 = math.exp %116 : vector<2x2xf32>
    %cst_34 = arith.constant dense<0.000000e+00> : vector<2xf32>
    %118 = vector.multi_reduction <add>, %117, %cst_34 [1] : vector<2x2xf32> to vector<2xf32>
    %119 = vector.shape_cast %118 : vector<2xf32> to vector<2x1xf32>
    %120 = tpu.reciprocal %119 {approx = true} : vector<2x1xf32> -> vector<2x1xf32>
    %121 = vector.broadcast %120 : vector<2x1xf32> to vector<2x2xf32>
    %122 = arith.mulf %117, %121 : vector<2x2xf32>
    %cst_35 = arith.constant dense<0.000000e+00> : vector<2x4xf32>
    %123 = tpu.matmul %122, %111, %cst_35 {dimension_numbers = #tpu.dot_dimension_numbers<[1], [0], [0], [1], [0, 0, 1, 1], [], []>} : vector<2x2xf32>, vector<2x4xf32>, vector<2x4xf32> -> vector<2x4xf32>
    %124 = arith.addf %108, %122 : vector<2x2xf32>
    %125 = vector.extract_strided_slice %9 {offsets = [0, 28], sizes = [2, 4], strides = [1, 1]} : vector<2x32xf32> to vector<2x4xf32>
    %126 = vector.extract_strided_slice %10 {offsets = [0, 28], sizes = [2, 4], strides = [1, 1]} : vector<2x32xf32> to vector<2x4xf32>
    %127 = vector.extract_strided_slice %11 {offsets = [0, 28], sizes = [2, 4], strides = [1, 1]} : vector<2x32xf32> to vector<2x4xf32>
    %cst_36 = arith.constant dense<0.000000e+00> : vector<2x2xf32>
    %128 = tpu.matmul %125, %126, %cst_36 {dimension_numbers = #tpu.dot_dimension_numbers<[1], [1], [0], [0], [0, 0, 1, 0], [], []>} : vector<2x4xf32>, vector<2x4xf32>, vector<2x2xf32> -> vector<2x2xf32>
    %cst_37 = arith.constant dense<0xFF800000> : vector<2xf32>
    %129 = vector.multi_reduction <maximumf>, %128, %cst_37 [1] : vector<2x2xf32> to vector<2xf32>
    %130 = vector.shape_cast %129 : vector<2xf32> to vector<2x1xf32>
    %131 = vector.broadcast %130 : vector<2x1xf32> to vector<2x2xf32>
    %132 = arith.subf %128, %131 : vector<2x2xf32>
    %133 = math.exp %132 : vector<2x2xf32>
    %cst_38 = arith.constant dense<0.000000e+00> : vector<2xf32>
    %134 = vector.multi_reduction <add>, %133, %cst_38 [1] : vector<2x2xf32> to vector<2xf32>
    %135 = vector.shape_cast %134 : vector<2xf32> to vector<2x1xf32>
    %136 = tpu.reciprocal %135 {approx = true} : vector<2x1xf32> -> vector<2x1xf32>
    %137 = vector.broadcast %136 : vector<2x1xf32> to vector<2x2xf32>
    %138 = arith.mulf %133, %137 : vector<2x2xf32>
    %cst_39 = arith.constant dense<0.000000e+00> : vector<2x4xf32>
    %139 = tpu.matmul %138, %127, %cst_39 {dimension_numbers = #tpu.dot_dimension_numbers<[1], [0], [0], [1], [0, 0, 1, 1], [], []>} : vector<2x2xf32>, vector<2x4xf32>, vector<2x4xf32> -> vector<2x4xf32>
    %140 = arith.addf %124, %138 : vector<2x2xf32>
    %141 = tpu.concatenate %27, %43, %59, %75, %91, %107, %123, %139 in 1 : vector<2x4xf32>, vector<2x4xf32>, vector<2x4xf32>, vector<2x4xf32>, vector<2x4xf32>, vector<2x4xf32>, vector<2x4xf32>, vector<2x4xf32> -> vector<2x32xf32>
    %c0_40 = arith.constant 0 : index
    %c0_41 = arith.constant 0 : index
    %142 = vector.load %arg4[%c0_40, %c0_41] : memref<32x32xf32, #tpu.memory_space<vmem>>, vector<32x32xf32>
    %cst_42 = arith.constant dense<0.000000e+00> : vector<2x32xf32>
    %143 = tpu.matmul %141, %142, %cst_42 {dimension_numbers = #tpu.dot_dimension_numbers<[1], [0], [0], [1], [0, 0, 1, 1], [], []>} : vector<2x32xf32>, vector<32x32xf32>, vector<2x32xf32> -> vector<2x32xf32>
    %c0_43 = arith.constant 0 : index
    %c0_44 = arith.constant 0 : index
    %144 = vector.load %arg5[%c0_43, %c0_44] : memref<1x32xf32, #tpu.memory_space<vmem>>, vector<1x32xf32>
    %145 = vector.broadcast %144 : vector<1x32xf32> to vector<2x32xf32>
    %146 = arith.addf %143, %145 : vector<2x32xf32>
    %c0_45 = arith.constant 0 : index
    %c0_46 = arith.constant 0 : index
    %c0_47 = arith.constant 0 : index
    %147 = vector.load %arg6[%c0_45, %c0_46, %c0_47] : memref<1x2x32xf32, #tpu.memory_space<vmem>>, vector<1x2x32xf32>
    %148 = vector.shape_cast %147 : vector<1x2x32xf32> to vector<2x32xf32>
    %149 = vector.shape_cast %146 : vector<2x32xf32> to vector<1x2x32xf32>
    tpu.vector_store %arg6[%c0_45, %c0_46, %c0_47], %149 {strides = array<i32>} : memref<1x2x32xf32, #tpu.memory_space<vmem>>, vector<1x2x32xf32>,
    %cst_48 = arith.constant 1.250000e-01 : f32
    %150 = vector.broadcast %cst_48 : f32 to vector<2x2xf32>
    %151 = arith.mulf %140, %150 : vector<2x2xf32>
    %c0_49 = arith.constant 0 : index
    %c0_50 = arith.constant 0 : index
    %c0_51 = arith.constant 0 : index
    %152 = vector.load %arg7[%c0_49, %c0_50, %c0_51] : memref<1x2x2xf32, #tpu.memory_space<vmem>>, vector<1x2x2xf32>
    %153 = vector.shape_cast %152 : vector<1x2x2xf32> to vector<2x2xf32>
    %154 = vector.shape_cast %151 : vector<2x2xf32> to vector<1x2x2xf32>
    tpu.vector_store %arg7[%c0_49, %c0_50, %c0_51], %154 {strides = array<i32>} : memref<1x2x2xf32, #tpu.memory_space<vmem>>, vector<1x2x2xf32>,
    return
  }
  func.func @transform_0(%arg0: i32) -> (i32, i32, i32) {
    %c0_i32 = arith.constant 0 : i32
    %c0_i32_0 = arith.constant 0 : i32
    %c0_i32_1 = arith.constant 0 : i32
    return %arg0, %c0_i32, %c0_i32_0 : i32, i32, i32
  }
  func.func @transform_1(%arg0: i32) -> (i32, i32) {
    %c0_i32 = arith.constant 0 : i32
    %c0_i32_0 = arith.constant 0 : i32
    %c0_i32_1 = arith.constant 0 : i32
    return %c0_i32, %c0_i32_0 : i32, i32
  }
  func.func @transform_2(%arg0: i32) -> (i32, i32) {
    %c0_i32 = arith.constant 0 : i32
    %c0_i32_0 = arith.constant 0 : i32
    %c0_i32_1 = arith.constant 0 : i32
    return %c0_i32, %c0_i32_0 : i32, i32
  }
  func.func @transform_3(%arg0: i32) -> (i32, i32) {
    %c0_i32 = arith.constant 0 : i32
    %c0_i32_0 = arith.constant 0 : i32
    %c0_i32_1 = arith.constant 0 : i32
    return %c0_i32, %c0_i32_0 : i32, i32
  }
  func.func @transform_4(%arg0: i32) -> (i32, i32) {
    %c0_i32 = arith.constant 0 : i32
    %c0_i32_0 = arith.constant 0 : i32
    %c0_i32_1 = arith.constant 0 : i32
    return %c0_i32, %c0_i32_0 : i32, i32
  }
  func.func @transform_5(%arg0: i32) -> (i32, i32, i32) {
    %c0_i32 = arith.constant 0 : i32
    %c0_i32_0 = arith.constant 0 : i32
    %c0_i32_1 = arith.constant 0 : i32
    return %arg0, %c0_i32, %c0_i32_0 : i32, i32, i32
  }
  func.func @transform_6(%arg0: i32) -> (i32, i32, i32) {
    %c0_i32 = arith.constant 0 : i32
    %c0_i32_0 = arith.constant 0 : i32
    %c0_i32_1 = arith.constant 0 : i32
    return %arg0, %c0_i32, %c0_i32_0 : i32, i32, i32
  }
}

</mosaic_0001>

<bundles_post_ra>
// kernel: contextual_encoder_forward.3
= control target key start
LH: loop header
LB: loop body
LE: loop exit
PB: predicated region body
PF: predicated region fallthrough
CT: control target
= control target key end

     0   :  { %12 = vsyncpa [#allocation3], 0  ;;  %s1741_s21 = smov [#allocation2]   ;;  %s2070_s0 = inlined_call_operand.vmem [shape: f32[16,32], index: 0, kind: input, shape index: {}]   ;;  %s2071_s1 = inlined_call_operand.vmem [shape: f32[32,128], index: 1, kind: input, shape index: {}]   ;;  %s2072_s2 = inlined_call_operand.hbm [shape: f32[32,128], index: 2, kind: input, shape index: {}]   ;;  %s2073_s3 = inlined_call_operand.vmem [shape: f32[1,128], index: 3, kind: input, shape index: {}]   ;;  %s2074_s4 = inlined_call_operand.vmem [shape: f32[16,32], index: 4, kind: output, shape index: {0}]   ;;  %s2075_s5 = inlined_call_operand.vmem [shape: f32[2,2,16], index: 5, kind: output, shape index: {1}]   ;;  %s2076_s6 = inlined_call_operand.vmem [shape: f32[2,2,16], index: 6, kind: output, shape index: {2}]  }
   0x1   :  { %s22_s22 = sshll.u32 %s1741_s21, 4  ;;  %s1717_s25 = scalar_lea.hbm %s2072_s2, 512  ;;  %s23_s22 = int_to_ptr.vmem [resolvable:$true] %s22_s22 }
   0x2   :  { %p1718_p0 = scmp.ne.s32.totalorder %s2072_s2, %s1717_s25  ;;  %p1721_p1 = scmp.lt.u32.totalorder %s1717_s25, %s2072_s2 }
   0x4   :  { %p1723_p2 = pnand %p1721_p1, %p1718_p0 }
   0x6   :  { %1726 = shalt.err (!%p1723_p2)
}
   0x7   :  { %s1727_s30 = scalar_lea.vmem %s23_s22, 512  ;;  %p1732_p4 = scmp.lt.s32.totalorder %s23_s22, %s23_s22 }
   0x8   :  { %p1728_p3 = scmp.ne.s32.totalorder %s23_s22, %s1727_s30  ;;  %p1733_p5 = scmp.lt.s32.totalorder %s1727_s30, %s1727_s30 }
   0xa   :  { %p1734_p6 = por %p1733_p5, %p1732_p4 }
   0xc   :  { %p1735_p7 = pnand %p1734_p6, %p1728_p3 }
   0xe   :  { %1738 = shalt.err (!%p1735_p7)
}
   0xf   :  { %s1742_s7 = smov 128   ;;  %s1743_s8 = smov 8  }
  0x10   :  { %28 = dma.hbm_to_vmem [thread:$0]  %s2072_s2, 512, %s23_s22, [#allocation3], %s1742_s7, %s1742_s7, %s1743_s8  }
  0x11   :  { %1739 = dma.done.wait [#allocation3], 512  }
  0x12   :  { %1740 = vsyncadd [#allocation3], 4294966784  ;;  %v1744_v0 = vmov 0.0|0.0   ;;  %vm1745_vm0 = vmmov 0   ;;  %v1746_v1 = vmov 0.0   ;;  %v36_v2 = vld [vmem:[%s2071_s1] sm:$0xff] }
  0x13   :  { %1529 = vmatprep.subr.bf16.mxu1 %v1744_v0  ;;  %1441 = vmatprep.mubr.msk.f32.mxu1 %vm1745_vm0, %v1746_v1  ;;  %v37_v3 = vld [vmem:[%s2071_s1 + $0x8] sm:$0xff]  ;;  %v129_v4 = vld [vmem:[#allocation2] sm:$0xff]  ;;  %vm47_vm1 = vcmask 261120   ;;  %v38_v7 = vld [vmem:[%s2071_s1 + $0x10] sm:$0xff]  ;;  %s1747_s22 = smov 80   ;;  %s1749_s23 = smov 48  }
  0x14   :  { %v1521_v5 = vpack.c.bf16 %v37_v3, %v36_v2  ;;  %v130_v6 = vld [vmem:[#allocation2 + $0x8] sm:$0xff]  ;;  %v39_v8 = vld [vmem:[%s2071_s1 + $0x18] sm:$0xff]  ;;  %v131_v11 = vld [vmem:[#allocation2 + $0x10] sm:$0xff]  ;;  %s1750_s24 = smov 96   ;;  %vm268_vm2 = vcmask 130048   ;;  %s1751_s25 = smov 64  }
  0x15   :  { %v1815_v9 = vpack.c.bf16 %v130_v6, %v129_v4  ;;  %v1525_v10 = vpack.c.bf16 %v39_v8, %v38_v7  ;;  %v132_v12 = vld [vmem:[#allocation2 + $0x18] sm:$0xff]  ;;  %v34_v13 = vld [vmem:[%s2070_s0] sm:$0xff]  ;;  %v35_v15 = vld [vmem:[%s2070_s0 + $0x8] sm:$0xff]  ;;  %s1752_s26 = smov 112   ;;  %vm1321_vm3 = vcmask 130054   ;;  %vm1304_vm4 = vcmask 1041408  }
  0x16   :  { %1522 = vmatprep.subr.bf16.mxu0 %v1521_v5  ;;  %1430 = vmatprep.mubr.msk.f32.mxu0 %vm47_vm1, %v34_v13  ;;  %v1822_v14 = vpack.c.bf16 %v132_v12, %v131_v11  ;;  %v1350_v16 = vld [vmem:[%s2073_s3] ss:$0 sm:$0xff]  ;;  %s1748_s3 = smov 16   ;;  %vm1308_vm5 = vcmask 1045504   ;;  %vm1306_vm6 = vcmask 1043456  }
  0x17   :  { %1531 = vmatpush3.bf16.msra.mxu1 %v1815_v9  ;;  %1524 = vmatpush3.bf16.msra.mxu0 %v1521_v5 }
  0x18   :  { %1532 = vmatprep.subr.bf16.mxu1 %v1744_v0  ;;  %1526 = vmatprep.subr.bf16.mxu0 %v1525_v10 }
  0x1b   :  { %1534 = vmatpush3.bf16.msra.mxu1 %v1822_v14  ;;  %1528 = vmatpush3.bf16.msra.mxu0 %v1525_v10 }
  0x1c   :  { %1535 = vmatprep.subr.bf16.mxu0 %v1744_v0  ;;  %1541 = vmatprep.subr.bf16.mxu1 %v1744_v0 }
  0x1e   :  { %1442 = vmatmul.mubr.f32.vlgmr.msra.gmra.mrb[0].mxu1 %v1746_v1  ;;  %1431 = vmatmul.mubr.msk.f32.vlgmr.msra.gmra.mrb[0].mxu0 %vm47_vm1, %v35_v15 }
  0x1f   :  { %1537 = vmatpush3.bf16.msra.mxu0 %v1815_v9  ;;  %1452 = vmatprep.mubr.msk.f32.mxu0 %vm1745_vm0, %v1746_v1 }
  0x20   :  { %1538 = vmatprep.subr.bf16.mxu0 %v1744_v0  ;;  %1543 = vmatpush3.bf16.msra.mxu1 %v1815_v9 }
  0x21   :  { %1544 = vmatprep.subr.bf16.mxu1 %v1744_v0  ;;  %1463 = vmatprep.mubr.msk.f32.mxu1 %vm1745_vm0, %v1746_v1 }
  0x23   :  { %1540 = vmatpush3.bf16.msra.mxu0 %v1822_v14 }
  0x24   :  { %1546 = vmatpush3.bf16.msra.mxu1 %v1822_v14  ;;  %1547 = vmatprep.subr.bf16.mxu0 %v1744_v0 }
  0x25   :  { %1553 = vmatprep.subr.bf16.mxu1 %v1744_v0 }
  0xf1   :  { %v202_v17 = vpop.f32.mrb[0].mxu1  ;;  %v1432_v18 = vpop.f32.mrb[0].mxu0 }
  0xf2   :  { %v208_v19 = vrot.slane %v202_v17, 2  ;;  %v1848_v20 = vadd.f32 %v1432_v18, %v1350_v16  ;;  %v1443_v21 = vpop.f32.mrb[1].mxu1  ;;  %v120_v22 = vpop.f32.mrb[1].mxu0 }
  0xf3   :  { %v1850_v23 = vadd.f32 %v1350_v16, %v120_v22 }
  0xf4   :  { %v210_v24 = vadd.f32 %v208_v19, %v1848_v20 }
  0xf5   :  { %v206_v25 = vadd.f32 %v202_v17, %v1850_v23 }
  0xf6   :  { %1589 = vtanh.f32 %v210_v24  ;;  %v1354_v28 = vmul.f32 -1.442695, %v210_v24 }
  0xf7   :  { %1591 = vtanh.f32 %v206_v25  ;;  %v1353_v29 = vmul.f32 -1.442695, %v206_v25 }
  0xf8   :  { %1593 = vpow2.f32 %v1354_v28 }
  0xf9   :  { %1595 = vpow2.f32 %v1353_v29 }
 0x100   :  { %v1590_v26 = vpop.eup %1589 }
 0x101   :  { %244 = vrot.lane.b32.xlu0 %v1590_v26, %s1747_s22  ;;  %v1592_v27 = vpop.eup %1591 }
 0x102   :  { %v1594_v30 = vpop.eup %1593 }
 0x103   :  { %v238_v31 = vadd.f32 1.0, %v1594_v30  ;;  %v1596_v32 = vpop.eup %1595 }
 0x104   :  { %v214_v33 = vadd.f32 1.0, %v1596_v32 }
 0x105   :  { %220 = vrot.lane.b32.xlu0 %v1592_v27, %s1747_s22  ;;  %1597 = vrcp.f32 %v238_v31 }
 0x106   :  { %1599 = vrcp.f32 %v214_v33 }
 0x10f   :  { %v1598_v34 = vpop.eup %1597 }
 0x110   :  { %v1600_v37 = vpop.eup %1599  ;;  %v242_v40 = vmul.f32 0.0, %v1598_v34 }
 0x111   :  { %v218_v43 = vmul.f32 0.0, %v1600_v37 }
 0x173   :  { %v245_v35 = vpop.permute.xlu0 %244 }
 0x174   :  { %v247_v36 = vmul.f32 %v1598_v34, %v245_v35 }
 0x176   :  { %249 = vrot.lane.b32.xlu1 %v247_v36, %s1748_s3 }
 0x177   :  { %v221_v38 = vpop.permute.xlu0 %220 }
 0x178   :  { %v223_v39 = vmul.f32 %v1600_v37, %v221_v38 }
 0x17a   :  { %225 = vrot.lane.b32.xlu1 %v223_v39, %s1748_s3 }
 0x1e8   :  { %v250_v41 = vpop.permute.xlu1 %249 }
 0x1e9   :  { %v1858_v42 = vadd.f32 %v250_v41, %v242_v40 }
 0x1eb   :  { %1601 = vtanh.f32 %v1858_v42  ;;  %v385_v17 = vrot.slane %v1858_v42, 2 }
 0x1ec   :  { %v226_v44 = vpop.permute.xlu1 %225 }
 0x1ed   :  { %v228_v45 = vadd.f32 %v226_v44, %v218_v43 }
 0x1ef   :  { %1603 = vtanh.f32 %v228_v45  ;;  %v358_v16 = vrot.slane %v228_v45, 6 }
 0x1f5   :  { %v1602_v46 = vpop.eup %1601 }
 0x1f6   :  { %255 = vrot.lane.b32.xlu0 %v1602_v46, %s1748_s3 }
 0x1f9   :  { %v1604_v47 = vpop.eup %1603 }
 0x1fa   :  { %231 = vrot.lane.b32.xlu1 %v1604_v47, %s1748_s3 }
 0x268   :  { %v256_v48 = vpop.permute.xlu0 %255 }
 0x269   :  { %v1863_v49 = vmul.f32 %v1598_v34, %v256_v48 }
 0x26b   :  { %v264_v50 = vrot.slane %v1863_v49, 6 }
 0x26c   :  { %v232_v51 = vpop.permute.xlu1 %231 }
 0x26d   :  { %v234_v52 = vmul.f32 %v1600_v37, %v232_v51  ;;  %265 = vrot.lane.b32.xlu1 %v264_v50, %s1749_s23 }
 0x26f   :  { %260 = vrot.lane.b32.xlu0 %v234_v52, %s1750_s24 }
 0x2df   :  { %v266_v53 = vpop.permute.xlu1 %265 }
 0x2e1   :  { %v1868_v54 = vpop.permute.xlu0 %260 }
 0x2e2   :  { %v269_v55 = vsel %vm268_vm2, %v1868_v54, %v266_v53 }
 0x2e3   :  { %1453 = vmatmul.mubr.msk.f32.vlgmr.msra.gmra.mrb[2].mxu0 %vm47_vm1, %v269_v55 }
 0x2e4   :  { %1549 = vmatpush3.bf16.msra.mxu0 %v1815_v9  ;;  %1474 = vmatprep.mubr.msk.f32.mxu0 %vm1745_vm0, %v1746_v1 }
 0x2e5   :  { %1550 = vmatprep.subr.bf16.mxu0 %v1744_v0 }
 0x2e8   :  { %1552 = vmatpush3.bf16.msra.mxu0 %v1822_v14 }
 0x2e9   :  { %1559 = vmatprep.subr.bf16.mxu0 %v1744_v0 }
 0x3b6   :  { %v339_v56 = vpop.f32.mrb[2].mxu0 }
 0x3b7   :  { %v344_v57 = vrot.slane %v339_v56, 6  ;;  %v347_v58 = vrot.slane %v339_v56, 4  ;;  %v1454_v59 = vpop.f32.mrb[3].mxu0 }
 0x3b9   :  { %v346_v60 = vadd.f32 %v344_v57, %v1850_v23  ;;  %v349_v61 = vadd.f32 %v347_v58, %v1848_v20 }
 0x3bb   :  { %1605 = vtanh.f32 %v346_v60  ;;  %v1356_v2 = vmul.f32 -1.442695, %v346_v60  ;;  %v1357_v3 = vmul.f32 -1.442695, %v349_v61 }
 0x3bc   :  { %1607 = vtanh.f32 %v349_v61 }
 0x3bd   :  { %1609 = vpow2.f32 %v1356_v2 }
 0x3be   :  { %1611 = vpow2.f32 %v1357_v3 }
 0x3c5   :  { %v1606_v62 = vpop.eup %1605 }
 0x3c6   :  { %v1608_v63 = vpop.eup %1607  ;;  %362 = vrot.lane.b32.xlu1 %v1606_v62, %s1747_s22 }
 0x3c7   :  { %389 = vrot.lane.b32.xlu0 %v1608_v63, %s1747_s22  ;;  %v1610_v4 = vpop.eup %1609 }
 0x3c8   :  { %v1612_v5 = vpop.eup %1611  ;;  %v353_v6 = vadd.f32 1.0, %v1610_v4 }
 0x3c9   :  { %v380_v7 = vadd.f32 1.0, %v1612_v5 }
 0x3ca   :  { %1613 = vrcp.f32 %v353_v6 }
 0x3cb   :  { %1615 = vrcp.f32 %v380_v7 }
 0x3d4   :  { %v1614_v8 = vpop.eup %1613 }
 0x3d5   :  { %v1616_v11 = vpop.eup %1615  ;;  %v360_v18 = vmul.f32 %v1614_v8, %v358_v16 }
 0x3d6   :  { %v387_v19 = vmul.f32 %v1616_v11, %v385_v17 }
 0x438   :  { %v363_v10 = vpop.permute.xlu1 %362 }
 0x439   :  { %v390_v12 = vpop.permute.xlu0 %389  ;;  %v365_v13 = vmul.f32 %v1614_v8, %v363_v10 }
 0x43a   :  { %v392_v15 = vmul.f32 %v1616_v11, %v390_v12 }
 0x43b   :  { %367 = vrot.lane.b32.xlu1 %v365_v13, %s1748_s3 }
 0x43c   :  { %394 = vrot.lane.b32.xlu0 %v392_v15, %s1748_s3 }
 0x4ad   :  { %v368_v21 = vpop.permute.xlu1 %367 }
 0x4ae   :  { %v395_v22 = vpop.permute.xlu0 %394  ;;  %v370_v24 = vadd.f32 %v368_v21, %v360_v18 }
 0x4af   :  { %v397_v25 = vadd.f32 %v395_v22, %v387_v19 }
 0x4b0   :  { %1617 = vtanh.f32 %v370_v24  ;;  %v503_v59 = vrot.slane %v370_v24, 6 }
 0x4b1   :  { %1619 = vtanh.f32 %v397_v25  ;;  %v530_v60 = vrot.slane %v397_v25, 2 }
 0x4ba   :  { %v1618_v26 = vpop.eup %1617 }
 0x4bb   :  { %v1620_v27 = vpop.eup %1619  ;;  %373 = vrot.lane.b32.xlu1 %v1618_v26, %s1748_s3 }
 0x4bc   :  { %400 = vrot.lane.b32.xlu0 %v1620_v27, %s1748_s3 }
 0x52d   :  { %v374_v28 = vpop.permute.xlu1 %373 }
 0x52e   :  { %v401_v29 = vpop.permute.xlu0 %400  ;;  %v376_v30 = vmul.f32 %v1614_v8, %v374_v28 }
 0x52f   :  { %v1888_v31 = vmul.f32 %v1616_v11, %v401_v29 }
 0x530   :  { %405 = vrot.lane.b32.xlu0 %v376_v30, %s1750_s24 }
 0x531   :  { %v409_v32 = vrot.slane %v1888_v31, 2 }
 0x533   :  { %410 = vrot.lane.b32.xlu1 %v409_v32, %s1749_s23 }
 0x5a2   :  { %v1893_v33 = vpop.permute.xlu0 %405 }
 0x5a5   :  { %v411_v34 = vpop.permute.xlu1 %410 }
 0x5a6   :  { %v413_v35 = vsel %vm268_vm2, %v1893_v33, %v411_v34 }
 0x5a7   :  { %v415_v36 = vrot.slane %v413_v35, 2 }
 0x5a9   :  { %1464 = vmatmul.mubr.msk.f32.vlgmr.msra.gmra.mrb[2].mxu1 %vm47_vm1, %v415_v36 }
 0x5aa   :  { %1555 = vmatpush3.bf16.msra.mxu1 %v1815_v9  ;;  %1485 = vmatprep.mubr.msk.f32.mxu1 %vm1745_vm0, %v1746_v1 }
 0x5ab   :  { %1556 = vmatprep.subr.bf16.mxu1 %v1744_v0 }
 0x5ae   :  { %1558 = vmatpush3.bf16.msra.mxu1 %v1822_v14 }
 0x5af   :  { %1565 = vmatprep.subr.bf16.mxu1 %v1744_v0 }
 0x67c   :  { %v484_v37 = vpop.f32.mrb[2].mxu1 }
 0x67d   :  { %v489_v38 = vrot.slane %v484_v37, 4  ;;  %v492_v39 = vrot.slane %v484_v37, 6  ;;  %v1465_v40 = vpop.f32.mrb[3].mxu1 }
 0x67f   :  { %v491_v41 = vadd.f32 %v489_v38, %v1850_v23  ;;  %v494_v42 = vadd.f32 %v492_v39, %v1848_v20 }
 0x681   :  { %1621 = vtanh.f32 %v491_v41  ;;  %v1359_v45 = vmul.f32 -1.442695, %v491_v41  ;;  %v1360_v46 = vmul.f32 -1.442695, %v494_v42 }
 0x682   :  { %1623 = vtanh.f32 %v494_v42 }
 0x683   :  { %1625 = vpow2.f32 %v1359_v45 }
 0x684   :  { %1627 = vpow2.f32 %v1360_v46 }
 0x68b   :  { %v1622_v43 = vpop.eup %1621 }
 0x68c   :  { %v1624_v44 = vpop.eup %1623  ;;  %507 = vrot.lane.b32.xlu1 %v1622_v43, %s1747_s22 }
 0x68d   :  { %534 = vrot.lane.b32.xlu0 %v1624_v44, %s1747_s22  ;;  %v1626_v47 = vpop.eup %1625 }
 0x68e   :  { %v1628_v48 = vpop.eup %1627  ;;  %v498_v50 = vadd.f32 1.0, %v1626_v47 }
 0x68f   :  { %v525_v51 = vadd.f32 1.0, %v1628_v48 }
 0x690   :  { %1629 = vrcp.f32 %v498_v50 }
 0x691   :  { %1631 = vrcp.f32 %v525_v51 }
 0x69a   :  { %v1630_v52 = vpop.eup %1629 }
 0x69b   :  { %v1632_v55 = vpop.eup %1631  ;;  %v505_v61 = vmul.f32 %v1630_v52, %v503_v59 }
 0x69c   :  { %v532_v62 = vmul.f32 %v1632_v55, %v530_v60 }
 0x6fe   :  { %v508_v53 = vpop.permute.xlu1 %507 }
 0x6ff   :  { %v535_v56 = vpop.permute.xlu0 %534  ;;  %v510_v57 = vmul.f32 %v1630_v52, %v508_v53 }
 0x700   :  { %v537_v58 = vmul.f32 %v1632_v55, %v535_v56 }
 0x701   :  { %512 = vrot.lane.b32.xlu1 %v510_v57, %s1748_s3 }
 0x702   :  { %539 = vrot.lane.b32.xlu0 %v537_v58, %s1748_s3 }
 0x773   :  { %v513_v63 = vpop.permute.xlu1 %512 }
 0x774   :  { %v540_v2 = vpop.permute.xlu0 %539  ;;  %v515_v3 = vadd.f32 %v513_v63, %v505_v61 }
 0x775   :  { %v542_v4 = vadd.f32 %v540_v2, %v532_v62 }
 0x776   :  { %1633 = vtanh.f32 %v515_v3  ;;  %v646_v42 = vrot.slane %v515_v3, 6 }
 0x777   :  { %1635 = vtanh.f32 %v542_v4  ;;  %v673_v41 = vrot.slane %v542_v4, 2 }
 0x780   :  { %v1634_v5 = vpop.eup %1633 }
 0x781   :  { %v1636_v6 = vpop.eup %1635  ;;  %518 = vrot.lane.b32.xlu1 %v1634_v5, %s1748_s3 }
 0x782   :  { %545 = vrot.lane.b32.xlu0 %v1636_v6, %s1748_s3 }
 0x7f3   :  { %v519_v7 = vpop.permute.xlu1 %518 }
 0x7f4   :  { %v546_v8 = vpop.permute.xlu0 %545  ;;  %v521_v10 = vmul.f32 %v1630_v52, %v519_v7 }
 0x7f5   :  { %v1912_v11 = vmul.f32 %v1632_v55, %v546_v8 }
 0x7f6   :  { %550 = vrot.lane.b32.xlu0 %v521_v10, %s1750_s24 }
 0x7f7   :  { %v554_v12 = vrot.slane %v1912_v11, 6 }
 0x7f9   :  { %555 = vrot.lane.b32.xlu1 %v554_v12, %s1749_s23 }
 0x868   :  { %v1917_v13 = vpop.permute.xlu0 %550 }
 0x86b   :  { %v556_v15 = vpop.permute.xlu1 %555 }
 0x86c   :  { %v558_v16 = vsel %vm268_vm2, %v1917_v13, %v556_v15 }
 0x86d   :  { %v560_v17 = vrot.slane %v558_v16, 4 }
 0x86f   :  { %1475 = vmatmul.mubr.msk.f32.vlgmr.msra.gmra.mrb[4].mxu0 %vm47_vm1, %v560_v17 }
 0x870   :  { %1561 = vmatpush3.bf16.msra.mxu0 %v1815_v9  ;;  %1496 = vmatprep.mubr.msk.f32.mxu0 %vm1745_vm0, %v1746_v1 }
 0x871   :  { %1562 = vmatprep.subr.bf16.mxu0 %v1744_v0 }
 0x874   :  { %1564 = vmatpush3.bf16.msra.mxu0 %v1822_v14 }
 0x875   :  { %1571 = vmatprep.subr.bf16.mxu0 %v1744_v0 }
 0x942   :  { %v629_v18 = vpop.f32.mrb[4].mxu0 }
 0x943   :  { %v634_v19 = vrot.slane %v629_v18, 2  ;;  %v637_v21 = vadd.f32 %v629_v18, %v1848_v20  ;;  %v1476_v22 = vpop.f32.mrb[5].mxu0 }
 0x945   :  { %v636_v24 = vadd.f32 %v634_v19, %v1850_v23  ;;  %1637 = vtanh.f32 %v637_v21  ;;  %v1363_v27 = vmul.f32 -1.442695, %v637_v21 }
 0x947   :  { %1639 = vtanh.f32 %v636_v24  ;;  %v1362_v28 = vmul.f32 -1.442695, %v636_v24 }
 0x948   :  { %1641 = vpow2.f32 %v1363_v27 }
 0x949   :  { %1643 = vpow2.f32 %v1362_v28 }
 0x94f   :  { %v1638_v25 = vpop.eup %1637 }
 0x950   :  { %677 = vrot.lane.b32.xlu0 %v1638_v25, %s1747_s22 }
 0x951   :  { %v1640_v26 = vpop.eup %1639 }
 0x952   :  { %650 = vrot.lane.b32.xlu1 %v1640_v26, %s1747_s22  ;;  %v1642_v29 = vpop.eup %1641 }
 0x953   :  { %v1644_v30 = vpop.eup %1643  ;;  %v668_v32 = vadd.f32 1.0, %v1642_v29 }
 0x954   :  { %v641_v34 = vadd.f32 1.0, %v1644_v30 }
 0x955   :  { %1645 = vrcp.f32 %v668_v32 }
 0x956   :  { %1647 = vrcp.f32 %v641_v34 }
 0x95f   :  { %v1646_v35 = vpop.eup %1645 }
 0x960   :  { %v1648_v38 = vpop.eup %1647  ;;  %v675_v43 = vmul.f32 %v1646_v35, %v673_v41 }
 0x961   :  { %v648_v46 = vmul.f32 %v1648_v38, %v646_v42 }
 0x9c2   :  { %v678_v36 = vpop.permute.xlu0 %677 }
 0x9c3   :  { %v680_v37 = vmul.f32 %v1646_v35, %v678_v36 }
 0x9c4   :  { %v651_v39 = vpop.permute.xlu1 %650 }
 0x9c5   :  { %v653_v40 = vmul.f32 %v1648_v38, %v651_v39  ;;  %682 = vrot.lane.b32.xlu0 %v680_v37, %s1748_s3 }
 0x9c7   :  { %655 = vrot.lane.b32.xlu1 %v653_v40, %s1748_s3 }
 0xa37   :  { %v683_v44 = vpop.permute.xlu0 %682 }
 0xa38   :  { %v685_v45 = vadd.f32 %v683_v44, %v675_v43 }
 0xa39   :  { %v656_v47 = vpop.permute.xlu1 %655 }
 0xa3a   :  { %1649 = vtanh.f32 %v685_v45  ;;  %v658_v48 = vadd.f32 %v656_v47, %v648_v46  ;;  %v816_v27 = vrot.slane %v685_v45, 2 }
 0xa3c   :  { %1651 = vtanh.f32 %v658_v48  ;;  %v789_v25 = vrot.slane %v658_v48, 6 }
 0xa44   :  { %v1650_v50 = vpop.eup %1649 }
 0xa45   :  { %688 = vrot.lane.b32.xlu0 %v1650_v50, %s1748_s3 }
 0xa46   :  { %v1652_v51 = vpop.eup %1651 }
 0xa47   :  { %661 = vrot.lane.b32.xlu1 %v1652_v51, %s1748_s3 }
 0xab7   :  { %v689_v52 = vpop.permute.xlu0 %688 }
 0xab8   :  { %v1936_v53 = vmul.f32 %v1646_v35, %v689_v52 }
 0xab9   :  { %v662_v55 = vpop.permute.xlu1 %661 }
 0xaba   :  { %v697_v56 = vrot.slane %v1936_v53, 2  ;;  %v664_v57 = vmul.f32 %v1648_v38, %v662_v55 }
 0xabc   :  { %698 = vrot.lane.b32.xlu1 %v697_v56, %s1749_s23  ;;  %693 = vrot.lane.b32.xlu0 %v664_v57, %s1750_s24 }
 0xb2e   :  { %v1941_v58 = vpop.permute.xlu0 %693  ;;  %v699_v59 = vpop.permute.xlu1 %698 }
 0xb2f   :  { %v701_v60 = vsel %vm268_vm2, %v1941_v58, %v699_v59 }
 0xb30   :  { %v703_v61 = vrot.slane %v701_v60, 6 }
 0xb32   :  { %1486 = vmatmul.mubr.msk.f32.vlgmr.msra.gmra.mrb[4].mxu1 %vm47_vm1, %v703_v61 }
 0xb33   :  { %1567 = vmatpush3.bf16.msra.mxu1 %v1815_v9  ;;  %1507 = vmatprep.mubr.msk.f32.mxu1 %vm1745_vm0, %v1746_v1 }
 0xb34   :  { %1568 = vmatprep.subr.bf16.mxu1 %v1744_v0 }
 0xb37   :  { %1570 = vmatpush3.bf16.msra.mxu1 %v1822_v14 }
 0xc05   :  { %v772_v62 = vpop.f32.mrb[4].mxu1 }
 0xc06   :  { %v776_v63 = vadd.f32 %v772_v62, %v1848_v20  ;;  %v778_v2 = vrot.slane %v772_v62, 2  ;;  %v1487_v3 = vpop.f32.mrb[5].mxu1 }
 0xc08   :  { %v780_v4 = vadd.f32 %v778_v2, %v1850_v23  ;;  %1653 = vtanh.f32 %v776_v63  ;;  %v1365_v7 = vmul.f32 -1.442695, %v776_v63 }
 0xc0a   :  { %1655 = vtanh.f32 %v780_v4  ;;  %v1366_v8 = vmul.f32 -1.442695, %v780_v4 }
 0xc0b   :  { %1657 = vpow2.f32 %v1365_v7 }
 0xc0c   :  { %1659 = vpow2.f32 %v1366_v8 }
 0xc12   :  { %v1654_v5 = vpop.eup %1653 }
 0xc13   :  { %793 = vrot.lane.b32.xlu1 %v1654_v5, %s1747_s22 }
 0xc14   :  { %v1656_v6 = vpop.eup %1655 }
 0xc15   :  { %820 = vrot.lane.b32.xlu0 %v1656_v6, %s1747_s22  ;;  %v1658_v10 = vpop.eup %1657 }
 0xc16   :  { %v1660_v12 = vpop.eup %1659  ;;  %v784_v15 = vadd.f32 1.0, %v1658_v10 }
 0xc17   :  { %v811_v16 = vadd.f32 1.0, %v1660_v12 }
 0xc18   :  { %1661 = vrcp.f32 %v784_v15 }
 0xc19   :  { %1663 = vrcp.f32 %v811_v16 }
 0xc22   :  { %v1662_v17 = vpop.eup %1661 }
 0xc23   :  { %v1664_v21 = vpop.eup %1663  ;;  %v791_v26 = vmul.f32 %v1662_v17, %v789_v25 }
 0xc24   :  { %v818_v30 = vmul.f32 %v1664_v21, %v816_v27 }
 0xc85   :  { %v794_v18 = vpop.permute.xlu1 %793 }
 0xc86   :  { %v796_v19 = vmul.f32 %v1662_v17, %v794_v18 }
 0xc87   :  { %v821_v22 = vpop.permute.xlu0 %820 }
 0xc88   :  { %798 = vrot.lane.b32.xlu1 %v796_v19, %s1748_s3  ;;  %v823_v24 = vmul.f32 %v1664_v21, %v821_v22 }
 0xc8a   :  { %825 = vrot.lane.b32.xlu0 %v823_v24, %s1748_s3 }
 0xcfa   :  { %v799_v28 = vpop.permute.xlu1 %798 }
 0xcfb   :  { %v801_v29 = vadd.f32 %v799_v28, %v791_v26 }
 0xcfc   :  { %v826_v32 = vpop.permute.xlu0 %825 }
 0xcfd   :  { %1665 = vtanh.f32 %v801_v29  ;;  %v828_v34 = vadd.f32 %v826_v32, %v818_v30  ;;  %v933_v3 = vrot.slane %v801_v29, 6 }
 0xcff   :  { %1667 = vtanh.f32 %v828_v34  ;;  %v960_v4 = vrot.slane %v828_v34, 2 }
 0xd07   :  { %v1666_v35 = vpop.eup %1665 }
 0xd08   :  { %804 = vrot.lane.b32.xlu1 %v1666_v35, %s1748_s3 }
 0xd09   :  { %v1668_v36 = vpop.eup %1667 }
 0xd0a   :  { %831 = vrot.lane.b32.xlu0 %v1668_v36, %s1748_s3 }
 0xd7a   :  { %v805_v37 = vpop.permute.xlu1 %804 }
 0xd7b   :  { %v807_v38 = vmul.f32 %v1662_v17, %v805_v37 }
 0xd7c   :  { %v832_v39 = vpop.permute.xlu0 %831 }
 0xd7d   :  { %836 = vrot.lane.b32.xlu0 %v807_v38, %s1750_s24  ;;  %v1960_v40 = vmul.f32 %v1664_v21, %v832_v39 }
 0xd7f   :  { %v840_v41 = vrot.slane %v1960_v40, 6 }
 0xd81   :  { %841 = vrot.lane.b32.xlu1 %v840_v41, %s1749_s23 }
 0xdef   :  { %v1964_v42 = vpop.permute.xlu0 %836 }
 0xdf3   :  { %v842_v43 = vpop.permute.xlu1 %841 }
 0xdf4   :  { %v844_v44 = vsel %vm268_vm2, %v1964_v42, %v842_v43 }
 0xdf5   :  { %1497 = vmatmul.mubr.msk.f32.vlgmr.msra.gmra.mrb[6].mxu0 %vm47_vm1, %v844_v44 }
 0xdf6   :  { %1573 = vmatpush3.bf16.msra.mxu0 %v1815_v9  ;;  %1518 = vmatprep.mubr.msk.f32.mxu0 %vm1745_vm0, %v1746_v1 }
 0xdf7   :  { %1574 = vmatprep.subr.bf16.mxu0 %v1744_v0 }
 0xdfa   :  { %1576 = vmatpush3.bf16.msra.mxu0 %v1822_v14 }
 0xec8   :  { %v914_v45 = vpop.f32.mrb[6].mxu0 }
 0xec9   :  { %v919_v46 = vrot.slane %v914_v45, 6  ;;  %v922_v47 = vrot.slane %v914_v45, 4  ;;  %v1498_v48 = vpop.f32.mrb[7].mxu0 }
 0xecb   :  { %v921_v50 = vadd.f32 %v919_v46, %v1848_v20  ;;  %v924_v51 = vadd.f32 %v922_v47, %v1850_v23 }
 0xecd   :  { %1669 = vtanh.f32 %v921_v50  ;;  %v1368_v1 = vmul.f32 -1.442695, %v921_v50  ;;  %v1369_v0 = vmul.f32 -1.442695, %v924_v51 }
 0xece   :  { %1671 = vtanh.f32 %v924_v51 }
 0xecf   :  { %1673 = vpow2.f32 %v1368_v1 }
 0xed0   :  { %1675 = vpow2.f32 %v1369_v0 }
 0xed7   :  { %v1670_v52 = vpop.eup %1669 }
 0xed8   :  { %v1672_v55 = vpop.eup %1671  ;;  %937 = vrot.lane.b32.xlu1 %v1670_v52, %s1747_s22 }
 0xed9   :  { %964 = vrot.lane.b32.xlu0 %v1672_v55, %s1747_s22  ;;  %v1674_v9 = vpop.eup %1673 }
 0xeda   :  { %v1676_v14 = vpop.eup %1675  ;;  %v928_v56 = vadd.f32 1.0, %v1674_v9 }
 0xedb   :  { %v955_v57 = vadd.f32 1.0, %v1676_v14 }
 0xedc   :  { %1677 = vrcp.f32 %v928_v56 }
 0xedd   :  { %1679 = vrcp.f32 %v955_v57 }
 0xee6   :  { %v1678_v59 = vpop.eup %1677 }
 0xee7   :  { %v1680_v61 = vpop.eup %1679  ;;  %v935_v5 = vmul.f32 %v1678_v59, %v933_v3 }
 0xee8   :  { %v962_v6 = vmul.f32 %v1680_v61, %v960_v4 }
 0xf4a   :  { %v938_v60 = vpop.permute.xlu1 %937 }
 0xf4b   :  { %v965_v62 = vpop.permute.xlu0 %964  ;;  %v940_v63 = vmul.f32 %v1678_v59, %v938_v60 }
 0xf4c   :  { %v967_v2 = vmul.f32 %v1680_v61, %v965_v62 }
 0xf4d   :  { %942 = vrot.lane.b32.xlu1 %v940_v63, %s1748_s3 }
 0xf4e   :  { %969 = vrot.lane.b32.xlu0 %v967_v2, %s1748_s3 }
 0xfbf   :  { %v943_v7 = vpop.permute.xlu1 %942 }
 0xfc0   :  { %v970_v8 = vpop.permute.xlu0 %969  ;;  %v945_v10 = vadd.f32 %v943_v7, %v935_v5 }
 0xfc1   :  { %v972_v12 = vadd.f32 %v970_v8, %v962_v6 }
 0xfc2   :  { %1681 = vtanh.f32 %v945_v10  ;;  %v1078_v55 = vrot.slane %v945_v10, 6 }
 0xfc3   :  { %1683 = vtanh.f32 %v972_v12  ;;  %v1105_v1 = vrot.slane %v972_v12, 2 }
 0xfcc   :  { %v1682_v15 = vpop.eup %1681 }
 0xfcd   :  { %v1684_v16 = vpop.eup %1683  ;;  %948 = vrot.lane.b32.xlu1 %v1682_v15, %s1748_s3 }
 0xfce   :  { %975 = vrot.lane.b32.xlu0 %v1684_v16, %s1748_s3 }
0x103f   :  { %v949_v17 = vpop.permute.xlu1 %948 }
0x1040   :  { %v976_v18 = vpop.permute.xlu0 %975  ;;  %v951_v19 = vmul.f32 %v1678_v59, %v949_v17 }
0x1041   :  { %v1982_v21 = vmul.f32 %v1680_v61, %v976_v18 }
0x1042   :  { %980 = vrot.lane.b32.xlu0 %v951_v19, %s1750_s24 }
0x1043   :  { %v984_v22 = vrot.slane %v1982_v21, 2 }
0x1045   :  { %985 = vrot.lane.b32.xlu1 %v984_v22, %s1749_s23 }
0x10b4   :  { %v1987_v24 = vpop.permute.xlu0 %980 }
0x10b7   :  { %v986_v25 = vpop.permute.xlu1 %985 }
0x10b8   :  { %v988_v26 = vsel %vm268_vm2, %v1987_v24, %v986_v25 }
0x10b9   :  { %v990_v27 = vrot.slane %v988_v26, 2 }
0x10bb   :  { %1508 = vmatmul.mubr.msk.f32.vlgmr.msra.gmra.mrb[6].mxu1 %vm47_vm1, %v990_v27 }
0x118e   :  { %v1059_v28 = vpop.f32.mrb[6].mxu1 }
0x118f   :  { %v1064_v29 = vrot.slane %v1059_v28, 4  ;;  %v1067_v30 = vrot.slane %v1059_v28, 6  ;;  %v1509_v32 = vpop.f32.mrb[7].mxu1 }
0x1191   :  { %v1066_v34 = vadd.f32 %v1064_v29, %v1848_v20  ;;  %v1069_v35 = vadd.f32 %v1067_v30, %v1850_v23 }
0x1193   :  { %1685 = vtanh.f32 %v1066_v34  ;;  %v1371_v38 = vmul.f32 -1.442695, %v1066_v34  ;;  %v1372_v39 = vmul.f32 -1.442695, %v1069_v35 }
0x1194   :  { %1687 = vtanh.f32 %v1069_v35 }
0x1195   :  { %1689 = vpow2.f32 %v1371_v38 }
0x1196   :  { %1691 = vpow2.f32 %v1372_v39 }
0x119d   :  { %v1686_v36 = vpop.eup %1685 }
0x119e   :  { %v1688_v37 = vpop.eup %1687  ;;  %1082 = vrot.lane.b32.xlu1 %v1686_v36, %s1747_s22 }
0x119f   :  { %1109 = vrot.lane.b32.xlu0 %v1688_v37, %s1747_s22  ;;  %v1690_v41 = vpop.eup %1689 }
0x11a0   :  { %v1692_v43 = vpop.eup %1691  ;;  %v1073_v44 = vadd.f32 1.0, %v1690_v41 }
0x11a1   :  { %v1100_v45 = vadd.f32 1.0, %v1692_v43 }
0x11a2   :  { %1693 = vrcp.f32 %v1073_v44 }
0x11a3   :  { %1695 = vrcp.f32 %v1100_v45 }
0x11ac   :  { %v1694_v46 = vpop.eup %1693 }
0x11ad   :  { %v1696_v48 = vpop.eup %1695  ;;  %v1080_v0 = vmul.f32 %v1694_v46, %v1078_v55 }
0x11ae   :  { %v1107_v9 = vmul.f32 %v1696_v48, %v1105_v1 }
0x1210   :  { %v1083_v47 = vpop.permute.xlu1 %1082 }
0x1211   :  { %v1110_v50 = vpop.permute.xlu0 %1109  ;;  %v1085_v51 = vmul.f32 %v1694_v46, %v1083_v47 }
0x1212   :  { %v1112_v52 = vmul.f32 %v1696_v48, %v1110_v50 }
0x1213   :  { %1087 = vrot.lane.b32.xlu1 %v1085_v51, %s1748_s3 }
0x1214   :  { %1114 = vrot.lane.b32.xlu0 %v1112_v52, %s1748_s3 }
0x1285   :  { %v1088_v14 = vpop.permute.xlu1 %1087 }
0x1286   :  { %v1115_v56 = vpop.permute.xlu0 %1114  ;;  %v1090_v57 = vadd.f32 %v1088_v14, %v1080_v0 }
0x1287   :  { %v1117_v59 = vadd.f32 %v1115_v56, %v1107_v9 }
0x1288   :  { %1697 = vtanh.f32 %v1090_v57  ;;  %v1221_v37 = vrot.slane %v1090_v57, 6 }
0x1289   :  { %1699 = vtanh.f32 %v1117_v59  ;;  %v1248_v36 = vrot.slane %v1117_v59, 2 }
0x1292   :  { %v1698_v60 = vpop.eup %1697 }
0x1293   :  { %v1700_v61 = vpop.eup %1699  ;;  %1093 = vrot.lane.b32.xlu1 %v1698_v60, %s1748_s3 }
0x1294   :  { %1120 = vrot.lane.b32.xlu0 %v1700_v61, %s1748_s3 }
0x1305   :  { %v1094_v62 = vpop.permute.xlu1 %1093 }
0x1306   :  { %v1121_v63 = vpop.permute.xlu0 %1120  ;;  %v1096_v2 = vmul.f32 %v1694_v46, %v1094_v62 }
0x1307   :  { %v1123_v3 = vmul.f32 %v1696_v48, %v1121_v63 }
0x1308   :  { %1125 = vrot.lane.b32.xlu0 %v1096_v2, %s1750_s24 }
0x1309   :  { %v1129_v4 = vrot.slane %v1123_v3, 6 }
0x130b   :  { %1130 = vrot.lane.b32.xlu1 %v1129_v4, %s1749_s23 }
0x137a   :  { %v2002_v5 = vpop.permute.xlu0 %1125 }
0x137d   :  { %v1131_v6 = vpop.permute.xlu1 %1130 }
0x137e   :  { %v1133_v7 = vsel %vm268_vm2, %v2002_v5, %v1131_v6 }
0x137f   :  { %v1135_v8 = vrot.slane %v1133_v7, 4 }
0x1381   :  { %1519 = vmatmul.mubr.msk.f32.vlgmr.msra.gmra.mrb[8].mxu0 %vm47_vm1, %v1135_v8 }
0x1454   :  { %v1204_v10 = vpop.f32.mrb[8].mxu0 }
0x1455   :  { %v1209_v12 = vrot.slane %v1204_v10, 2  ;;  %v1212_v15 = vadd.f32 %v1204_v10, %v1850_v23  ;;  %v1520_v16 = vpop.f32.mrb[9].mxu0 }
0x1457   :  { %v1211_v17 = vadd.f32 %v1209_v12, %v1848_v20  ;;  %1701 = vtanh.f32 %v1212_v15  ;;  %v1375_v22 = vmul.f32 -1.442695, %v1212_v15 }
0x1459   :  { %1703 = vtanh.f32 %v1211_v17  ;;  %v1374_v25 = vmul.f32 -1.442695, %v1211_v17 }
0x145a   :  { %1705 = vpow2.f32 %v1375_v22 }
0x145b   :  { %1707 = vpow2.f32 %v1374_v25 }
0x1461   :  { %v1702_v18 = vpop.eup %1701 }
0x1462   :  { %1252 = vrot.lane.b32.xlu0 %v1702_v18, %s1747_s22 }
0x1463   :  { %v1704_v19 = vpop.eup %1703 }
0x1464   :  { %1225 = vrot.lane.b32.xlu1 %v1704_v19, %s1747_s22  ;;  %v1706_v26 = vpop.eup %1705 }
0x1465   :  { %v1708_v27 = vpop.eup %1707  ;;  %v1243_v28 = vadd.f32 1.0, %v1706_v26 }
0x1466   :  { %v1216_v29 = vadd.f32 1.0, %v1708_v27 }
0x1467   :  { %1709 = vrcp.f32 %v1243_v28 }
0x1468   :  { %1711 = vrcp.f32 %v1216_v29 }
0x1471   :  { %v1710_v23 = vpop.eup %1709 }
0x1472   :  { %v1712_v32 = vpop.eup %1711  ;;  %v1250_v38 = vmul.f32 %v1710_v23, %v1248_v36 }
0x1473   :  { %v1223_v43 = vmul.f32 %v1712_v32, %v1221_v37 }
0x14d4   :  { %v1253_v20 = vpop.permute.xlu0 %1252 }
0x14d5   :  { %v1255_v30 = vmul.f32 %v1710_v23, %v1253_v20 }
0x14d6   :  { %v1226_v34 = vpop.permute.xlu1 %1225 }
0x14d7   :  { %v1228_v35 = vmul.f32 %v1712_v32, %v1226_v34  ;;  %1257 = vrot.lane.b32.xlu0 %v1255_v30, %s1748_s3 }
0x14d9   :  { %1230 = vrot.lane.b32.xlu1 %v1228_v35, %s1748_s3 }
0x1549   :  { %v1258_v39 = vpop.permute.xlu0 %1257 }
0x154a   :  { %v1260_v41 = vadd.f32 %v1258_v39, %v1250_v38 }
0x154b   :  { %v1231_v44 = vpop.permute.xlu1 %1230 }
0x154c   :  { %1713 = vtanh.f32 %v1260_v41  ;;  %v1233_v45 = vadd.f32 %v1231_v44, %v1223_v43  ;;  %v1325_v48 = vrot.slane %v1260_v41, 2 }
0x154e   :  { %1715 = vtanh.f32 %v1233_v45 }
0x1556   :  { %v1714_v46 = vpop.eup %1713 }
0x1557   :  { %1263 = vrot.lane.b32.xlu0 %v1714_v46, %s1748_s3 }
0x1558   :  { %v1716_v47 = vpop.eup %1715 }
0x1559   :  { %1236 = vrot.lane.b32.xlu1 %v1716_v47, %s1748_s3 }
0x155d   :  { %1326 = vrot.lane.b32.xlu1 %v1325_v48, %s1751_s25 }
0x1561   :  { %1272 = vrot.lane.b32.xlu1 %v1123_v3, %s1749_s23 }
0x1565   :  { %1288 = vrot.lane.b32.xlu1 %v1912_v11, %s1749_s23 }
0x1569   :  { %1292 = vrot.lane.b32.xlu1 %v1888_v31, %s1749_s23 }
0x15c9   :  { %v1264_v50 = vpop.permute.xlu0 %1263 }
0x15ca   :  { %v1266_v51 = vmul.f32 %v1710_v23, %v1264_v50 }
0x15cb   :  { %v1237_v52 = vpop.permute.xlu1 %1236 }
0x15cc   :  { %v1315_v55 = vrot.slane %v1266_v51, 2  ;;  %v1239_v1 = vmul.f32 %v1712_v32, %v1237_v52 }
0x15ce   :  { %1316 = vrot.lane.b32.xlu0 %v1315_v55, %s1751_s25  ;;  %1297 = vrot.lane.b32.xlu1 %v1239_v1, %s1750_s24 }
0x15cf   :  { %v1327_v31 = vpop.permute.xlu1 %1326 }
0x15d2   :  { %1268 = vrot.lane.b32.xlu0 %v1266_v51, %s1749_s23 }
0x15d3   :  { %v1273_v11 = vpop.permute.xlu1 %1272 }
0x15d4   :  { %v1275_v59 = vsel %vm268_vm2, %v1893_v33, %v1273_v11 }
0x15d6   :  { %1284 = vrot.lane.b32.xlu0 %v1936_v53, %s1749_s23 }
0x15d7   :  { %v1289_v0 = vpop.permute.xlu1 %1288 }
0x15d8   :  { %v1291_v63 = vsel %vm268_vm2, %v1987_v24, %v1289_v0 }
0x15da   :  { %1276 = vrot.lane.b32.xlu0 %v1982_v21, %s1749_s23 }
0x15db   :  { %v1293_v9 = vpop.permute.xlu1 %1292 }
0x15dc   :  { %v1295_v33 = vsel %vm268_vm2, %v2002_v5, %v1293_v9 }
0x15de   :  { %1280 = vrot.lane.b32.xlu0 %v1960_v40, %s1749_s23 }
0x15e2   :  { %1300 = vrot.lane.b32.xlu0 %v1863_v49, %s1749_s23 }
0x15e6   :  { %1329 = vrot.lane.b32.xlu0 %v1233_v45, %s1752_s26 }
0x1640   :  { %v1317_v14 = vpop.permute.xlu0 %1316  ;;  %v1298_v56 = vpop.permute.xlu1 %1297 }
0x1641   :  { %1322 = vst.msk [vmem:[%s2075_s5 - $0x6] sm:$0xc0] %vm1321_vm3, %v1298_v56  ;;  %1318 = vrot.lane.b32.xlu1 %v1317_v14, %s1750_s24 }
0x1644   :  { %v1269_v53 = vpop.permute.xlu0 %1268 }
0x1645   :  { %1331 = vrot.lane.b32.xlu1 %v1327_v31, %s1752_s26  ;;  %v1271_v21 = vsel %vm268_vm2, %v1868_v54, %v1269_v53 }
0x1646   :  { %v1305_v61 = vsel %vm1304_vm4, %v1271_v21, %v1275_v59 }
0x1648   :  { %v1285_v40 = vpop.permute.xlu0 %1284 }
0x1649   :  { %v1287_v60 = vsel %vm268_vm2, %v1964_v42, %v1285_v40 }
0x164a   :  { %v1310_v3 = vsel %vm1304_vm4, %v1287_v60, %v1291_v63 }
0x164b   :  { %v1311_v6 = vsel %vm1306_vm6, %v1310_v3, %v1295_v33 }
0x164c   :  { %v1277_v49 = vpop.permute.xlu0 %1276 }
0x164d   :  { %v1279_v57 = vsel %vm268_vm2, %v1917_v13, %v1277_v49 }
0x164e   :  { %v1307_v2 = vsel %vm1306_vm6, %v1305_v61, %v1279_v57 }
0x1650   :  { %v1281_v62 = vpop.permute.xlu0 %1280 }
0x1651   :  { %v1283_v54 = vsel %vm268_vm2, %v1941_v58, %v1281_v62 }
0x1652   :  { %v1309_v4 = vsel %vm1308_vm5, %v1307_v2, %v1283_v54 }
0x1653   :  { %1313 = vst.msk [vmem:[%s2074_s4] sm:$0xff] %vm47_vm1, %v1309_v4 }
0x1654   :  { %v1301_v13 = vpop.permute.xlu0 %1300 }
0x1655   :  { %v1303_v42 = vsel %vm268_vm2, %v1298_v56, %v1301_v13 }
0x1656   :  { %v1312_v7 = vsel %vm1308_vm5, %v1311_v6, %v1303_v42 }
0x1657   :  { %1314 = vst.msk [vmem:[%s2074_s4 + $0x8] sm:$0xff] %vm47_vm1, %v1312_v7 }
0x1658   :  { %v1330_v58 = vpop.permute.xlu0 %1329 }
0x1659   :  { %1335 = vst.msk [vmem:[%s2076_s6 - $0x6] sm:$0xc0] %vm1321_vm3, %v1330_v58 }
0x16b3   :  { %v1319_v24 = vpop.permute.xlu1 %1318 }
0x16b4   :  { %1323 = vst.msk [vmem:[%s2075_s5 - $0x4] sm:$0xc0] %vm1321_vm3, %v1319_v24 }
0x16b7   :  { %v1332_v5 = vpop.permute.xlu1 %1331 }
0x16b8   :  { %1336 = vst.msk [vmem:[%s2076_s6 - $0x4] sm:$0xc0] %vm1321_vm3, %v1332_v5 }
0x16b9   :  { %1349 = vsyncpa [#allocation3], 1 }

// kernel: contextual_encoder_forward.4
= control target key start
LH: loop header
LB: loop body
LE: loop exit
PB: predicated region body
PF: predicated region fallthrough
CT: control target
= control target key end

     0   :  { %v1699_v0 = vmov 0.0|0.0   ;;  %vm1700_vm0 = vmmov 0   ;;  %v1701_v4 = vmov 0.0   ;;  %vm33_vm1 = vcmask 261120   ;;  %s1702_s16 = smov 80   ;;  %s1704_s17 = smov 48   ;;  %s2025_s1 = inlined_call_operand.vmem [shape: f32[32,128], index: 1, kind: input, shape index: {}]   ;;  %s2026_s2 = inlined_call_operand.vmem [shape: f32[32,128], index: 2, kind: input, shape index: {}]   ;;  %s2027_s0 = inlined_call_operand.vmem [shape: f32[16,32], index: 0, kind: input, shape index: {}]   ;;  %s2028_s3 = inlined_call_operand.vmem [shape: f32[1,128], index: 3, kind: input, shape index: {}]   ;;  %s2029_s5 = inlined_call_operand.vmem [shape: f32[2,2,16], index: 5, kind: output, shape index: {1}]   ;;  %s2030_s4 = inlined_call_operand.vmem [shape: f32[16,32], index: 4, kind: output, shape index: {0}]   ;;  %s2031_s6 = inlined_call_operand.vmem [shape: f32[2,2,16], index: 6, kind: output, shape index: {2}]  }
   0x1   :  { %1514 = vmatprep.subr.bf16.mxu1 %v1699_v0  ;;  %v22_v1 = vld [vmem:[%s2025_s1] sm:$0xff]  ;;  %v23_v2 = vld [vmem:[%s2025_s1 + $0x8] sm:$0xff]  ;;  %1426 = vmatprep.mubr.msk.f32.mxu1 %vm1700_vm0, %v1701_v4  ;;  %v24_v7 = vld [vmem:[%s2025_s1 + $0x10] sm:$0xff]  ;;  %s1705_s18 = smov 96   ;;  %vm254_vm2 = vcmask 130048   ;;  %s1706_s19 = smov 64  }
   0x2   :  { %v115_v3 = vld [vmem:[%s2026_s2] sm:$0xff]  ;;  %v1506_v5 = vpack.c.bf16 %v23_v2, %v22_v1  ;;  %v116_v6 = vld [vmem:[%s2026_s2 + $0x8] sm:$0xff]  ;;  %v25_v8 = vld [vmem:[%s2025_s1 + $0x18] sm:$0xff]  ;;  %s1707_s20 = smov 112   ;;  %vm1307_vm3 = vcmask 130054   ;;  %vm1290_vm4 = vcmask 1041408  }
   0x3   :  { %v1764_v9 = vpack.c.bf16 %v116_v6, %v115_v3  ;;  %v1510_v10 = vpack.c.bf16 %v25_v8, %v24_v7  ;;  %v117_v11 = vld [vmem:[%s2026_s2 + $0x10] sm:$0xff]  ;;  %v118_v12 = vld [vmem:[%s2026_s2 + $0x18] sm:$0xff]  ;;  %v20_v13 = vld [vmem:[%s2027_s0] sm:$0xff]  ;;  %vm1294_vm5 = vcmask 1045504   ;;  %vm1292_vm6 = vcmask 1043456  }
   0x4   :  { %1507 = vmatprep.subr.bf16.mxu0 %v1506_v5  ;;  %1415 = vmatprep.mubr.msk.f32.mxu0 %vm33_vm1, %v20_v13  ;;  %v1777_v14 = vpack.c.bf16 %v118_v12, %v117_v11  ;;  %v21_v15 = vld [vmem:[%s2027_s0 + $0x8] sm:$0xff]  ;;  %v1335_v16 = vld [vmem:[%s2028_s3] ss:$0 sm:$0xff]  ;;  %s1703_s3 = smov 16  }
   0x5   :  { %1516 = vmatpush3.bf16.msra.mxu1 %v1764_v9  ;;  %1509 = vmatpush3.bf16.msra.mxu0 %v1506_v5 }
   0x6   :  { %1517 = vmatprep.subr.bf16.mxu1 %v1699_v0  ;;  %1511 = vmatprep.subr.bf16.mxu0 %v1510_v10 }
   0x9   :  { %1519 = vmatpush3.bf16.msra.mxu1 %v1777_v14  ;;  %1513 = vmatpush3.bf16.msra.mxu0 %v1510_v10 }
   0xa   :  { %1520 = vmatprep.subr.bf16.mxu0 %v1699_v0  ;;  %1526 = vmatprep.subr.bf16.mxu1 %v1699_v0 }
   0xc   :  { %1427 = vmatmul.mubr.f32.vlgmr.msra.gmra.mrb[0].mxu1 %v1701_v4  ;;  %1416 = vmatmul.mubr.msk.f32.vlgmr.msra.gmra.mrb[0].mxu0 %vm33_vm1, %v21_v15 }
   0xd   :  { %1522 = vmatpush3.bf16.msra.mxu0 %v1764_v9  ;;  %1437 = vmatprep.mubr.msk.f32.mxu0 %vm1700_vm0, %v1701_v4 }
   0xe   :  { %1523 = vmatprep.subr.bf16.mxu0 %v1699_v0  ;;  %1528 = vmatpush3.bf16.msra.mxu1 %v1764_v9 }
   0xf   :  { %1529 = vmatprep.subr.bf16.mxu1 %v1699_v0  ;;  %1448 = vmatprep.mubr.msk.f32.mxu1 %vm1700_vm0, %v1701_v4 }
  0x11   :  { %1525 = vmatpush3.bf16.msra.mxu0 %v1777_v14 }
  0x12   :  { %1531 = vmatpush3.bf16.msra.mxu1 %v1777_v14  ;;  %1532 = vmatprep.subr.bf16.mxu0 %v1699_v0 }
  0x13   :  { %1538 = vmatprep.subr.bf16.mxu1 %v1699_v0 }
  0xdf   :  { %v188_v17 = vpop.f32.mrb[0].mxu1  ;;  %v1417_v18 = vpop.f32.mrb[0].mxu0 }
  0xe0   :  { %v194_v19 = vrot.slane %v188_v17, 2  ;;  %v1803_v20 = vadd.f32 %v1417_v18, %v1335_v16  ;;  %v1428_v21 = vpop.f32.mrb[1].mxu1  ;;  %v106_v22 = vpop.f32.mrb[1].mxu0 }
  0xe1   :  { %v1805_v23 = vadd.f32 %v1335_v16, %v106_v22 }
  0xe2   :  { %v196_v24 = vadd.f32 %v194_v19, %v1803_v20 }
  0xe3   :  { %v192_v25 = vadd.f32 %v188_v17, %v1805_v23 }
  0xe4   :  { %1571 = vtanh.f32 %v196_v24  ;;  %v1339_v28 = vmul.f32 -1.442695, %v196_v24 }
  0xe5   :  { %1573 = vtanh.f32 %v192_v25  ;;  %v1338_v29 = vmul.f32 -1.442695, %v192_v25 }
  0xe6   :  { %1575 = vpow2.f32 %v1339_v28 }
  0xe7   :  { %1577 = vpow2.f32 %v1338_v29 }
  0xee   :  { %v1572_v26 = vpop.eup %1571 }
  0xef   :  { %230 = vrot.lane.b32.xlu0 %v1572_v26, %s1702_s16  ;;  %v1574_v27 = vpop.eup %1573 }
  0xf0   :  { %v1576_v30 = vpop.eup %1575 }
  0xf1   :  { %v224_v31 = vadd.f32 1.0, %v1576_v30  ;;  %v1578_v32 = vpop.eup %1577 }
  0xf2   :  { %v200_v33 = vadd.f32 1.0, %v1578_v32 }
  0xf3   :  { %206 = vrot.lane.b32.xlu0 %v1574_v27, %s1702_s16  ;;  %1579 = vrcp.f32 %v224_v31 }
  0xf4   :  { %1581 = vrcp.f32 %v200_v33 }
  0xfd   :  { %v1580_v34 = vpop.eup %1579 }
  0xfe   :  { %v1582_v37 = vpop.eup %1581  ;;  %v228_v40 = vmul.f32 0.0, %v1580_v34 }
  0xff   :  { %v204_v43 = vmul.f32 0.0, %v1582_v37 }
 0x161   :  { %v231_v35 = vpop.permute.xlu0 %230 }
 0x162   :  { %v233_v36 = vmul.f32 %v1580_v34, %v231_v35 }
 0x164   :  { %235 = vrot.lane.b32.xlu1 %v233_v36, %s1703_s3 }
 0x165   :  { %v207_v38 = vpop.permute.xlu0 %206 }
 0x166   :  { %v209_v39 = vmul.f32 %v1582_v37, %v207_v38 }
 0x168   :  { %211 = vrot.lane.b32.xlu1 %v209_v39, %s1703_s3 }
 0x1d6   :  { %v236_v41 = vpop.permute.xlu1 %235 }
 0x1d7   :  { %v1813_v42 = vadd.f32 %v236_v41, %v228_v40 }
 0x1d9   :  { %1583 = vtanh.f32 %v1813_v42  ;;  %v371_v17 = vrot.slane %v1813_v42, 2 }
 0x1da   :  { %v212_v44 = vpop.permute.xlu1 %211 }
 0x1db   :  { %v214_v45 = vadd.f32 %v212_v44, %v204_v43 }
 0x1dd   :  { %1585 = vtanh.f32 %v214_v45  ;;  %v344_v16 = vrot.slane %v214_v45, 6 }
 0x1e3   :  { %v1584_v46 = vpop.eup %1583 }
 0x1e4   :  { %241 = vrot.lane.b32.xlu0 %v1584_v46, %s1703_s3 }
 0x1e7   :  { %v1586_v47 = vpop.eup %1585 }
 0x1e8   :  { %217 = vrot.lane.b32.xlu1 %v1586_v47, %s1703_s3 }
 0x256   :  { %v242_v48 = vpop.permute.xlu0 %241 }
 0x257   :  { %v1818_v49 = vmul.f32 %v1580_v34, %v242_v48 }
 0x259   :  { %v250_v50 = vrot.slane %v1818_v49, 6 }
 0x25a   :  { %v218_v51 = vpop.permute.xlu1 %217 }
 0x25b   :  { %v220_v52 = vmul.f32 %v1582_v37, %v218_v51  ;;  %251 = vrot.lane.b32.xlu1 %v250_v50, %s1704_s17 }
 0x25d   :  { %246 = vrot.lane.b32.xlu0 %v220_v52, %s1705_s18 }
 0x2cd   :  { %v252_v53 = vpop.permute.xlu1 %251 }
 0x2cf   :  { %v1823_v54 = vpop.permute.xlu0 %246 }
 0x2d0   :  { %v255_v55 = vsel %vm254_vm2, %v1823_v54, %v252_v53 }
 0x2d1   :  { %1438 = vmatmul.mubr.msk.f32.vlgmr.msra.gmra.mrb[2].mxu0 %vm33_vm1, %v255_v55 }
 0x2d2   :  { %1534 = vmatpush3.bf16.msra.mxu0 %v1764_v9  ;;  %1459 = vmatprep.mubr.msk.f32.mxu0 %vm1700_vm0, %v1701_v4 }
 0x2d3   :  { %1535 = vmatprep.subr.bf16.mxu0 %v1699_v0 }
 0x2d6   :  { %1537 = vmatpush3.bf16.msra.mxu0 %v1777_v14 }
 0x2d7   :  { %1544 = vmatprep.subr.bf16.mxu0 %v1699_v0 }
 0x3a4   :  { %v325_v56 = vpop.f32.mrb[2].mxu0 }
 0x3a5   :  { %v330_v57 = vrot.slane %v325_v56, 6  ;;  %v333_v58 = vrot.slane %v325_v56, 4  ;;  %v1439_v59 = vpop.f32.mrb[3].mxu0 }
 0x3a7   :  { %v332_v60 = vadd.f32 %v330_v57, %v1805_v23  ;;  %v335_v61 = vadd.f32 %v333_v58, %v1803_v20 }
 0x3a9   :  { %1587 = vtanh.f32 %v332_v60  ;;  %v1341_v1 = vmul.f32 -1.442695, %v332_v60  ;;  %v1342_v2 = vmul.f32 -1.442695, %v335_v61 }
 0x3aa   :  { %1589 = vtanh.f32 %v335_v61 }
 0x3ab   :  { %1591 = vpow2.f32 %v1341_v1 }
 0x3ac   :  { %1593 = vpow2.f32 %v1342_v2 }
 0x3b3   :  { %v1588_v62 = vpop.eup %1587 }
 0x3b4   :  { %v1590_v63 = vpop.eup %1589  ;;  %348 = vrot.lane.b32.xlu1 %v1588_v62, %s1702_s16 }
 0x3b5   :  { %375 = vrot.lane.b32.xlu0 %v1590_v63, %s1702_s16  ;;  %v1592_v3 = vpop.eup %1591 }
 0x3b6   :  { %v1594_v5 = vpop.eup %1593  ;;  %v339_v6 = vadd.f32 1.0, %v1592_v3 }
 0x3b7   :  { %v366_v7 = vadd.f32 1.0, %v1594_v5 }
 0x3b8   :  { %1595 = vrcp.f32 %v339_v6 }
 0x3b9   :  { %1597 = vrcp.f32 %v366_v7 }
 0x3c2   :  { %v1596_v8 = vpop.eup %1595 }
 0x3c3   :  { %v1598_v11 = vpop.eup %1597  ;;  %v346_v18 = vmul.f32 %v1596_v8, %v344_v16 }
 0x3c4   :  { %v373_v19 = vmul.f32 %v1598_v11, %v371_v17 }
 0x426   :  { %v349_v10 = vpop.permute.xlu1 %348 }
 0x427   :  { %v376_v12 = vpop.permute.xlu0 %375  ;;  %v351_v13 = vmul.f32 %v1596_v8, %v349_v10 }
 0x428   :  { %v378_v15 = vmul.f32 %v1598_v11, %v376_v12 }
 0x429   :  { %353 = vrot.lane.b32.xlu1 %v351_v13, %s1703_s3 }
 0x42a   :  { %380 = vrot.lane.b32.xlu0 %v378_v15, %s1703_s3 }
 0x49b   :  { %v354_v21 = vpop.permute.xlu1 %353 }
 0x49c   :  { %v381_v22 = vpop.permute.xlu0 %380  ;;  %v356_v24 = vadd.f32 %v354_v21, %v346_v18 }
 0x49d   :  { %v383_v25 = vadd.f32 %v381_v22, %v373_v19 }
 0x49e   :  { %1599 = vtanh.f32 %v356_v24  ;;  %v489_v59 = vrot.slane %v356_v24, 6 }
 0x49f   :  { %1601 = vtanh.f32 %v383_v25  ;;  %v516_v60 = vrot.slane %v383_v25, 2 }
 0x4a8   :  { %v1600_v26 = vpop.eup %1599 }
 0x4a9   :  { %v1602_v27 = vpop.eup %1601  ;;  %359 = vrot.lane.b32.xlu1 %v1600_v26, %s1703_s3 }
 0x4aa   :  { %386 = vrot.lane.b32.xlu0 %v1602_v27, %s1703_s3 }
 0x51b   :  { %v360_v28 = vpop.permute.xlu1 %359 }
 0x51c   :  { %v387_v29 = vpop.permute.xlu0 %386  ;;  %v362_v30 = vmul.f32 %v1596_v8, %v360_v28 }
 0x51d   :  { %v1843_v31 = vmul.f32 %v1598_v11, %v387_v29 }
 0x51e   :  { %391 = vrot.lane.b32.xlu0 %v362_v30, %s1705_s18 }
 0x51f   :  { %v395_v32 = vrot.slane %v1843_v31, 2 }
 0x521   :  { %396 = vrot.lane.b32.xlu1 %v395_v32, %s1704_s17 }
 0x590   :  { %v1848_v33 = vpop.permute.xlu0 %391 }
 0x593   :  { %v397_v34 = vpop.permute.xlu1 %396 }
 0x594   :  { %v399_v35 = vsel %vm254_vm2, %v1848_v33, %v397_v34 }
 0x595   :  { %v401_v36 = vrot.slane %v399_v35, 2 }
 0x597   :  { %1449 = vmatmul.mubr.msk.f32.vlgmr.msra.gmra.mrb[2].mxu1 %vm33_vm1, %v401_v36 }
 0x598   :  { %1540 = vmatpush3.bf16.msra.mxu1 %v1764_v9  ;;  %1470 = vmatprep.mubr.msk.f32.mxu1 %vm1700_vm0, %v1701_v4 }
 0x599   :  { %1541 = vmatprep.subr.bf16.mxu1 %v1699_v0 }
 0x59c   :  { %1543 = vmatpush3.bf16.msra.mxu1 %v1777_v14 }
 0x59d   :  { %1550 = vmatprep.subr.bf16.mxu1 %v1699_v0 }
 0x66a   :  { %v470_v37 = vpop.f32.mrb[2].mxu1 }
 0x66b   :  { %v475_v38 = vrot.slane %v470_v37, 4  ;;  %v478_v39 = vrot.slane %v470_v37, 6  ;;  %v1450_v40 = vpop.f32.mrb[3].mxu1 }
 0x66d   :  { %v477_v41 = vadd.f32 %v475_v38, %v1805_v23  ;;  %v480_v42 = vadd.f32 %v478_v39, %v1803_v20 }
 0x66f   :  { %1603 = vtanh.f32 %v477_v41  ;;  %v1344_v45 = vmul.f32 -1.442695, %v477_v41  ;;  %v1345_v46 = vmul.f32 -1.442695, %v480_v42 }
 0x670   :  { %1605 = vtanh.f32 %v480_v42 }
 0x671   :  { %1607 = vpow2.f32 %v1344_v45 }
 0x672   :  { %1609 = vpow2.f32 %v1345_v46 }
 0x679   :  { %v1604_v43 = vpop.eup %1603 }
 0x67a   :  { %v1606_v44 = vpop.eup %1605  ;;  %493 = vrot.lane.b32.xlu1 %v1604_v43, %s1702_s16 }
 0x67b   :  { %520 = vrot.lane.b32.xlu0 %v1606_v44, %s1702_s16  ;;  %v1608_v47 = vpop.eup %1607 }
 0x67c   :  { %v1610_v48 = vpop.eup %1609  ;;  %v484_v50 = vadd.f32 1.0, %v1608_v47 }
 0x67d   :  { %v511_v51 = vadd.f32 1.0, %v1610_v48 }
 0x67e   :  { %1611 = vrcp.f32 %v484_v50 }
 0x67f   :  { %1613 = vrcp.f32 %v511_v51 }
 0x688   :  { %v1612_v52 = vpop.eup %1611 }
 0x689   :  { %v1614_v55 = vpop.eup %1613  ;;  %v491_v61 = vmul.f32 %v1612_v52, %v489_v59 }
 0x68a   :  { %v518_v62 = vmul.f32 %v1614_v55, %v516_v60 }
 0x6ec   :  { %v494_v53 = vpop.permute.xlu1 %493 }
 0x6ed   :  { %v521_v56 = vpop.permute.xlu0 %520  ;;  %v496_v57 = vmul.f32 %v1612_v52, %v494_v53 }
 0x6ee   :  { %v523_v58 = vmul.f32 %v1614_v55, %v521_v56 }
 0x6ef   :  { %498 = vrot.lane.b32.xlu1 %v496_v57, %s1703_s3 }
 0x6f0   :  { %525 = vrot.lane.b32.xlu0 %v523_v58, %s1703_s3 }
 0x761   :  { %v499_v63 = vpop.permute.xlu1 %498 }
 0x762   :  { %v526_v1 = vpop.permute.xlu0 %525  ;;  %v501_v2 = vadd.f32 %v499_v63, %v491_v61 }
 0x763   :  { %v528_v3 = vadd.f32 %v526_v1, %v518_v62 }
 0x764   :  { %1615 = vtanh.f32 %v501_v2  ;;  %v632_v42 = vrot.slane %v501_v2, 6 }
 0x765   :  { %1617 = vtanh.f32 %v528_v3  ;;  %v659_v41 = vrot.slane %v528_v3, 2 }
 0x76e   :  { %v1616_v5 = vpop.eup %1615 }
 0x76f   :  { %v1618_v6 = vpop.eup %1617  ;;  %504 = vrot.lane.b32.xlu1 %v1616_v5, %s1703_s3 }
 0x770   :  { %531 = vrot.lane.b32.xlu0 %v1618_v6, %s1703_s3 }
 0x7e1   :  { %v505_v7 = vpop.permute.xlu1 %504 }
 0x7e2   :  { %v532_v8 = vpop.permute.xlu0 %531  ;;  %v507_v10 = vmul.f32 %v1612_v52, %v505_v7 }
 0x7e3   :  { %v1867_v11 = vmul.f32 %v1614_v55, %v532_v8 }
 0x7e4   :  { %536 = vrot.lane.b32.xlu0 %v507_v10, %s1705_s18 }
 0x7e5   :  { %v540_v12 = vrot.slane %v1867_v11, 6 }
 0x7e7   :  { %541 = vrot.lane.b32.xlu1 %v540_v12, %s1704_s17 }
 0x856   :  { %v1872_v13 = vpop.permute.xlu0 %536 }
 0x859   :  { %v542_v15 = vpop.permute.xlu1 %541 }
 0x85a   :  { %v544_v16 = vsel %vm254_vm2, %v1872_v13, %v542_v15 }
 0x85b   :  { %v546_v17 = vrot.slane %v544_v16, 4 }
 0x85d   :  { %1460 = vmatmul.mubr.msk.f32.vlgmr.msra.gmra.mrb[4].mxu0 %vm33_vm1, %v546_v17 }
 0x85e   :  { %1546 = vmatpush3.bf16.msra.mxu0 %v1764_v9  ;;  %1481 = vmatprep.mubr.msk.f32.mxu0 %vm1700_vm0, %v1701_v4 }
 0x85f   :  { %1547 = vmatprep.subr.bf16.mxu0 %v1699_v0 }
 0x862   :  { %1549 = vmatpush3.bf16.msra.mxu0 %v1777_v14 }
 0x863   :  { %1556 = vmatprep.subr.bf16.mxu0 %v1699_v0 }
 0x930   :  { %v615_v18 = vpop.f32.mrb[4].mxu0 }
 0x931   :  { %v620_v19 = vrot.slane %v615_v18, 2  ;;  %v623_v21 = vadd.f32 %v615_v18, %v1803_v20  ;;  %v1461_v22 = vpop.f32.mrb[5].mxu0 }
 0x933   :  { %v622_v24 = vadd.f32 %v620_v19, %v1805_v23  ;;  %1619 = vtanh.f32 %v623_v21  ;;  %v1348_v27 = vmul.f32 -1.442695, %v623_v21 }
 0x935   :  { %1621 = vtanh.f32 %v622_v24  ;;  %v1347_v28 = vmul.f32 -1.442695, %v622_v24 }
 0x936   :  { %1623 = vpow2.f32 %v1348_v27 }
 0x937   :  { %1625 = vpow2.f32 %v1347_v28 }
 0x93d   :  { %v1620_v25 = vpop.eup %1619 }
 0x93e   :  { %663 = vrot.lane.b32.xlu0 %v1620_v25, %s1702_s16 }
 0x93f   :  { %v1622_v26 = vpop.eup %1621 }
 0x940   :  { %636 = vrot.lane.b32.xlu1 %v1622_v26, %s1702_s16  ;;  %v1624_v29 = vpop.eup %1623 }
 0x941   :  { %v1626_v30 = vpop.eup %1625  ;;  %v654_v32 = vadd.f32 1.0, %v1624_v29 }
 0x942   :  { %v627_v34 = vadd.f32 1.0, %v1626_v30 }
 0x943   :  { %1627 = vrcp.f32 %v654_v32 }
 0x944   :  { %1629 = vrcp.f32 %v627_v34 }
 0x94d   :  { %v1628_v35 = vpop.eup %1627 }
 0x94e   :  { %v1630_v38 = vpop.eup %1629  ;;  %v661_v43 = vmul.f32 %v1628_v35, %v659_v41 }
 0x94f   :  { %v634_v46 = vmul.f32 %v1630_v38, %v632_v42 }
 0x9b0   :  { %v664_v36 = vpop.permute.xlu0 %663 }
 0x9b1   :  { %v666_v37 = vmul.f32 %v1628_v35, %v664_v36 }
 0x9b2   :  { %v637_v39 = vpop.permute.xlu1 %636 }
 0x9b3   :  { %v639_v40 = vmul.f32 %v1630_v38, %v637_v39  ;;  %668 = vrot.lane.b32.xlu0 %v666_v37, %s1703_s3 }
 0x9b5   :  { %641 = vrot.lane.b32.xlu1 %v639_v40, %s1703_s3 }
 0xa25   :  { %v669_v44 = vpop.permute.xlu0 %668 }
 0xa26   :  { %v671_v45 = vadd.f32 %v669_v44, %v661_v43 }
 0xa27   :  { %v642_v47 = vpop.permute.xlu1 %641 }
 0xa28   :  { %1631 = vtanh.f32 %v671_v45  ;;  %v644_v48 = vadd.f32 %v642_v47, %v634_v46  ;;  %v802_v27 = vrot.slane %v671_v45, 2 }
 0xa2a   :  { %1633 = vtanh.f32 %v644_v48  ;;  %v775_v25 = vrot.slane %v644_v48, 6 }
 0xa32   :  { %v1632_v50 = vpop.eup %1631 }
 0xa33   :  { %674 = vrot.lane.b32.xlu0 %v1632_v50, %s1703_s3 }
 0xa34   :  { %v1634_v51 = vpop.eup %1633 }
 0xa35   :  { %647 = vrot.lane.b32.xlu1 %v1634_v51, %s1703_s3 }
 0xaa5   :  { %v675_v52 = vpop.permute.xlu0 %674 }
 0xaa6   :  { %v1891_v53 = vmul.f32 %v1628_v35, %v675_v52 }
 0xaa7   :  { %v648_v55 = vpop.permute.xlu1 %647 }
 0xaa8   :  { %v683_v56 = vrot.slane %v1891_v53, 2  ;;  %v650_v57 = vmul.f32 %v1630_v38, %v648_v55 }
 0xaaa   :  { %684 = vrot.lane.b32.xlu1 %v683_v56, %s1704_s17  ;;  %679 = vrot.lane.b32.xlu0 %v650_v57, %s1705_s18 }
 0xb1c   :  { %v1896_v58 = vpop.permute.xlu0 %679  ;;  %v685_v59 = vpop.permute.xlu1 %684 }
 0xb1d   :  { %v687_v60 = vsel %vm254_vm2, %v1896_v58, %v685_v59 }
 0xb1e   :  { %v689_v61 = vrot.slane %v687_v60, 6 }
 0xb20   :  { %1471 = vmatmul.mubr.msk.f32.vlgmr.msra.gmra.mrb[4].mxu1 %vm33_vm1, %v689_v61 }
 0xb21   :  { %1552 = vmatpush3.bf16.msra.mxu1 %v1764_v9  ;;  %1492 = vmatprep.mubr.msk.f32.mxu1 %vm1700_vm0, %v1701_v4 }
 0xb22   :  { %1553 = vmatprep.subr.bf16.mxu1 %v1699_v0 }
 0xb25   :  { %1555 = vmatpush3.bf16.msra.mxu1 %v1777_v14 }
 0xbf3   :  { %v758_v62 = vpop.f32.mrb[4].mxu1 }
 0xbf4   :  { %v762_v63 = vadd.f32 %v758_v62, %v1803_v20  ;;  %v764_v1 = vrot.slane %v758_v62, 2  ;;  %v1472_v2 = vpop.f32.mrb[5].mxu1 }
 0xbf6   :  { %v766_v3 = vadd.f32 %v764_v1, %v1805_v23  ;;  %1635 = vtanh.f32 %v762_v63  ;;  %v1350_v7 = vmul.f32 -1.442695, %v762_v63 }
 0xbf8   :  { %1637 = vtanh.f32 %v766_v3  ;;  %v1351_v8 = vmul.f32 -1.442695, %v766_v3 }
 0xbf9   :  { %1639 = vpow2.f32 %v1350_v7 }
 0xbfa   :  { %1641 = vpow2.f32 %v1351_v8 }
 0xc00   :  { %v1636_v5 = vpop.eup %1635 }
 0xc01   :  { %779 = vrot.lane.b32.xlu1 %v1636_v5, %s1702_s16 }
 0xc02   :  { %v1638_v6 = vpop.eup %1637 }
 0xc03   :  { %806 = vrot.lane.b32.xlu0 %v1638_v6, %s1702_s16  ;;  %v1640_v10 = vpop.eup %1639 }
 0xc04   :  { %v1642_v12 = vpop.eup %1641  ;;  %v770_v15 = vadd.f32 1.0, %v1640_v10 }
 0xc05   :  { %v797_v16 = vadd.f32 1.0, %v1642_v12 }
 0xc06   :  { %1643 = vrcp.f32 %v770_v15 }
 0xc07   :  { %1645 = vrcp.f32 %v797_v16 }
 0xc10   :  { %v1644_v17 = vpop.eup %1643 }
 0xc11   :  { %v1646_v21 = vpop.eup %1645  ;;  %v777_v26 = vmul.f32 %v1644_v17, %v775_v25 }
 0xc12   :  { %v804_v30 = vmul.f32 %v1646_v21, %v802_v27 }
 0xc73   :  { %v780_v18 = vpop.permute.xlu1 %779 }
 0xc74   :  { %v782_v19 = vmul.f32 %v1644_v17, %v780_v18 }
 0xc75   :  { %v807_v22 = vpop.permute.xlu0 %806 }
 0xc76   :  { %784 = vrot.lane.b32.xlu1 %v782_v19, %s1703_s3  ;;  %v809_v24 = vmul.f32 %v1646_v21, %v807_v22 }
 0xc78   :  { %811 = vrot.lane.b32.xlu0 %v809_v24, %s1703_s3 }
 0xce8   :  { %v785_v28 = vpop.permute.xlu1 %784 }
 0xce9   :  { %v787_v29 = vadd.f32 %v785_v28, %v777_v26 }
 0xcea   :  { %v812_v32 = vpop.permute.xlu0 %811 }
 0xceb   :  { %1647 = vtanh.f32 %v787_v29  ;;  %v814_v34 = vadd.f32 %v812_v32, %v804_v30  ;;  %v919_v2 = vrot.slane %v787_v29, 6 }
 0xced   :  { %1649 = vtanh.f32 %v814_v34  ;;  %v946_v3 = vrot.slane %v814_v34, 2 }
 0xcf5   :  { %v1648_v35 = vpop.eup %1647 }
 0xcf6   :  { %790 = vrot.lane.b32.xlu1 %v1648_v35, %s1703_s3 }
 0xcf7   :  { %v1650_v36 = vpop.eup %1649 }
 0xcf8   :  { %817 = vrot.lane.b32.xlu0 %v1650_v36, %s1703_s3 }
 0xd68   :  { %v791_v37 = vpop.permute.xlu1 %790 }
 0xd69   :  { %v793_v38 = vmul.f32 %v1644_v17, %v791_v37 }
 0xd6a   :  { %v818_v39 = vpop.permute.xlu0 %817 }
 0xd6b   :  { %822 = vrot.lane.b32.xlu0 %v793_v38, %s1705_s18  ;;  %v1915_v40 = vmul.f32 %v1646_v21, %v818_v39 }
 0xd6d   :  { %v826_v41 = vrot.slane %v1915_v40, 6 }
 0xd6f   :  { %827 = vrot.lane.b32.xlu1 %v826_v41, %s1704_s17 }
 0xddd   :  { %v1919_v42 = vpop.permute.xlu0 %822 }
 0xde1   :  { %v828_v43 = vpop.permute.xlu1 %827 }
 0xde2   :  { %v830_v44 = vsel %vm254_vm2, %v1919_v42, %v828_v43 }
 0xde3   :  { %1482 = vmatmul.mubr.msk.f32.vlgmr.msra.gmra.mrb[6].mxu0 %vm33_vm1, %v830_v44 }
 0xde4   :  { %1558 = vmatpush3.bf16.msra.mxu0 %v1764_v9  ;;  %1503 = vmatprep.mubr.msk.f32.mxu0 %vm1700_vm0, %v1701_v4 }
 0xde5   :  { %1559 = vmatprep.subr.bf16.mxu0 %v1699_v0 }
 0xde8   :  { %1561 = vmatpush3.bf16.msra.mxu0 %v1777_v14 }
 0xeb6   :  { %v900_v45 = vpop.f32.mrb[6].mxu0 }
 0xeb7   :  { %v905_v46 = vrot.slane %v900_v45, 6  ;;  %v908_v47 = vrot.slane %v900_v45, 4  ;;  %v1483_v48 = vpop.f32.mrb[7].mxu0 }
 0xeb9   :  { %v907_v50 = vadd.f32 %v905_v46, %v1803_v20  ;;  %v910_v51 = vadd.f32 %v908_v47, %v1805_v23 }
 0xebb   :  { %1651 = vtanh.f32 %v907_v50  ;;  %v1353_v4 = vmul.f32 -1.442695, %v907_v50  ;;  %v1354_v0 = vmul.f32 -1.442695, %v910_v51 }
 0xebc   :  { %1653 = vtanh.f32 %v910_v51 }
 0xebd   :  { %1655 = vpow2.f32 %v1353_v4 }
 0xebe   :  { %1657 = vpow2.f32 %v1354_v0 }
 0xec5   :  { %v1652_v52 = vpop.eup %1651 }
 0xec6   :  { %v1654_v55 = vpop.eup %1653  ;;  %923 = vrot.lane.b32.xlu1 %v1652_v52, %s1702_s16 }
 0xec7   :  { %950 = vrot.lane.b32.xlu0 %v1654_v55, %s1702_s16  ;;  %v1656_v9 = vpop.eup %1655 }
 0xec8   :  { %v1658_v14 = vpop.eup %1657  ;;  %v914_v56 = vadd.f32 1.0, %v1656_v9 }
 0xec9   :  { %v941_v57 = vadd.f32 1.0, %v1658_v14 }
 0xeca   :  { %1659 = vrcp.f32 %v914_v56 }
 0xecb   :  { %1661 = vrcp.f32 %v941_v57 }
 0xed4   :  { %v1660_v59 = vpop.eup %1659 }
 0xed5   :  { %v1662_v61 = vpop.eup %1661  ;;  %v921_v5 = vmul.f32 %v1660_v59, %v919_v2 }
 0xed6   :  { %v948_v6 = vmul.f32 %v1662_v61, %v946_v3 }
 0xf38   :  { %v924_v60 = vpop.permute.xlu1 %923 }
 0xf39   :  { %v951_v62 = vpop.permute.xlu0 %950  ;;  %v926_v63 = vmul.f32 %v1660_v59, %v924_v60 }
 0xf3a   :  { %v953_v1 = vmul.f32 %v1662_v61, %v951_v62 }
 0xf3b   :  { %928 = vrot.lane.b32.xlu1 %v926_v63, %s1703_s3 }
 0xf3c   :  { %955 = vrot.lane.b32.xlu0 %v953_v1, %s1703_s3 }
 0xfad   :  { %v929_v7 = vpop.permute.xlu1 %928 }
 0xfae   :  { %v956_v8 = vpop.permute.xlu0 %955  ;;  %v931_v10 = vadd.f32 %v929_v7, %v921_v5 }
 0xfaf   :  { %v958_v12 = vadd.f32 %v956_v8, %v948_v6 }
 0xfb0   :  { %1663 = vtanh.f32 %v931_v10  ;;  %v1064_v55 = vrot.slane %v931_v10, 6 }
 0xfb1   :  { %1665 = vtanh.f32 %v958_v12  ;;  %v1091_v4 = vrot.slane %v958_v12, 2 }
 0xfba   :  { %v1664_v15 = vpop.eup %1663 }
 0xfbb   :  { %v1666_v16 = vpop.eup %1665  ;;  %934 = vrot.lane.b32.xlu1 %v1664_v15, %s1703_s3 }
 0xfbc   :  { %961 = vrot.lane.b32.xlu0 %v1666_v16, %s1703_s3 }
0x102d   :  { %v935_v17 = vpop.permute.xlu1 %934 }
0x102e   :  { %v962_v18 = vpop.permute.xlu0 %961  ;;  %v937_v19 = vmul.f32 %v1660_v59, %v935_v17 }
0x102f   :  { %v1937_v21 = vmul.f32 %v1662_v61, %v962_v18 }
0x1030   :  { %966 = vrot.lane.b32.xlu0 %v937_v19, %s1705_s18 }
0x1031   :  { %v970_v22 = vrot.slane %v1937_v21, 2 }
0x1033   :  { %971 = vrot.lane.b32.xlu1 %v970_v22, %s1704_s17 }
0x10a2   :  { %v1942_v24 = vpop.permute.xlu0 %966 }
0x10a5   :  { %v972_v25 = vpop.permute.xlu1 %971 }
0x10a6   :  { %v974_v26 = vsel %vm254_vm2, %v1942_v24, %v972_v25 }
0x10a7   :  { %v976_v27 = vrot.slane %v974_v26, 2 }
0x10a9   :  { %1493 = vmatmul.mubr.msk.f32.vlgmr.msra.gmra.mrb[6].mxu1 %vm33_vm1, %v976_v27 }
0x117c   :  { %v1045_v28 = vpop.f32.mrb[6].mxu1 }
0x117d   :  { %v1050_v29 = vrot.slane %v1045_v28, 4  ;;  %v1053_v30 = vrot.slane %v1045_v28, 6  ;;  %v1494_v32 = vpop.f32.mrb[7].mxu1 }
0x117f   :  { %v1052_v34 = vadd.f32 %v1050_v29, %v1803_v20  ;;  %v1055_v35 = vadd.f32 %v1053_v30, %v1805_v23 }
0x1181   :  { %1667 = vtanh.f32 %v1052_v34  ;;  %v1356_v38 = vmul.f32 -1.442695, %v1052_v34  ;;  %v1357_v39 = vmul.f32 -1.442695, %v1055_v35 }
0x1182   :  { %1669 = vtanh.f32 %v1055_v35 }
0x1183   :  { %1671 = vpow2.f32 %v1356_v38 }
0x1184   :  { %1673 = vpow2.f32 %v1357_v39 }
0x118b   :  { %v1668_v36 = vpop.eup %1667 }
0x118c   :  { %v1670_v37 = vpop.eup %1669  ;;  %1068 = vrot.lane.b32.xlu1 %v1668_v36, %s1702_s16 }
0x118d   :  { %1095 = vrot.lane.b32.xlu0 %v1670_v37, %s1702_s16  ;;  %v1672_v41 = vpop.eup %1671 }
0x118e   :  { %v1674_v43 = vpop.eup %1673  ;;  %v1059_v44 = vadd.f32 1.0, %v1672_v41 }
0x118f   :  { %v1086_v45 = vadd.f32 1.0, %v1674_v43 }
0x1190   :  { %1675 = vrcp.f32 %v1059_v44 }
0x1191   :  { %1677 = vrcp.f32 %v1086_v45 }
0x119a   :  { %v1676_v46 = vpop.eup %1675 }
0x119b   :  { %v1678_v48 = vpop.eup %1677  ;;  %v1066_v0 = vmul.f32 %v1676_v46, %v1064_v55 }
0x119c   :  { %v1093_v9 = vmul.f32 %v1678_v48, %v1091_v4 }
0x11fe   :  { %v1069_v47 = vpop.permute.xlu1 %1068 }
0x11ff   :  { %v1096_v50 = vpop.permute.xlu0 %1095  ;;  %v1071_v51 = vmul.f32 %v1676_v46, %v1069_v47 }
0x1200   :  { %v1098_v52 = vmul.f32 %v1678_v48, %v1096_v50 }
0x1201   :  { %1073 = vrot.lane.b32.xlu1 %v1071_v51, %s1703_s3 }
0x1202   :  { %1100 = vrot.lane.b32.xlu0 %v1098_v52, %s1703_s3 }
0x1273   :  { %v1074_v14 = vpop.permute.xlu1 %1073 }
0x1274   :  { %v1101_v56 = vpop.permute.xlu0 %1100  ;;  %v1076_v57 = vadd.f32 %v1074_v14, %v1066_v0 }
0x1275   :  { %v1103_v59 = vadd.f32 %v1101_v56, %v1093_v9 }
0x1276   :  { %1679 = vtanh.f32 %v1076_v57  ;;  %v1207_v37 = vrot.slane %v1076_v57, 6 }
0x1277   :  { %1681 = vtanh.f32 %v1103_v59  ;;  %v1234_v36 = vrot.slane %v1103_v59, 2 }
0x1280   :  { %v1680_v60 = vpop.eup %1679 }
0x1281   :  { %v1682_v61 = vpop.eup %1681  ;;  %1079 = vrot.lane.b32.xlu1 %v1680_v60, %s1703_s3 }
0x1282   :  { %1106 = vrot.lane.b32.xlu0 %v1682_v61, %s1703_s3 }
0x12f3   :  { %v1080_v62 = vpop.permute.xlu1 %1079 }
0x12f4   :  { %v1107_v63 = vpop.permute.xlu0 %1106  ;;  %v1082_v1 = vmul.f32 %v1676_v46, %v1080_v62 }
0x12f5   :  { %v1109_v2 = vmul.f32 %v1678_v48, %v1107_v63 }
0x12f6   :  { %1111 = vrot.lane.b32.xlu0 %v1082_v1, %s1705_s18 }
0x12f7   :  { %v1115_v3 = vrot.slane %v1109_v2, 6 }
0x12f9   :  { %1116 = vrot.lane.b32.xlu1 %v1115_v3, %s1704_s17 }
0x1368   :  { %v1957_v5 = vpop.permute.xlu0 %1111 }
0x136b   :  { %v1117_v6 = vpop.permute.xlu1 %1116 }
0x136c   :  { %v1119_v7 = vsel %vm254_vm2, %v1957_v5, %v1117_v6 }
0x136d   :  { %v1121_v8 = vrot.slane %v1119_v7, 4 }
0x136f   :  { %1504 = vmatmul.mubr.msk.f32.vlgmr.msra.gmra.mrb[8].mxu0 %vm33_vm1, %v1121_v8 }
0x1442   :  { %v1190_v10 = vpop.f32.mrb[8].mxu0 }
0x1443   :  { %v1195_v12 = vrot.slane %v1190_v10, 2  ;;  %v1198_v15 = vadd.f32 %v1190_v10, %v1805_v23  ;;  %v1505_v16 = vpop.f32.mrb[9].mxu0 }
0x1445   :  { %v1197_v17 = vadd.f32 %v1195_v12, %v1803_v20  ;;  %1683 = vtanh.f32 %v1198_v15  ;;  %v1360_v22 = vmul.f32 -1.442695, %v1198_v15 }
0x1447   :  { %1685 = vtanh.f32 %v1197_v17  ;;  %v1359_v25 = vmul.f32 -1.442695, %v1197_v17 }
0x1448   :  { %1687 = vpow2.f32 %v1360_v22 }
0x1449   :  { %1689 = vpow2.f32 %v1359_v25 }
0x144f   :  { %v1684_v18 = vpop.eup %1683 }
0x1450   :  { %1238 = vrot.lane.b32.xlu0 %v1684_v18, %s1702_s16 }
0x1451   :  { %v1686_v19 = vpop.eup %1685 }
0x1452   :  { %1211 = vrot.lane.b32.xlu1 %v1686_v19, %s1702_s16  ;;  %v1688_v26 = vpop.eup %1687 }
0x1453   :  { %v1690_v27 = vpop.eup %1689  ;;  %v1229_v28 = vadd.f32 1.0, %v1688_v26 }
0x1454   :  { %v1202_v29 = vadd.f32 1.0, %v1690_v27 }
0x1455   :  { %1691 = vrcp.f32 %v1229_v28 }
0x1456   :  { %1693 = vrcp.f32 %v1202_v29 }
0x145f   :  { %v1692_v23 = vpop.eup %1691 }
0x1460   :  { %v1694_v32 = vpop.eup %1693  ;;  %v1236_v38 = vmul.f32 %v1692_v23, %v1234_v36 }
0x1461   :  { %v1209_v43 = vmul.f32 %v1694_v32, %v1207_v37 }
0x14c2   :  { %v1239_v20 = vpop.permute.xlu0 %1238 }
0x14c3   :  { %v1241_v30 = vmul.f32 %v1692_v23, %v1239_v20 }
0x14c4   :  { %v1212_v34 = vpop.permute.xlu1 %1211 }
0x14c5   :  { %v1214_v35 = vmul.f32 %v1694_v32, %v1212_v34  ;;  %1243 = vrot.lane.b32.xlu0 %v1241_v30, %s1703_s3 }
0x14c7   :  { %1216 = vrot.lane.b32.xlu1 %v1214_v35, %s1703_s3 }
0x1537   :  { %v1244_v39 = vpop.permute.xlu0 %1243 }
0x1538   :  { %v1246_v41 = vadd.f32 %v1244_v39, %v1236_v38 }
0x1539   :  { %v1217_v44 = vpop.permute.xlu1 %1216 }
0x153a   :  { %1695 = vtanh.f32 %v1246_v41  ;;  %v1219_v45 = vadd.f32 %v1217_v44, %v1209_v43  ;;  %v1311_v48 = vrot.slane %v1246_v41, 2 }
0x153c   :  { %1697 = vtanh.f32 %v1219_v45 }
0x1544   :  { %v1696_v46 = vpop.eup %1695 }
0x1545   :  { %1249 = vrot.lane.b32.xlu0 %v1696_v46, %s1703_s3 }
0x1546   :  { %v1698_v47 = vpop.eup %1697 }
0x1547   :  { %1222 = vrot.lane.b32.xlu1 %v1698_v47, %s1703_s3 }
0x154b   :  { %1312 = vrot.lane.b32.xlu1 %v1311_v48, %s1706_s19 }
0x154f   :  { %1258 = vrot.lane.b32.xlu1 %v1109_v2, %s1704_s17 }
0x1553   :  { %1274 = vrot.lane.b32.xlu1 %v1867_v11, %s1704_s17 }
0x1557   :  { %1278 = vrot.lane.b32.xlu1 %v1843_v31, %s1704_s17 }
0x15b7   :  { %v1250_v50 = vpop.permute.xlu0 %1249 }
0x15b8   :  { %v1252_v51 = vmul.f32 %v1692_v23, %v1250_v50 }
0x15b9   :  { %v1223_v52 = vpop.permute.xlu1 %1222 }
0x15ba   :  { %v1301_v55 = vrot.slane %v1252_v51, 2  ;;  %v1225_v4 = vmul.f32 %v1694_v32, %v1223_v52 }
0x15bc   :  { %1302 = vrot.lane.b32.xlu0 %v1301_v55, %s1706_s19  ;;  %1283 = vrot.lane.b32.xlu1 %v1225_v4, %s1705_s18 }
0x15bd   :  { %v1313_v31 = vpop.permute.xlu1 %1312 }
0x15c0   :  { %1254 = vrot.lane.b32.xlu0 %v1252_v51, %s1704_s17 }
0x15c1   :  { %v1259_v11 = vpop.permute.xlu1 %1258 }
0x15c2   :  { %v1261_v59 = vsel %vm254_vm2, %v1848_v33, %v1259_v11 }
0x15c4   :  { %1270 = vrot.lane.b32.xlu0 %v1891_v53, %s1704_s17 }
0x15c5   :  { %v1275_v0 = vpop.permute.xlu1 %1274 }
0x15c6   :  { %v1277_v63 = vsel %vm254_vm2, %v1942_v24, %v1275_v0 }
0x15c8   :  { %1262 = vrot.lane.b32.xlu0 %v1937_v21, %s1704_s17 }
0x15c9   :  { %v1279_v9 = vpop.permute.xlu1 %1278 }
0x15ca   :  { %v1281_v33 = vsel %vm254_vm2, %v1957_v5, %v1279_v9 }
0x15cc   :  { %1266 = vrot.lane.b32.xlu0 %v1915_v40, %s1704_s17 }
0x15d0   :  { %1286 = vrot.lane.b32.xlu0 %v1818_v49, %s1704_s17 }
0x15d4   :  { %1315 = vrot.lane.b32.xlu0 %v1219_v45, %s1707_s20 }
0x162e   :  { %v1303_v14 = vpop.permute.xlu0 %1302  ;;  %v1284_v56 = vpop.permute.xlu1 %1283 }
0x162f   :  { %1308 = vst.msk [vmem:[%s2029_s5 - $0x6] sm:$0xc0] %vm1307_vm3, %v1284_v56  ;;  %1304 = vrot.lane.b32.xlu1 %v1303_v14, %s1705_s18 }
0x1632   :  { %v1255_v53 = vpop.permute.xlu0 %1254 }
0x1633   :  { %1317 = vrot.lane.b32.xlu1 %v1313_v31, %s1707_s20  ;;  %v1257_v21 = vsel %vm254_vm2, %v1823_v54, %v1255_v53 }
0x1634   :  { %v1291_v61 = vsel %vm1290_vm4, %v1257_v21, %v1261_v59 }
0x1636   :  { %v1271_v40 = vpop.permute.xlu0 %1270 }
0x1637   :  { %v1273_v60 = vsel %vm254_vm2, %v1919_v42, %v1271_v40 }
0x1638   :  { %v1296_v2 = vsel %vm1290_vm4, %v1273_v60, %v1277_v63 }
0x1639   :  { %v1297_v6 = vsel %vm1292_vm6, %v1296_v2, %v1281_v33 }
0x163a   :  { %v1263_v49 = vpop.permute.xlu0 %1262 }
0x163b   :  { %v1265_v57 = vsel %vm254_vm2, %v1872_v13, %v1263_v49 }
0x163c   :  { %v1293_v1 = vsel %vm1292_vm6, %v1291_v61, %v1265_v57 }
0x163e   :  { %v1267_v62 = vpop.permute.xlu0 %1266 }
0x163f   :  { %v1269_v54 = vsel %vm254_vm2, %v1896_v58, %v1267_v62 }
0x1640   :  { %v1295_v3 = vsel %vm1294_vm5, %v1293_v1, %v1269_v54 }
0x1641   :  { %1299 = vst.msk [vmem:[%s2030_s4] sm:$0xff] %vm33_vm1, %v1295_v3 }
0x1642   :  { %v1287_v13 = vpop.permute.xlu0 %1286 }
0x1643   :  { %v1289_v42 = vsel %vm254_vm2, %v1284_v56, %v1287_v13 }
0x1644   :  { %v1298_v7 = vsel %vm1294_vm5, %v1297_v6, %v1289_v42 }
0x1645   :  { %1300 = vst.msk [vmem:[%s2030_s4 + $0x8] sm:$0xff] %vm33_vm1, %v1298_v7 }
0x1646   :  { %v1316_v58 = vpop.permute.xlu0 %1315 }
0x1647   :  { %1321 = vst.msk [vmem:[%s2031_s6 - $0x6] sm:$0xc0] %vm1307_vm3, %v1316_v58 }
0x16a1   :  { %v1305_v24 = vpop.permute.xlu1 %1304 }
0x16a2   :  { %1309 = vst.msk [vmem:[%s2029_s5 - $0x4] sm:$0xc0] %vm1307_vm3, %v1305_v24 }
0x16a5   :  { %v1318_v5 = vpop.permute.xlu1 %1317 }
0x16a6   :  { %1322 = vst.msk [vmem:[%s2031_s6 - $0x4] sm:$0xc0] %vm1307_vm3, %v1318_v5 }

// kernel: contextual_encoder_forward.5
= control target key start
LH: loop header
LB: loop body
LE: loop exit
PB: predicated region body
PF: predicated region fallthrough
CT: control target
= control target key end

     0   :  { %s2249_s21 = smov 0   ;;  %s2474_s0 = inlined_call_operand.vmem [shape: f32[8,2,32], index: 0, kind: input, shape index: {}]   ;;  %s2475_s1 = inlined_call_operand.vmem [shape: f32[32,96], index: 1, kind: input, shape index: {}]   ;;  %s2476_s2 = inlined_call_operand.vmem [shape: f32[1,96], index: 2, kind: input, shape index: {}]   ;;  %s2477_s3 = inlined_call_operand.vmem [shape: f32[32,32], index: 3, kind: input, shape index: {}]   ;;  %s2478_s4 = inlined_call_operand.vmem [shape: f32[1,32], index: 4, kind: input, shape index: {}]   ;;  %s2479_s5 = inlined_call_operand.vmem [shape: f32[8,2,32], index: 5, kind: output, shape index: {0}]   ;;  %s2480_s6 = inlined_call_operand.vmem [shape: f32[8,2,2], index: 6, kind: output, shape index: {1}]  }
   0x1 LB: > { %s1898_s22 = sadd.s32 4294967295, %s2179_s21   ;;  %p1902_p0 = scmp.ge.s32.totalorder %s2179_s21, 1  ;;  %s2179_s21 = sphi %s2249_s21, %s17_s21  }
   0x2   : > { %p214_p1 = scmp.lt.s32.totalorder %s2179_s21, 9 }
   0x4   : > { %p215_p2 = pnand %p1902_p0, %p214_p1 }
   0x5   : > { %v259_v0 = vld [vmem:[%s2475_s1] sm:$0xff] (!%p215_p2)  ;;  %v260_v1 = vld [vmem:[%s2475_s1 + $0x8] sm:$0xff] (!%p215_p2)  ;;  %v261_v2 = vld [vmem:[%s2475_s1 + $0x10] sm:$0xff] (!%p215_p2)  ;;  %v2181_v3 = vmov (!%p215_p2), 0.0|0.0   ;;  %vm2182_vm0 = vmmov (!%p215_p2), 0   ;;  %v2183_v6 = vmov (!%p215_p2), 0.0  }
   0x6   : > { %218 = sbr.rel (%p215_p2) target bundleno = 1988 (0x7c4), region = 40  ;;  %2088 = vmatprep.subr.bf16.mxu0 (!%p215_p2), %v2181_v3  ;;  %v2089_v4 = vpack.c.bf16 (!%p215_p2), %v260_v1, %v259_v0  ;;  %v262_v5 = vld [vmem:[%s2475_s1 + $0x18] sm:$0xff] (!%p215_p2)  ;;  %1994 = vmatprep.mubr.msk.f32.mxu0 (!%p215_p2), %vm2182_vm0, %v2183_v6  ;;  %p246_p3 = scmp.lt.s32.totalorder (!%p215_p2), %s1898_s22, 7  ;;  %vm270_vm1 = vcmask (!%p215_p2), 261120   ;;  %v1906_v9 = vld [vmem:[%s2476_s2] ss:$0 sm:$0xff] (!%p215_p2) }
   0x7   : > { %1997 = vmatprep.subr.mxu1 (!%p215_p2), %v2183_v6  ;;  %1999 = vmatprep.mubr.msk.f32.mxu1 (!%p215_p2), %vm2182_vm0, %v2183_v6  ;;  %v2092_v7 = vpack.c.bf16 (!%p215_p2), %v262_v5, %v261_v2  ;;  %s2184_s13 = smov (!%p215_p2), 64   ;;  %s2185_s14 = smov (!%p215_p2), 96   ;;  %vm348_vm2 = vcmask (!%p215_p2), 31744   ;;  %vm442_vm3 = vcmask (!%p215_p2), 1041408   ;;  %vm424_vm4 = vcmask (!%p215_p2), 9216  }
   0x8   : > { %2090 = vmatpush3.bf16.msra.mxu0 (!%p215_p2), %v2089_v4  ;;  %s2186_s15 = smov (!%p215_p2), 92   ;;  %s2187_s16 = smov (!%p215_p2), 124   ;;  %vm438_vm5 = vcmask (!%p215_p2), 15360   ;;  %vm1714_vm6 = vcmask (!%p215_p2), 64512   ;;  %vm1716_vm7 = vcmask (!%p215_p2), 97280   ;;  %vm1718_vm8 = vcmask (!%p215_p2), 130048  }
   0x9   : > { %2091 = vmatprep.subr.bf16.mxu0 (!%p215_p2), %v2181_v3  ;;  %s2188_s17 = smov (!%p215_p2), 88   ;;  %s2189_s18 = smov (!%p215_p2), 120   ;;  %vm1720_vm9 = vcmask (!%p215_p2), 162816   ;;  %vm1722_vm10 = vcmask (!%p215_p2), 195584   ;;  %vm1724_vm11 = vcmask (!%p215_p2), 228352   ;;  %vm1810_vm12 = vcmask (!%p215_p2), 254976  }
   0xa   : > { %s2190_s19 = smov (!%p215_p2), 116   ;;  %s2191_s20 = smov (!%p215_p2), 84  }
   0xb   : > { %s2193_s23 = smov (!%p215_p2), 68   ;;  %s2194_s24 = smov (!%p215_p2), 80  }
   0xc   : > { %2093 = vmatpush3.bf16.msra.mxu0 (!%p215_p2), %v2092_v7  ;;  %s2195_s25 = smov (!%p215_p2), 112   ;;  %s2196_s26 = smov (!%p215_p2), 76  }
   0xd   : > { %s2482_s22 = smov (!%p246_p3, %s1898_s22), 7  ;;  %2017 = vmatprep.subr.mxu0 %v2183_v6  ;;  %s2197_s27 = smov 108  }
   0xe   : > { %s2276_s7 = sshll.u32 %s2482_s22, 1  ;;  %s2192_s22 = smov 72  }
   0xf   : > { %s249_s10 = scalar_lea.vmem %s2474_s0, %s2276_s7  ;;  %s2198_s28 = smov 104  }
  0x10   : > { %v258_v8 = vld [vmem:[%s249_s10] sm:$0x3]  ;;  %s2199_s29 = smov 100   ;;  %s2200_s30 = smov 60  }
  0x11   : > { %1995 = vmatmul.mubr.msk.f32.vlgmr.msra.gmra.mrb[0].mxu0 %vm270_vm1, %v258_v8  ;;  %s2201_s8 = smov 52   ;;  %s2202_s9 = smov 48  }
  0x12   : > { %2019 = vmatprep.mubr.msk.f32.mxu0 %vm2182_vm0, %v2183_v6  ;;  %s2203_s10 = smov 56   ;;  %s2204_s11 = smov 40  }
  0x13   : > { %s2205_s12 = smov 44  }
  0xe4   : > { %v340_v10 = vpop.f32.mrb[0].mxu0 }
  0xe5   : > { %v2289_v11 = vadd.f32 %v1906_v9, %v340_v10  ;;  %v1996_v12 = vpop.f32.mrb[1].mxu0 }
  0xe7   : > { %436 = vrot.lane.b32.xlu1 %v2289_v11, %s2184_s13  ;;  %346 = vrot.lane.b32.xlu0 %v2289_v11, %s2185_s14  ;;  %v2295_v13 = vmul.f32 0.5, %v2289_v11  ;;  %s2206_s13 = smov 36   ;;  %s253_s14 = scalar_lea.vmem %s2479_s5, %s2276_s7 }
  0xeb   : > { %518 = vrot.lane.b32.xlu1 %v2289_v11, %s2186_s15 }
  0xef   : > { %516 = vrot.lane.b32.xlu1 %v2295_v13, %s2187_s16  ;;  %s257_s16 = scalar_lea.vmem %s2480_s6, %s2276_s7 }
  0xf3   : > { %685 = vrot.lane.b32.xlu1 %v2289_v11, %s2188_s17  ;;  %s2207_s17 = smov 4  }
  0xf7   : > { %683 = vrot.lane.b32.xlu1 %v2295_v13, %s2189_s18 }
  0xfb   : > { %850 = vrot.lane.b32.xlu1 %v2295_v13, %s2190_s19 }
 0x159   : > { %v437_v14 = vpop.permute.xlu1 %436  ;;  %v347_v15 = vpop.permute.xlu0 %346 }
 0x15a   : > { %1998 = vmatpush3.xpose.msk.msra.mxu1 %vm348_vm2, %v347_v15 }
 0x15b   : > { %2002 = vmatprep.subr.mxu1 %v2183_v6 }
 0x15d   : > { %v2303_v16 = vpop.permute.xlu1 %518  ;;  %2000 = vmatmul.mubr.msk.f32.vlgmr.msra.gmra.mrb[0].mxu1 %vm348_vm2, %v2295_v13 }
 0x15e   : > { %2003 = vmatpush3.msk.msra.mxu1 %vm442_vm3, %v437_v14  ;;  %2004 = vmatprep.mubr.msk.f32.mxu1 %vm2182_vm0, %v2183_v6 }
 0x15f   : > { %2007 = vmatprep.subr.mxu1 %v2183_v6 }
 0x161   : > { %v2311_v17 = vpop.permute.xlu1 %516 }
 0x165   : > { %v686_v18 = vpop.permute.xlu1 %685 }
 0x166   : > { %2018 = vmatpush3.xpose.msk.msra.mxu0 %vm348_vm2, %v686_v18 }
 0x167   : > { %2027 = vmatprep.subr.mxu0 %v2183_v6 }
 0x169   : > { %v684_v19 = vpop.permute.xlu1 %683 }
 0x16a   : > { %2020 = vmatmul.mubr.msk.f32.vlgmr.msra.gmra.mrb[2].mxu0 %vm348_vm2, %v684_v19 }
 0x16b   : > { %2029 = vmatprep.mubr.msk.f32.mxu0 %vm2182_vm0, %v2183_v6 }
 0x16d   : > { %v851_v29 = vpop.permute.xlu1 %850 }
 0x230   : > { %v420_v20 = vpop.f32.mrb[0].mxu1 }
 0x231   : > { %v2001_v21 = vpop.f32.mrb[1].mxu1  ;;  %v425_v22 = vsel %vm424_vm4, %v420_v20, -inf }
 0x232   : > { %426 = vmax.xlane.f32.xlu0 %v425_v22 }
 0x23d   : > { %v2319_v23 = vpop.f32.mrb[2].mxu0 }
 0x23e   : > { %v2021_v24 = vpop.f32.mrb[3].mxu0  ;;  %v761_v32 = vsel %vm424_vm4, %v2319_v23, -inf }
 0x248   : > { %852 = vrot.lane.b32.xlu0 %v2289_v11, %s2191_s20 }
 0x24c   : > { %1353 = vrot.lane.b32.xlu0 %v2289_v11, %s2192_s22 }
 0x250   : > { %1520 = vrot.lane.b32.xlu0 %v2289_v11, %s2193_s23  ;;  %s2208_s23 = smov 8  }
 0x2bf   : > { %v427_v25 = vpop.xlane.xlu0 %426 }
 0x2c0   : > { %v428_v26 = vsub.f32 %v420_v20, %v427_v25 }
 0x2c2   : > { %v429_v27 = vmul.f32 1.442695, %v428_v26 }
 0x2c3   : > { %v853_v28 = vpop.permute.xlu0 %852 }
 0x2c4   : > { %2141 = vpow2.f32 %v429_v27  ;;  %2028 = vmatpush3.xpose.msk.msra.mxu0 %vm348_vm2, %v853_v28 }
 0x2c5   : > { %2037 = vmatprep.subr.mxu0 %v2183_v6 }
 0x2c7   : > { %2030 = vmatmul.mubr.msk.f32.vlgmr.msra.gmra.mrb[4].mxu0 %vm348_vm2, %v851_v29  ;;  %v1354_v39 = vpop.permute.xlu0 %1353 }
 0x2c8   : > { %2039 = vmatprep.mubr.msk.f32.mxu0 %vm2182_vm0, %v2183_v6 }
 0x2cb   : > { %v1521_v42 = vpop.permute.xlu0 %1520 }
 0x2ce   : > { %v2142_v30 = vpop.eup %2141 }
 0x2cf   : > { %v431_v31 = vsel %vm424_vm4, %v2142_v30, 0.0 }
 0x2d0   : > { %432 = vadd.xlane.f32.xlu1 %v431_v31 }
 0x2e1   : > { %1019 = vrot.lane.b32.xlu1 %v2289_v11, %s2194_s24 }
 0x2e5   : > { %1017 = vrot.lane.b32.xlu1 %v2295_v13, %s2195_s25 }
 0x2e9   : > { %1186 = vrot.lane.b32.xlu1 %v2289_v11, %s2196_s26 }
 0x2ed   : > { %1184 = vrot.lane.b32.xlu1 %v2295_v13, %s2197_s27 }
 0x2f1   : > { %1351 = vrot.lane.b32.xlu1 %v2295_v13, %s2198_s28  ;;  %s2209_s28 = smov 12  }
 0x2f5   : > { %1518 = vrot.lane.b32.xlu1 %v2295_v13, %s2199_s29  ;;  %s2210_s29 = smov 16  }
 0x319   : > { %762 = vmax.xlane.f32.xlu1 %v761_v32 }
 0x35d   : > { %v433_v33 = vpop.xlane.xlu1 %432 }
 0x35e   : > { %2143 = vrcp.f32 %v433_v33 }
 0x361   : > { %v1020_v34 = vpop.permute.xlu1 %1019 }
 0x362   : > { %2038 = vmatpush3.xpose.msk.msra.mxu0 %vm348_vm2, %v1020_v34 }
 0x363   : > { %2047 = vmatprep.subr.mxu0 %v2183_v6 }
 0x365   : > { %v1018_v35 = vpop.permute.xlu1 %1017 }
 0x366   : > { %2040 = vmatmul.mubr.msk.f32.vlgmr.msra.gmra.mrb[6].mxu0 %vm348_vm2, %v1018_v35 }
 0x367   : > { %2049 = vmatprep.mubr.msk.f32.mxu0 %vm2182_vm0, %v2183_v6 }
 0x368   : > { %v2144_v36 = vpop.eup %2143 }
 0x369   : > { %v2343_v37 = vmul.f32 %v2144_v36, %v2142_v30  ;;  %v1187_v38 = vpop.permute.xlu1 %1186 }
 0x36a   : > { %2048 = vmatpush3.xpose.msk.msra.mxu0 %vm348_vm2, %v1187_v38 }
 0x36b   : > { %2005 = vmatmul.mubr.msk.f32.vlgmr.msra.gmra.mrb[2].mxu1 %vm438_vm5, %v2343_v37  ;;  %2057 = vmatprep.subr.mxu0 %v2183_v6 }
 0x36c   : > { %2008 = vmatpush3.xpose.msk.msra.mxu1 %vm348_vm2, %v2303_v16  ;;  %2009 = vmatprep.mubr.msk.f32.mxu1 %vm2182_vm0, %v2183_v6 }
 0x36d   : > { %v1185_v40 = vpop.permute.xlu1 %1184  ;;  %2012 = vmatprep.subr.mxu1 %v2183_v6 }
 0x36e   : > { %2050 = vmatmul.mubr.msk.f32.vlgmr.msra.gmra.mrb[8].mxu0 %vm348_vm2, %v1185_v40 }
 0x36f   : > { %2058 = vmatpush3.xpose.msk.msra.mxu0 %vm348_vm2, %v1354_v39  ;;  %2010 = vmatmul.mubr.msk.f32.vlgmr.msra.gmra.mrb[4].mxu1 %vm348_vm2, %v2311_v17 }
 0x370   : > { %2059 = vmatprep.mubr.msk.f32.mxu0 %vm2182_vm0, %v2183_v6  ;;  %2067 = vmatprep.subr.mxu0 %v2183_v6 }
 0x371   : > { %v1352_v41 = vpop.permute.xlu1 %1351  ;;  %2014 = vmatprep.mubr.msk.f32.mxu1 %vm2182_vm0, %v2183_v6 }
 0x372   : > { %2060 = vmatmul.mubr.msk.f32.vlgmr.msra.gmra.mrb[10].mxu0 %vm348_vm2, %v1352_v41 }
 0x373   : > { %2068 = vmatpush3.xpose.msk.msra.mxu0 %vm348_vm2, %v1521_v42  ;;  %2069 = vmatprep.mubr.msk.f32.mxu0 %vm2182_vm0, %v2183_v6 }
 0x374   : > { %2094 = vmatprep.subr.bf16.mxu0 %v2181_v3 }
 0x375   : > { %v1519_v43 = vpop.permute.xlu1 %1518 }
 0x376   : > { %2070 = vmatmul.mubr.msk.f32.vlgmr.msra.gmra.mrb[12].mxu0 %vm348_vm2, %v1519_v43 }
 0x377   : > { %2085 = vmatprep.mubr.msk.f32.mxu0 %vm2182_vm0, %v2183_v6 }
 0x39a   : > { %v924_v44 = vpop.f32.mrb[4].mxu0 }
 0x39b   : > { %v2031_v45 = vpop.f32.mrb[5].mxu0  ;;  %v928_v61 = vsel %vm424_vm4, %v924_v44, -inf }
 0x3a6   : > { %v763_v46 = vpop.xlane.xlu1 %762 }
 0x3a7   : > { %v764_v47 = vsub.f32 %v2319_v23, %v763_v46 }
 0x3a9   : > { %v765_v50 = vmul.f32 1.442695, %v764_v47 }
 0x3ab   : > { %2145 = vpow2.f32 %v765_v50 }
 0x3b5   : > { %v2378_v1 = vpop.eup %2145 }
 0x3b6   : > { %v767_v4 = vsel %vm424_vm4, %v2378_v1, 0.0 }
 0x439   : > { %v1091_v48 = vpop.f32.mrb[6].mxu0 }
 0x43a   : > { %v2041_v49 = vpop.f32.mrb[7].mxu0  ;;  %v1095_v2 = vsel %vm424_vm4, %v1091_v48, -inf }
 0x43e   : > { %v2372_v51 = vpop.f32.mrb[2].mxu1 }
 0x43f   : > { %v2006_v52 = vpop.f32.mrb[3].mxu1 }
 0x441   : > { %v1258_v53 = vpop.f32.mrb[8].mxu0 }
 0x442   : > { %v590_v54 = vpop.f32.mrb[4].mxu1  ;;  %v2051_v55 = vpop.f32.mrb[9].mxu0  ;;  %v1262_v56 = vsel %vm424_vm4, %v1258_v53, -inf }
 0x443   : > { %v2011_v57 = vpop.f32.mrb[5].mxu1  ;;  %1263 = vmax.xlane.f32.xlu1 %v1262_v56  ;;  %v594_v58 = vsel %vm424_vm4, %v590_v54, -inf }
 0x444   : > { %595 = vmax.xlane.f32.xlu0 %v594_v58 }
 0x445   : > { %v1425_v59 = vpop.f32.mrb[10].mxu0 }
 0x446   : > { %v2061_v60 = vpop.f32.mrb[11].mxu0  ;;  %v1429_v5 = vsel %vm424_vm4, %v1425_v59, -inf }
 0x448   : > { %929 = vmax.xlane.f32.xlu0 %v928_v61 }
 0x449   : > { %v1592_v62 = vpop.f32.mrb[12].mxu0 }
 0x44a   : > { %v2071_v63 = vpop.f32.mrb[13].mxu0  ;;  %v1596_v0 = vsel %vm424_vm4, %v1592_v62, -inf }
 0x44b   : > { %1597 = vmax.xlane.f32.xlu1 %v1596_v0 }
 0x44c   : > { %1096 = vmax.xlane.f32.xlu0 %v1095_v2 }
 0x44f   : > { %768 = vadd.xlane.f32.xlu1 %v767_v4 }
 0x450   : > { %1430 = vmax.xlane.f32.xlu0 %v1429_v5 }
 0x4d0   : > { %v1264_v7 = vpop.xlane.xlu1 %1263 }
 0x4d1   : > { %v596_v8 = vpop.xlane.xlu0 %595  ;;  %v1265_v9 = vsub.f32 %v1258_v53, %v1264_v7 }
 0x4d2   : > { %v597_v19 = vsub.f32 %v590_v54, %v596_v8 }
 0x4d3   : > { %v1266_v13 = vmul.f32 1.442695, %v1265_v9 }
 0x4d4   : > { %v598_v24 = vmul.f32 1.442695, %v597_v19 }
 0x4d5   : > { %v930_v10 = vpop.xlane.xlu0 %929 }
 0x4d6   : > { %v931_v12 = vsub.f32 %v924_v44, %v930_v10 }
 0x4d8   : > { %v932_v14 = vmul.f32 1.442695, %v931_v12  ;;  %v1598_v15 = vpop.xlane.xlu1 %1597 }
 0x4d9   : > { %v1599_v16 = vsub.f32 %v1592_v62, %v1598_v15  ;;  %v1097_v17 = vpop.xlane.xlu0 %1096 }
 0x4da   : > { %2147 = vpow2.f32 %v932_v14  ;;  %v1098_v18 = vsub.f32 %v1091_v48, %v1097_v17  ;;  %v1727_v17 = vld [vmem:[%s2477_s3 + $0x8] sm:$0xff] }
 0x4db   : > { %2149 = vpow2.f32 %v1266_v13  ;;  %v1600_v20 = vmul.f32 1.442695, %v1599_v16  ;;  %v1726_v16 = vld [vmem:[%s2477_s3] sm:$0xff] }
 0x4dc   : > { %v1099_v21 = vmul.f32 1.442695, %v1098_v18  ;;  %v769_v39 = vpop.xlane.xlu1 %768  ;;  %v2095_v19 = vpack.c.bf16 %v1727_v17, %v1726_v16 }
 0x4dd   : > { %v1431_v22 = vpop.xlane.xlu0 %1430 }
 0x4de   : > { %2151 = vpow2.f32 %v1099_v21  ;;  %v1432_v23 = vsub.f32 %v1425_v59, %v1431_v22  ;;  %2096 = vmatpush3.bf16.msra.mxu0 %v2095_v19  ;;  %v1729_v21 = vld [vmem:[%s2477_s3 + $0x18] sm:$0xff] }
 0x4df   : > { %2153 = vpow2.f32 %v1600_v20  ;;  %2097 = vmatprep.subr.bf16.mxu0 %v2181_v3  ;;  %v1728_v20 = vld [vmem:[%s2477_s3 + $0x10] sm:$0xff] }
 0x4e0   : > { %v1433_v25 = vmul.f32 1.442695, %v1432_v23  ;;  %v2098_v23 = vpack.c.bf16 %v1729_v21, %v1728_v20 }
 0x4e2   : > { %2155 = vpow2.f32 %v1433_v25  ;;  %2099 = vmatpush3.bf16.msra.mxu0 %v2098_v23 }
 0x4e3   : > { %2157 = vpow2.f32 %v598_v24 }
 0x4e4   : > { %v2148_v26 = vpop.eup %2147  ;;  %2159 = vrcp.f32 %v769_v39 }
 0x4e5   : > { %v934_v27 = vsel %vm424_vm4, %v2148_v26, 0.0  ;;  %v2385_v28 = vpop.eup %2149 }
 0x4e6   : > { %935 = vadd.xlane.f32.xlu0 %v934_v27  ;;  %v1268_v30 = vsel %vm424_vm4, %v2385_v28, 0.0 }
 0x4e8   : > { %v2152_v29 = vpop.eup %2151 }
 0x4e9   : > { %v1101_v31 = vsel %vm424_vm4, %v2152_v29, 0.0  ;;  %v2390_v32 = vpop.eup %2153 }
 0x4ea   : > { %1269 = vadd.xlane.f32.xlu0 %v1268_v30  ;;  %1102 = vadd.xlane.f32.xlu1 %v1101_v31  ;;  %v1602_v35 = vsel %vm424_vm4, %v2390_v32, 0.0 }
 0x4ec   : > { %v2392_v33 = vpop.eup %2155 }
 0x4ed   : > { %v1435_v34 = vsel %vm424_vm4, %v2392_v33, 0.0  ;;  %v2158_v36 = vpop.eup %2157 }
 0x4ee   : > { %1436 = vadd.xlane.f32.xlu1 %v1435_v34  ;;  %1603 = vadd.xlane.f32.xlu0 %v1602_v35  ;;  %v600_v38 = vsel %vm424_vm4, %v2158_v36, 0.0  ;;  %v2160_v47 = vpop.eup %2159 }
 0x4ef   : > { %v771_v50 = vmul.f32 %v2160_v47, %v2378_v1 }
 0x4f2   : > { %601 = vadd.xlane.f32.xlu0 %v600_v38 }
 0x4ff   : > { %605 = vrot.lane.b32.xlu1 %v2289_v11, %s2200_s30  ;;  %s2211_s30 = smov 20  }
 0x503   : > { %939 = vrot.lane.b32.xlu1 %v2289_v11, %s2201_s8  ;;  %s2212_s8 = smov 24  }
 0x507   : > { %1106 = vrot.lane.b32.xlu1 %v2289_v11, %s2202_s9  ;;  %s2213_s9 = smov 28  }
 0x508   : > { %772 = vrot.lane.b32.xlu0 %v2289_v11, %s2203_s10 }
 0x50b   : > { %1440 = vrot.lane.b32.xlu1 %v2289_v11, %s2204_s11 }
 0x50c   : > { %1273 = vrot.lane.b32.xlu0 %v2289_v11, %s2205_s12 }
 0x510   : > { %1607 = vrot.lane.b32.xlu0 %v2289_v11, %s2206_s13 }
 0x573   : > { %v936_v40 = vpop.xlane.xlu0 %935 }
 0x577   : > { %v1270_v41 = vpop.xlane.xlu0 %1269  ;;  %v1103_v42 = vpop.xlane.xlu1 %1102 }
 0x57b   : > { %v1604_v43 = vpop.xlane.xlu0 %1603  ;;  %v1437_v44 = vpop.xlane.xlu1 %1436 }
 0x57f   : > { %v602_v45 = vpop.xlane.xlu0 %601  ;;  %v606_v46 = vpop.permute.xlu1 %605 }
 0x580   : > { %2161 = vrcp.f32 %v602_v45  ;;  %2013 = vmatpush3.msk.msra.mxu1 %vm442_vm3, %v606_v46 }
 0x581   : > { %2022 = vmatprep.subr.mxu1 %v2183_v6  ;;  %2163 = vrcp.f32 %v936_v40 }
 0x582   : > { %2165 = vrcp.f32 %v1103_v42 }
 0x583   : > { %2167 = vrcp.f32 %v1270_v41  ;;  %v773_v53 = vpop.permute.xlu0 %772  ;;  %v940_v57 = vpop.permute.xlu1 %939 }
 0x584   : > { %2169 = vrcp.f32 %v1437_v44 }
 0x585   : > { %2171 = vrcp.f32 %v1604_v43 }
 0x587   : > { %v1107_v2 = vpop.permute.xlu1 %1106  ;;  %v1274_v8 = vpop.permute.xlu0 %1273 }
 0x58a   : > { %v2162_v11 = vpop.eup %2161 }
 0x58b   : > { %v604_v48 = vmul.f32 %v2162_v11, %v2158_v36  ;;  %v2164_v49 = vpop.eup %2163  ;;  %v1441_v10 = vpop.permute.xlu1 %1440 }
 0x58c   : > { %v2166_v54 = vpop.eup %2165  ;;  %v938_v55 = vmul.f32 %v2164_v49, %v2148_v26  ;;  %v1608_v12 = vpop.permute.xlu0 %1607 }
 0x58d   : > { %v682_v52 = vadd.f32 %v604_v48, %v2343_v37  ;;  %2015 = vmatmul.mubr.msk.f32.vlgmr.msra.gmra.mrb[6].mxu1 %vm438_vm5, %v604_v48  ;;  %v2168_v58 = vpop.eup %2167  ;;  %v1105_v59 = vmul.f32 %v2166_v54, %v2152_v29 }
 0x58e   : > { %2023 = vmatpush3.msk.msra.mxu1 %vm442_vm3, %v773_v53  ;;  %2024 = vmatprep.mubr.msk.f32.mxu1 %vm2182_vm0, %v2183_v6  ;;  %v2170_v37 = vpop.eup %2169  ;;  %v1272_v61 = vmul.f32 %v2168_v58, %v2385_v28 }
 0x58f   : > { %v849_v56 = vadd.f32 %v771_v50, %v682_v52  ;;  %2032 = vmatprep.subr.mxu1 %v2183_v6  ;;  %v2172_v63 = vpop.eup %2171  ;;  %v1439_v0 = vmul.f32 %v2170_v37, %v2392_v33 }
 0x590   : > { %v1606_v4 = vmul.f32 %v2172_v63, %v2390_v32 }
 0x591   : > { %v1016_v60 = vadd.f32 %v938_v55, %v849_v56  ;;  %2025 = vmatmul.mubr.msk.f32.vlgmr.msra.gmra.mrb[8].mxu1 %vm438_vm5, %v771_v50 }
 0x592   : > { %2033 = vmatpush3.msk.msra.mxu1 %vm442_vm3, %v940_v57  ;;  %2034 = vmatprep.mubr.msk.f32.mxu1 %vm2182_vm0, %v2183_v6 }
 0x593   : > { %v1183_v62 = vadd.f32 %v1105_v59, %v1016_v60  ;;  %2042 = vmatprep.subr.mxu1 %v2183_v6 }
 0x595   : > { %v1350_v1 = vadd.f32 %v1272_v61, %v1183_v62  ;;  %2035 = vmatmul.mubr.msk.f32.vlgmr.msra.gmra.mrb[10].mxu1 %vm438_vm5, %v938_v55 }
 0x596   : > { %2043 = vmatpush3.msk.msra.mxu1 %vm442_vm3, %v1107_v2  ;;  %2044 = vmatprep.mubr.msk.f32.mxu1 %vm2182_vm0, %v2183_v6 }
 0x597   : > { %v1517_v5 = vadd.f32 %v1439_v0, %v1350_v1  ;;  %2052 = vmatprep.subr.mxu1 %v2183_v6 }
 0x599   : > { %v1684_v7 = vadd.f32 %v1606_v4, %v1517_v5  ;;  %2045 = vmatmul.mubr.msk.f32.vlgmr.msra.gmra.mrb[12].mxu1 %vm438_vm5, %v1105_v59 }
 0x59a   : > { %2053 = vmatpush3.msk.msra.mxu1 %vm442_vm3, %v1274_v8  ;;  %2054 = vmatprep.mubr.msk.f32.mxu1 %vm2182_vm0, %v2183_v6 }
 0x59b   : > { %v1812_v9 = vmul.f32 0.125, %v1684_v7  ;;  %2062 = vmatprep.subr.mxu1 %v2183_v6 }
 0x59d   : > { %1813 = vst.msk [vmem:[%s257_s16] sm:$0x3] %vm424_vm4, %v1812_v9  ;;  %2055 = vmatmul.mubr.msk.f32.vlgmr.msra.gmra.mrb[14].mxu1 %vm438_vm5, %v1272_v61 }
 0x59e   : > { %2063 = vmatpush3.msk.msra.mxu1 %vm442_vm3, %v1441_v10  ;;  %2064 = vmatprep.mubr.msk.f32.mxu1 %vm2182_vm0, %v2183_v6 }
 0x59f   : > { %2072 = vmatprep.subr.mxu1 %v2183_v6 }
 0x5a1   : > { %2065 = vmatmul.mubr.msk.f32.vlgmr.msra.gmra.mrb[16].mxu1 %vm438_vm5, %v1439_v0 }
 0x5a2   : > { %2073 = vmatpush3.msk.msra.mxu1 %vm442_vm3, %v1608_v12  ;;  %2074 = vmatprep.mubr.msk.f32.mxu1 %vm2182_vm0, %v2183_v6 }
 0x5a5   : > { %2075 = vmatmul.mubr.msk.f32.vlgmr.msra.gmra.mrb[18].mxu1 %vm438_vm5, %v1606_v4 }
 0x660   : > { %v678_v13 = vpop.f32.mrb[6].mxu1 }
 0x661   : > { %1686 = vrot.lane.b32.xlu1 %v678_v13, %s2207_s17  ;;  %v2016_v14 = vpop.f32.mrb[7].mxu1 }
 0x664   : > { %v845_v15 = vpop.f32.mrb[8].mxu1 }
 0x665   : > { %1690 = vrot.lane.b32.xlu0 %v845_v15, %s2208_s23  ;;  %v2026_v18 = vpop.f32.mrb[9].mxu1 }
 0x668   : > { %v1012_v6 = vpop.f32.mrb[10].mxu1 }
 0x669   : > { %1694 = vrot.lane.b32.xlu1 %v1012_v6, %s2209_s28  ;;  %v2036_v22 = vpop.f32.mrb[11].mxu1 }
 0x66c   : > { %v1179_v24 = vpop.f32.mrb[12].mxu1 }
 0x66d   : > { %1698 = vrot.lane.b32.xlu0 %v1179_v24, %s2210_s29  ;;  %v2046_v25 = vpop.f32.mrb[13].mxu1 }
 0x670   : > { %v1346_v26 = vpop.f32.mrb[14].mxu1 }
 0x671   : > { %1702 = vrot.lane.b32.xlu1 %v1346_v26, %s2211_s30  ;;  %v2056_v3 = vpop.f32.mrb[15].mxu1 }
 0x674   : > { %v1513_v27 = vpop.f32.mrb[16].mxu1 }
 0x675   : > { %1706 = vrot.lane.b32.xlu0 %v1513_v27, %s2212_s8  ;;  %v2066_v28 = vpop.f32.mrb[17].mxu1 }
 0x678   : > { %v1680_v29 = vpop.f32.mrb[18].mxu1 }
 0x679   : > { %1710 = vrot.lane.b32.xlu1 %v1680_v29, %s2213_s9  ;;  %v2076_v30 = vpop.f32.mrb[19].mxu1 }
 0x6d3   : > { %v1687_v31 = vpop.permute.xlu1 %1686 }
 0x6d4   : > { %v1713_v35 = vsel %vm348_vm2, %v2372_v51, %v1687_v31  ;;  %v1940_v51 = vld [vmem:[%s2478_s4] ss:$0 sm:$0xff] }
 0x6d7   : > { %v1691_v32 = vpop.permute.xlu0 %1690 }
 0x6d8   : > { %v1715_v36 = vsel %vm1714_vm6, %v1713_v35, %v1691_v32 }
 0x6db   : > { %v1695_v33 = vpop.permute.xlu1 %1694 }
 0x6dc   : > { %v1717_v39 = vsel %vm1716_vm7, %v1715_v36, %v1695_v33 }
 0x6df   : > { %v1699_v34 = vpop.permute.xlu0 %1698 }
 0x6e0   : > { %v1719_v41 = vsel %vm1718_vm8, %v1717_v39, %v1699_v34 }
 0x6e3   : > { %v1703_v38 = vpop.permute.xlu1 %1702 }
 0x6e4   : > { %v1721_v42 = vsel %vm1720_vm9, %v1719_v41, %v1703_v38 }
 0x6e7   : > { %v1707_v40 = vpop.permute.xlu0 %1706 }
 0x6e8   : > { %v1723_v43 = vsel %vm1722_vm10, %v1721_v42, %v1707_v40 }
 0x6eb   : > { %v1711_v44 = vpop.permute.xlu1 %1710 }
 0x6ec   : > { %v1725_v45 = vsel %vm1724_vm11, %v1723_v43, %v1711_v44 }
 0x6ed   : > { %2086 = vmatmul.mubr.msk.f32.vlgmr.msra.gmra.mrb[14].mxu0 %vm270_vm1, %v1725_v45 }
 0x7c0   : > { %v1806_v46 = vpop.f32.mrb[14].mxu0 }
 0x7c1   : > { %v1807_v47 = vadd.f32 %v1940_v51, %v1806_v46  ;;  %v2087_v11 = vpop.f32.mrb[15].mxu0 }
 0x7c3   : > { %1811 = vst.msk [vmem:[%s253_s14] sm:$0x3] %vm1810_vm12, %v1807_v47 }
 0x7c4 PF: > { %s17_s21 = sadd.s32 1, %s2179_s21  }
 0x7c5   : > { %p14_p4 = scmp.ge.s32.totalorder %s17_s21, 10  }
 0x7c7   :  { %16 = sbr.rel (!%p14_p4) target bundleno = 1 (0x1), region = 82 }

</bundles_post_ra>
